<compile_context>
chip_gen: v5e
topology: v5e:2x2
jax: 0.10.0
libtpu: 0.0.40
codegen_flags: <defaults>
</compile_context>

<pallas_src>
import functools

import jax
import jax.numpy as jnp
from jax.experimental import pallas as pl
from jax.experimental.pallas import tpu as pltpu


EMBED_DIM = 60   # position_embed_dim in the torch module
EMBED_PAD = 64   # lane-padded embed width (zero-padded weight rows -> identical math)


def _round_up(x, m):
    return ((x + m - 1) // m) * m


def _row_tile(r, pref=512):
    # Largest row tile up to `pref`, but keep >=2 grid steps when rows permit
    # (v7x shards "parallel" axes across its two TensorCores; grid=1 idles one).
    if r <= 8:
        return 8
    return min(pref, _round_up((r + 1) // 2, 8))


def _choose_gpt(g, cap=256):
    # query-points-per-tile for the fused kernel (bigger tiles amortize the
    # ~0.35us/step pipeline overhead; keep >=2 steps for v7x megacore).
    if g <= 8:
        return 8
    return min(cap, _round_up((g + 1) // 2, 8))


# ----------------------------- Pallas kernels --------------------------------

def _linear_kernel(x_ref, w_ref, b_ref, o_ref):
    # bf16 operands on the MXU, f32 accumulation.
    o_ref[...] = (jnp.dot(x_ref[...], w_ref[...],
                          preferred_element_type=jnp.float32)
                  + b_ref[...]).astype(o_ref.dtype)


def pallas_linear(x_bf16, w_bf16, b):
    """y = x @ w + b, row-tiled.  x (R,Cin) bf16, w (Cin,Cout) bf16, b (1,Cout) f32."""
    R, Cin = x_bf16.shape
    Cout = w_bf16.shape[1]
    tm = _row_tile(R)
    Rp = _round_up(R, tm)
    if Rp != R:
        x_bf16 = jnp.pad(x_bf16, ((0, Rp - R), (0, 0)))
    out = pl.pallas_call(
        _linear_kernel,
        out_shape=jax.ShapeDtypeStruct((Rp, Cout), jnp.float32),
        grid_spec=pltpu.PrefetchScalarGridSpec(
            num_scalar_prefetch=0,
            grid=(Rp // tm,),
            in_specs=[pl.BlockSpec((tm, Cin), lambda i: (i, 0)),
                      pl.BlockSpec((Cin, Cout), lambda i: (0, 0)),
                      pl.BlockSpec((1, Cout), lambda i: (0, 0))],
            out_specs=pl.BlockSpec((tm, Cout), lambda i: (i, 0))),
        compiler_params=pltpu.CompilerParams(dimension_semantics=("parallel",)),
    )(x_bf16, w_bf16, b)
    return out[:R] if Rp != R else out


def _pos_mlp_agg_bnstats_kernel(nvalid_ref, ge_ref, gf_ref, w1_ref, b1_ref,
                                w2_ref, b2_ref, wt_ref, bt_ref,
                                o_ref, s_ref, ss_ref):
    K, gpt, E = ge_ref.shape
    D = gf_ref.shape[-1]
    # (K, gpt, C) -> (K*gpt, C) is layout-preserving because gpt % 8 == 0.
    ge = ge_ref[...].reshape(K * gpt, E)            # bf16 (already cast host-side)
    gf = gf_ref[...].reshape(K * gpt, D)            # f32

    # fc_position: Linear(60->D) -> ReLU -> Linear(D->D)  (bf16 MXU, f32 accumulate;
    # elementwise math kept in f32 for the v5e VPU/EUP).
    h = jnp.dot(ge, w1_ref[...], preferred_element_type=jnp.float32) + b1_ref[...]
    h = jnp.maximum(h, 0.0)
    pw = jnp.dot(h.astype(jnp.bfloat16), w2_ref[...],
                 preferred_element_type=jnp.float32) + b2_ref[...]

    gf_new = gf + pw                                # g_feature += position_weight
    # linear_t(cat([position_weight, g_feature], -1)): concat in VMEM, one 2D-deep
    # contraction (256-deep -> matches the v6e/v7x MXU depth exactly).
    cat = jnp.concatenate([pw, gf_new], axis=-1).astype(jnp.bfloat16)
    t = jnp.dot(cat, wt_ref[...], preferred_element_type=jnp.float32) + bt_ref[...]

    # softmax over the knn axis + per-channel weighted aggregation, fused in VMEM.
    t3 = t.reshape(K, gpt, D)
    g3 = gf_new.reshape(K, gpt, D)
    t3 = t3 - jnp.max(t3, axis=0, keepdims=True)
    e = jnp.exp(t3)
    wgt = e / jnp.sum(e, axis=0, keepdims=True)     # exact division (matches torch)
    out = jnp.sum(wgt * g3, axis=0)                 # (gpt, D) f32
    o_ref[...] = out.astype(o_ref.dtype)

    # fused BatchNorm batch stats: masked PER-TILE partial sums (no cross-step
    # accumulator, so the grid axis stays "parallel" / megacore-safe on v7x).
    row0 = pl.program_id(0) * gpt
    rows = jax.lax.broadcasted_iota(jnp.int32, (gpt, 1), 0) + row0
    valid = (rows < nvalid_ref[0]).astype(jnp.float32)
    masked = out * valid
    s_ref[...] = jnp.sum(masked, axis=0, keepdims=True).reshape(1, 1, D)
    ss_ref[...] = jnp.sum(masked * out, axis=0, keepdims=True).reshape(1, 1, D)


def pallas_pos_mlp_agg_bnstats(ge, gf, w1, b1, w2, b2, wt, bt, n_valid, gpt):
    """Fused position-MLP + residual + linear_t + softmax-over-knn + aggregation
    + masked per-tile BatchNorm partial stats.

    ge: (K, Gp, EMBED_PAD) bf16, gf: (K, Gp, D) f32, weights bf16, biases f32.
    Returns (out (Gp, D) f32, sum partials (T,1,D), sum-of-squares partials (T,1,D)).
    """
    K, Gp, E = ge.shape
    D = gf.shape[-1]
    assert Gp % gpt == 0 and gpt % 8 == 0
    ntiles = Gp // gpt
    nvalid = jnp.array([n_valid], jnp.int32)
    const = lambda s: pl.BlockSpec(s, lambda i, nv: (0, 0))
    return pl.pallas_call(
        _pos_mlp_agg_bnstats_kernel,
        out_shape=(jax.ShapeDtypeStruct((Gp, D), jnp.float32),
                   jax.ShapeDtypeStruct((ntiles, 1, D), jnp.float32),
                   jax.ShapeDtypeStruct((ntiles, 1, D), jnp.float32)),
        grid_spec=pltpu.PrefetchScalarGridSpec(
            num_scalar_prefetch=1,
            grid=(ntiles,),
            in_specs=[pl.BlockSpec((K, gpt, E), lambda i, nv: (0, i, 0)),
                      pl.BlockSpec((K, gpt, D), lambda i, nv: (0, i, 0)),
                      const((E, D)), const((1, D)),
                      const((D, D)), const((1, D)),
                      const((2 * D, D)), const((1, D))],
            out_specs=[pl.BlockSpec((gpt, D), lambda i, nv: (i, 0)),
                       pl.BlockSpec((1, 1, D), lambda i, nv: (i, 0, 0)),
                       pl.BlockSpec((1, 1, D), lambda i, nv: (i, 0, 0))]),
        compiler_params=pltpu.CompilerParams(
            dimension_semantics=("parallel",),
            vmem_limit_bytes=32 * 1024 * 1024),   # headroom past v5e's 16MiB default
    )(nvalid, ge, gf, w1, b1, w2, b2, wt, bt)


def _affine_kernel(x_ref, scale_ref, shift_ref, o_ref):
    o_ref[...] = (x_ref[...] * scale_ref[...] + shift_ref[...]).astype(o_ref.dtype)


def pallas_affine(x, scale, shift):
    """y = x*scale + shift (BatchNorm normalize with precomputed scale/shift)."""
    R, D = x.shape
    tr = _row_tile(R)
    Rp = _round_up(R, tr)
    xp = jnp.pad(x, ((0, Rp - R), (0, 0))) if Rp != R else x
    out = pl.pallas_call(
        _affine_kernel,
        out_shape=jax.ShapeDtypeStruct((Rp, D), jnp.float32),
        grid_spec=pltpu.PrefetchScalarGridSpec(
            num_scalar_prefetch=0,
            grid=(Rp // tr,),
            in_specs=[pl.BlockSpec((tr, D), lambda i: (i, 0)),
                      pl.BlockSpec((1, D), lambda i: (0, 0)),
                      pl.BlockSpec((1, D), lambda i: (0, 0))],
            out_specs=pl.BlockSpec((tr, D), lambda i: (i, 0))),
        compiler_params=pltpu.CompilerParams(dimension_semantics=("parallel",)),
    )(xp, scale, shift)
    return out[:R] if Rp != R else out


# ------------------------------- JAX glue -------------------------------------

def knn_point(k, xyz, query_xyz):
    # squared pairwise distances [B, M, N], then k smallest
    d = jnp.sum((query_xyz[:, :, None, :] - xyz[:, None, :, :]) ** 2, axis=-1)
    _, idx = jax.lax.top_k(-d, k)
    return idx                                       # [B, M, k]


def index_points(points, idx):
    # points [B, N, C], idx [B, M, K] -> [B, M, K, C]
    return jax.vmap(lambda p, i: p[i])(points, idx)


def index_points_kmajor(points, idx):
    # points [B, N, C], idx [B, M, K] -> [K, B, M, C]  (neighbor-major layout)
    idx_k = jnp.transpose(idx, (2, 0, 1))            # [K, B, M] (tiny transpose)
    return jax.vmap(lambda ik: jax.vmap(lambda p, i: p[i])(points, ik))(idx_k)


def get_3d_sincos_pos_embed_from_point(embed_dim, pts):
    # TODO(synk): helper is not part of the provided module source; assumes the
    # standard per-axis sin/cos embedding (embed_dim//3 dims per coordinate).
    d = embed_dim // 3
    omega = jnp.arange(d // 2, dtype=jnp.float32) / (d / 2.0)
    omega = 1.0 / (10000.0 ** omega)
    parts = []
    for c in range(3):
        out = pts[..., c:c + 1] * omega
        parts.append(jnp.concatenate([jnp.sin(out), jnp.cos(out)], axis=-1))
    return jnp.concatenate(parts, axis=-1)           # [..., embed_dim]


def init_params(key, input_dim, out_dim):
    D = out_dim
    ks = jax.random.split(key, 4)

    def lin(k, fan_in, fan_out):
        bound = 1.0 / (fan_in ** 0.5)
        kw, kb = jax.random.split(k)
        w = jax.random.uniform(kw, (fan_in, fan_out), jnp.float32, -bound, bound)
        b = jax.random.uniform(kb, (1, fan_out), jnp.float32, -bound, bound)
        # store weights at bf16-representable values: the kernels feed them to the
        # MXU as bf16, so kernel and f32 reference share exactly the same weights.
        return w.astype(jnp.bfloat16).astype(jnp.float32), b

    w_prefix, b_prefix = lin(ks[0], input_dim, D)
    w_pos1, b_pos1 = lin(ks[1], EMBED_DIM, D)
    w_pos1 = jnp.pad(w_pos1, ((0, EMBED_PAD - EMBED_DIM), (0, 0)))  # zero rows -> no-op
    w_pos2, b_pos2 = lin(ks[2], D, D)
    w_t, b_t = lin(ks[3], 2 * D, D)
    # suffix_linear and fc exist in the torch module but are never used in forward.
    return {
        "w_prefix": w_prefix, "b_prefix": b_prefix,
        "w_pos1": w_pos1, "b_pos1": b_pos1,
        "w_pos2": w_pos2, "b_pos2": b_pos2,
        "w_t": w_t, "b_t": b_t,
        "bn_gamma": jnp.ones((1, D), jnp.float32),
        "bn_beta": jnp.zeros((1, D), jnp.float32),
    }


@functools.partial(jax.jit, static_argnames=("knn_num",))
def upsample_layer_batch_forward(params, feature1, xyz1, query_xyz, knn_num=12):
    B, N, _ = xyz1.shape
    M = query_xyz.shape[1]
    Cin = feature1.shape[-1]
    D = params["w_prefix"].shape[1]

    bf = lambda k: params[k].astype(jnp.bfloat16)

    # prefix_linear over all source points (Pallas matmul).  Matmul-only activations
    # are cast to bf16 before the pallas_call -> half the DMA read bytes.
    f1 = pallas_linear(feature1.reshape(B * N, Cin).astype(jnp.bfloat16),
                       bf("w_prefix"), params["b_prefix"]).reshape(B, N, D)

    # knn + gathers + sin/cos embedding (JAX glue), gathered directly neighbor-major
    # (K, B*M, C) so the fused kernel's merges/splits are layout-preserving.
    idx = knn_point(knn_num, xyz1, query_xyz)                      # [B, M, K]
    gf_km = index_points_kmajor(f1, idx)                           # [K, B, M, D] f32
    gx_km = index_points_kmajor(xyz1, idx) - query_xyz[None]       # [K, B, M, 3]
    ge_km = get_3d_sincos_pos_embed_from_point(EMBED_DIM, gx_km)   # [K, B, M, 60]
    ge_km = ge_km.astype(jnp.bfloat16)                             # matmul-only input
    ge_km = jnp.pad(ge_km, ((0, 0), (0, 0), (0, 0), (0, EMBED_PAD - EMBED_DIM)))

    G = B * M
    ge = ge_km.reshape(knn_num, G, EMBED_PAD)
    gf = gf_km.reshape(knn_num, G, D)

    gpt = _choose_gpt(G)                             # query points (groups) per tile
    Gp = _round_up(G, gpt)
    if Gp != G:                                      # padded groups masked in-kernel
        ge = jnp.pad(ge, ((0, 0), (0, Gp - G), (0, 0)))
        gf = jnp.pad(gf, ((0, 0), (0, Gp - G), (0, 0)))

    new_feature, s_part, ss_part = pallas_pos_mlp_agg_bnstats(
        ge, gf,
        bf("w_pos1"), params["b_pos1"],
        bf("w_pos2"), params["b_pos2"],
        bf("w_t"), params["b_t"],
        n_valid=G, gpt=gpt)                                        # [Gp, D]

    # BatchNorm1d (train-mode biased batch stats): tiny per-tile-partial reduction
    # and scale/shift precompute stay in XLA, then one parallel normalize kernel.
    s = jnp.sum(s_part, axis=0)                      # (1, D)
    ss = jnp.sum(ss_part, axis=0)                    # (1, D)
    mean = s / G
    var = ss / G - mean * mean                       # biased variance (BN train mode)
    rstd = jax.lax.rsqrt(var + 1e-5)
    scale = rstd * params["bn_gamma"]
    shift = params["bn_beta"] - mean * scale

    new_feature = pallas_affine(new_feature, scale, shift)[:G]
    return new_feature.reshape(B, M, D)


def reference_forward(params, feature1, xyz1, query_xyz, knn_num=12, mxu_bf16=False):
    # pure-JAX reference with identical math; mxu_bf16=True mirrors the kernels'
    # mixed-precision matmuls (bf16 operands, f32 accumulate).
    def mm(a, b):
        if mxu_bf16:
            a, b = a.astype(jnp.bfloat16), b.astype(jnp.bfloat16)
        return jnp.dot(a, b, preferred_element_type=jnp.float32)

    B, N, _ = xyz1.shape
    M = query_xyz.shape[1]
    D = params["w_prefix"].shape[1]
    f1 = mm(feature1, params["w_prefix"]) + params["b_prefix"]
    idx = knn_point(knn_num, xyz1, query_xyz)
    gf = index_points(f1, idx)
    gx = index_points(xyz1, idx) - query_xyz[:, :, None, :]
    ge = get_3d_sincos_pos_embed_from_point(EMBED_DIM, gx)
    h = jax.nn.relu(mm(ge, params["w_pos1"][:EMBED_DIM]) + params["b_pos1"])
    pw = mm(h, params["w_pos2"]) + params["b_pos2"]
    gf = gf + pw
    t = mm(jnp.concatenate([pw, gf], axis=-1), params["w_t"]) + params["b_t"]
    w = jax.nn.softmax(t, axis=2)
    nf = jnp.sum(w * gf, axis=2).reshape(B * M, D)
    mean = nf.mean(0, keepdims=True)
    var = ((nf - mean) ** 2).mean(0, keepdims=True)
    nf = (nf - mean) * jax.lax.rsqrt(var + 1e-5) * params["bn_gamma"] + params["bn_beta"]
    return nf.reshape(B, M, D)


if __name__ == "__main__":
    key = jax.random.PRNGKey(0)
    B, N, M = 2, 256, 64
    input_dim, out_dim, knn_num = 64, 128, 12

    kp, kf, kx, kq = jax.random.split(key, 4)
    params = init_params(kp, input_dim, out_dim)
    feature1 = jax.random.normal(kf, (B, N, input_dim), jnp.float32)
    xyz1 = jax.random.uniform(kx, (B, N, 3), jnp.float32)
    query_xyz = jax.random.uniform(kq, (B, M, 3), jnp.float32)

    out = upsample_layer_batch_forward(params, feature1, xyz1, query_xyz,
                                       knn_num=knn_num)
    out = jax.block_until_ready(out)
    assert out.shape == (B, M, out_dim), out.shape

    # tight check vs a same-precision (bf16-MXU) reference, loose check vs pure f32
    ref_mixed = reference_forward(params, feature1, xyz1, query_xyz, knn_num,
                                  mxu_bf16=True)
    ref_f32 = reference_forward(params, feature1, xyz1, query_xyz, knn_num,
                                mxu_bf16=False)
    assert bool(jnp.allclose(out, ref_mixed, rtol=2e-2, atol=2e-2))
    assert bool(jnp.allclose(out, ref_f32, rtol=1e-1, atol=1e-1))
    print("KERNEL_OK")
</pallas_src>

<mosaic_0001>
module attributes {stable_mosaic.version = 11 : i64} {
  func.func @_linear_kernel(%arg0: i32, %arg1: memref<256x64xbf16, #tpu.memory_space<vmem>>, %arg2: memref<64x128xbf16, #tpu.memory_space<vmem>>, %arg3: memref<1x128xf32, #tpu.memory_space<vmem>>, %arg4: memref<256x128xf32, #tpu.memory_space<vmem>>) attributes {dimension_semantics = [#tpu.dimension_semantics<parallel>], iteration_bounds = array<i64: 2>, scalar_prefetch = 0 : i64, scratch_operands = 0 : i64, tpu.core_type = #tpu.core_type<tc>, window_params = [{transform_indices = @transform_0, window_bounds = array<i64: 256, 64>}, {pipeline_mode = #tpu.pipeline_mode<synchronous>, transform_indices = @transform_1, window_bounds = array<i64: 64, 128>}, {pipeline_mode = #tpu.pipeline_mode<synchronous>, transform_indices = @transform_2, window_bounds = array<i64: 1, 128>}, {transform_indices = @transform_3, window_bounds = array<i64: 256, 128>}]} {
    %c0 = arith.constant 0 : index
    %c0_0 = arith.constant 0 : index
    %0 = vector.load %arg1[%c0, %c0_0] : memref<256x64xbf16, #tpu.memory_space<vmem>>, vector<256x64xbf16>
    %c0_1 = arith.constant 0 : index
    %c0_2 = arith.constant 0 : index
    %1 = vector.load %arg2[%c0_1, %c0_2] : memref<64x128xbf16, #tpu.memory_space<vmem>>, vector<64x128xbf16>
    %cst = arith.constant dense<0.000000e+00> : vector<256x128xf32>
    %2 = tpu.matmul %0, %1, %cst {dimension_numbers = #tpu.dot_dimension_numbers<[1], [0], [0], [1], [0, 0, 1, 1], [], []>} : vector<256x64xbf16>, vector<64x128xbf16>, vector<256x128xf32> -> vector<256x128xf32>
    %c0_3 = arith.constant 0 : index
    %c0_4 = arith.constant 0 : index
    %3 = vector.load %arg3[%c0_3, %c0_4] : memref<1x128xf32, #tpu.memory_space<vmem>>, vector<1x128xf32>
    %4 = vector.broadcast %3 : vector<1x128xf32> to vector<256x128xf32>
    %5 = arith.addf %2, %4 : vector<256x128xf32>
    %c0_5 = arith.constant 0 : index
    %c0_6 = arith.constant 0 : index
    %6 = vector.load %arg4[%c0_5, %c0_6] : memref<256x128xf32, #tpu.memory_space<vmem>>, vector<256x128xf32>
    tpu.vector_store %arg4[%c0_5, %c0_6], %5 {strides = array<i32>} : memref<256x128xf32, #tpu.memory_space<vmem>>, vector<256x128xf32>,
    return
  }
  func.func @transform_0(%arg0: i32) -> (i32, i32) {
    %c0_i32 = arith.constant 0 : i32
    %c0_i32_0 = arith.constant 0 : i32
    return %arg0, %c0_i32 : i32, i32
  }
  func.func @transform_1(%arg0: i32) -> (i32, i32) {
    %c0_i32 = arith.constant 0 : i32
    %c0_i32_0 = arith.constant 0 : i32
    %c0_i32_1 = arith.constant 0 : i32
    return %c0_i32, %c0_i32_0 : i32, i32
  }
  func.func @transform_2(%arg0: i32) -> (i32, i32) {
    %c0_i32 = arith.constant 0 : i32
    %c0_i32_0 = arith.constant 0 : i32
    %c0_i32_1 = arith.constant 0 : i32
    return %c0_i32, %c0_i32_0 : i32, i32
  }
  func.func @transform_3(%arg0: i32) -> (i32, i32) {
    %c0_i32 = arith.constant 0 : i32
    %c0_i32_0 = arith.constant 0 : i32
    return %arg0, %c0_i32 : i32, i32
  }
}

module attributes {stable_mosaic.version = 11 : i64} {
  func.func @_pos_mlp_agg_bnstats_kernel(%arg0: i32, %arg1: memref<1xi32, #tpu.memory_space<smem>>, %arg2: memref<12x64x64xbf16, #tpu.memory_space<vmem>>, %arg3: memref<12x64x128xf32, #tpu.memory_space<vmem>>, %arg4: memref<64x128xbf16, #tpu.memory_space<vmem>>, %arg5: memref<1x128xf32, #tpu.memory_space<vmem>>, %arg6: memref<128x128xbf16, #tpu.memory_space<vmem>>, %arg7: memref<1x128xf32, #tpu.memory_space<vmem>>, %arg8: memref<256x128xbf16, #tpu.memory_space<vmem>>, %arg9: memref<1x128xf32, #tpu.memory_space<vmem>>, %arg10: memref<64x128xf32, #tpu.memory_space<vmem>>, %arg11: memref<1x1x128xf32, #tpu.memory_space<vmem>>, %arg12: memref<1x1x128xf32, #tpu.memory_space<vmem>>) attributes {dimension_semantics = [#tpu.dimension_semantics<parallel>], iteration_bounds = array<i64: 2>, scalar_prefetch = 1 : i64, scratch_operands = 0 : i64, tpu.core_type = #tpu.core_type<tc>, window_params = [{transform_indices = @transform_0, window_bounds = array<i64: 12, 64, 64>}, {transform_indices = @transform_1, window_bounds = array<i64: 12, 64, 128>}, {pipeline_mode = #tpu.pipeline_mode<synchronous>, transform_indices = @transform_2, window_bounds = array<i64: 64, 128>}, {pipeline_mode = #tpu.pipeline_mode<synchronous>, transform_indices = @transform_3, window_bounds = array<i64: 1, 128>}, {pipeline_mode = #tpu.pipeline_mode<synchronous>, transform_indices = @transform_4, window_bounds = array<i64: 128, 128>}, {pipeline_mode = #tpu.pipeline_mode<synchronous>, transform_indices = @transform_5, window_bounds = array<i64: 1, 128>}, {pipeline_mode = #tpu.pipeline_mode<synchronous>, transform_indices = @transform_6, window_bounds = array<i64: 256, 128>}, {pipeline_mode = #tpu.pipeline_mode<synchronous>, transform_indices = @transform_7, window_bounds = array<i64: 1, 128>}, {transform_indices = @transform_8, window_bounds = array<i64: 64, 128>}, {transform_indices = @transform_9, window_bounds = array<i64: 1, 1, 128>}, {transform_indices = @transform_10, window_bounds = array<i64: 1, 1, 128>}]} {
    %c0 = arith.constant 0 : index
    %c0_0 = arith.constant 0 : index
    %c0_1 = arith.constant 0 : index
    %0 = vector.load %arg2[%c0, %c0_0, %c0_1] : memref<12x64x64xbf16, #tpu.memory_space<vmem>>, vector<12x64x64xbf16>
    %1 = vector.shape_cast %0 : vector<12x64x64xbf16> to vector<768x64xbf16>
    %c0_2 = arith.constant 0 : index
    %c0_3 = arith.constant 0 : index
    %c0_4 = arith.constant 0 : index
    %2 = vector.load %arg3[%c0_2, %c0_3, %c0_4] : memref<12x64x128xf32, #tpu.memory_space<vmem>>, vector<12x64x128xf32>
    %3 = vector.shape_cast %2 : vector<12x64x128xf32> to vector<768x128xf32>
    %c0_5 = arith.constant 0 : index
    %c0_6 = arith.constant 0 : index
    %4 = vector.load %arg4[%c0_5, %c0_6] : memref<64x128xbf16, #tpu.memory_space<vmem>>, vector<64x128xbf16>
    %cst = arith.constant dense<0.000000e+00> : vector<768x128xf32>
    %5 = tpu.matmul %1, %4, %cst {dimension_numbers = #tpu.dot_dimension_numbers<[1], [0], [0], [1], [0, 0, 1, 1], [], []>} : vector<768x64xbf16>, vector<64x128xbf16>, vector<768x128xf32> -> vector<768x128xf32>
    %c0_7 = arith.constant 0 : index
    %c0_8 = arith.constant 0 : index
    %6 = vector.load %arg5[%c0_7, %c0_8] : memref<1x128xf32, #tpu.memory_space<vmem>>, vector<1x128xf32>
    %7 = vector.broadcast %6 : vector<1x128xf32> to vector<768x128xf32>
    %8 = arith.addf %5, %7 : vector<768x128xf32>
    %cst_9 = arith.constant 0.000000e+00 : f32
    %9 = vector.broadcast %cst_9 : f32 to vector<768x128xf32>
    %10 = arith.maximumf %8, %9 : vector<768x128xf32>
    %11 = arith.truncf %10 : vector<768x128xf32> to vector<768x128xbf16>
    %c0_10 = arith.constant 0 : index
    %c0_11 = arith.constant 0 : index
    %12 = vector.load %arg6[%c0_10, %c0_11] : memref<128x128xbf16, #tpu.memory_space<vmem>>, vector<128x128xbf16>
    %cst_12 = arith.constant dense<0.000000e+00> : vector<768x128xf32>
    %13 = tpu.matmul %11, %12, %cst_12 {dimension_numbers = #tpu.dot_dimension_numbers<[1], [0], [0], [1], [0, 0, 1, 1], [], []>} : vector<768x128xbf16>, vector<128x128xbf16>, vector<768x128xf32> -> vector<768x128xf32>
    %c0_13 = arith.constant 0 : index
    %c0_14 = arith.constant 0 : index
    %14 = vector.load %arg7[%c0_13, %c0_14] : memref<1x128xf32, #tpu.memory_space<vmem>>, vector<1x128xf32>
    %15 = vector.broadcast %14 : vector<1x128xf32> to vector<768x128xf32>
    %16 = arith.addf %13, %15 : vector<768x128xf32>
    %17 = arith.addf %3, %16 : vector<768x128xf32>
    %18 = tpu.concatenate %16, %17 in 1 : vector<768x128xf32>, vector<768x128xf32> -> vector<768x256xf32>
    %19 = arith.truncf %18 : vector<768x256xf32> to vector<768x256xbf16>
    %c0_15 = arith.constant 0 : index
    %c0_16 = arith.constant 0 : index
    %20 = vector.load %arg8[%c0_15, %c0_16] : memref<256x128xbf16, #tpu.memory_space<vmem>>, vector<256x128xbf16>
    %cst_17 = arith.constant dense<0.000000e+00> : vector<768x128xf32>
    %21 = tpu.matmul %19, %20, %cst_17 {dimension_numbers = #tpu.dot_dimension_numbers<[1], [0], [0], [1], [0, 0, 1, 1], [], []>} : vector<768x256xbf16>, vector<256x128xbf16>, vector<768x128xf32> -> vector<768x128xf32>
    %c0_18 = arith.constant 0 : index
    %c0_19 = arith.constant 0 : index
    %22 = vector.load %arg9[%c0_18, %c0_19] : memref<1x128xf32, #tpu.memory_space<vmem>>, vector<1x128xf32>
    %23 = vector.broadcast %22 : vector<1x128xf32> to vector<768x128xf32>
    %24 = arith.addf %21, %23 : vector<768x128xf32>
    %25 = vector.shape_cast %24 : vector<768x128xf32> to vector<12x64x128xf32>
    %26 = vector.shape_cast %17 : vector<768x128xf32> to vector<12x64x128xf32>
    %cst_20 = arith.constant dense<0xFF800000> : vector<64x128xf32>
    %27 = vector.multi_reduction <maximumf>, %25, %cst_20 [0] : vector<12x64x128xf32> to vector<64x128xf32>
    %28 = vector.shape_cast %27 : vector<64x128xf32> to vector<1x64x128xf32>
    %29 = vector.broadcast %28 : vector<1x64x128xf32> to vector<12x64x128xf32>
    %30 = arith.subf %25, %29 : vector<12x64x128xf32>
    %31 = math.exp %30 : vector<12x64x128xf32>
    %cst_21 = arith.constant dense<0.000000e+00> : vector<64x128xf32>
    %32 = vector.multi_reduction <add>, %31, %cst_21 [0] : vector<12x64x128xf32> to vector<64x128xf32>
    %33 = vector.shape_cast %32 : vector<64x128xf32> to vector<1x64x128xf32>
    %34 = vector.broadcast %33 : vector<1x64x128xf32> to vector<12x64x128xf32>
    %35 = arith.divf %31, %34 : vector<12x64x128xf32>
    %36 = arith.mulf %35, %26 : vector<12x64x128xf32>
    %cst_22 = arith.constant dense<0.000000e+00> : vector<64x128xf32>
    %37 = vector.multi_reduction <add>, %36, %cst_22 [0] : vector<12x64x128xf32> to vector<64x128xf32>
    %c0_23 = arith.constant 0 : index
    %c0_24 = arith.constant 0 : index
    %38 = vector.load %arg10[%c0_23, %c0_24] : memref<64x128xf32, #tpu.memory_space<vmem>>, vector<64x128xf32>
    tpu.vector_store %arg10[%c0_23, %c0_24], %37 {strides = array<i32>} : memref<64x128xf32, #tpu.memory_space<vmem>>, vector<64x128xf32>,
    %c64_i32 = arith.constant 64 : i32
    %39 = arith.muli %arg0, %c64_i32 : i32
    %40 = tpu.iota {dimensions = array<i32: 0>} : vector<64x1xi32>
    %41 = vector.broadcast %39 : i32 to vector<64x1xi32>
    %42 = arith.addi %40, %41 : vector<64x1xi32>
    %c0_25 = arith.constant 0 : index
    %43 = memref.load %arg1[%c0_25] : memref<1xi32, #tpu.memory_space<smem>>
    %44 = vector.broadcast %43 : i32 to vector<64x1xi32>
    %45 = arith.cmpi slt, %42, %44 : vector<64x1xi32>
    %46 = arith.extui %45 : vector<64x1xi1> to vector<64x1xi32>
    %47 = arith.sitofp %46 : vector<64x1xi32> to vector<64x1xf32>
    %48 = vector.broadcast %47 : vector<64x1xf32> to vector<64x128xf32>
    %49 = arith.mulf %37, %48 : vector<64x128xf32>
    %cst_26 = arith.constant dense<0.000000e+00> : vector<128xf32>
    %50 = vector.multi_reduction <add>, %49, %cst_26 [0] : vector<64x128xf32> to vector<128xf32>
    %51 = vector.shape_cast %50 : vector<128xf32> to vector<1x128xf32>
    %52 = vector.shape_cast %51 : vector<1x128xf32> to vector<1x1x128xf32>
    %c0_27 = arith.constant 0 : index
    %c0_28 = arith.constant 0 : index
    %c0_29 = arith.constant 0 : index
    %53 = vector.load %arg11[%c0_27, %c0_28, %c0_29] : memref<1x1x128xf32, #tpu.memory_space<vmem>>, vector<1x1x128xf32>
    tpu.vector_store %arg11[%c0_27, %c0_28, %c0_29], %52 {strides = array<i32>} : memref<1x1x128xf32, #tpu.memory_space<vmem>>, vector<1x1x128xf32>,
    %54 = arith.mulf %49, %37 : vector<64x128xf32>
    %cst_30 = arith.constant dense<0.000000e+00> : vector<128xf32>
    %55 = vector.multi_reduction <add>, %54, %cst_30 [0] : vector<64x128xf32> to vector<128xf32>
    %56 = vector.shape_cast %55 : vector<128xf32> to vector<1x128xf32>
    %57 = vector.shape_cast %56 : vector<1x128xf32> to vector<1x1x128xf32>
    %c0_31 = arith.constant 0 : index
    %c0_32 = arith.constant 0 : index
    %c0_33 = arith.constant 0 : index
    %58 = vector.load %arg12[%c0_31, %c0_32, %c0_33] : memref<1x1x128xf32, #tpu.memory_space<vmem>>, vector<1x1x128xf32>
    tpu.vector_store %arg12[%c0_31, %c0_32, %c0_33], %57 {strides = array<i32>} : memref<1x1x128xf32, #tpu.memory_space<vmem>>, vector<1x1x128xf32>,
    return
  }
  func.func @transform_0(%arg0: i32, %arg1: memref<1xi32, #tpu.memory_space<smem>>) -> (i32, i32, i32) {
    %c0_i32 = arith.constant 0 : i32
    %c0_i32_0 = arith.constant 0 : i32
    %c0_i32_1 = arith.constant 0 : i32
    return %c0_i32, %arg0, %c0_i32_0 : i32, i32, i32
  }
  func.func @transform_1(%arg0: i32, %arg1: memref<1xi32, #tpu.memory_space<smem>>) -> (i32, i32, i32) {
    %c0_i32 = arith.constant 0 : i32
    %c0_i32_0 = arith.constant 0 : i32
    %c0_i32_1 = arith.constant 0 : i32
    return %c0_i32, %arg0, %c0_i32_0 : i32, i32, i32
  }
  func.func @transform_2(%arg0: i32, %arg1: memref<1xi32, #tpu.memory_space<smem>>) -> (i32, i32) {
    %c0_i32 = arith.constant 0 : i32
    %c0_i32_0 = arith.constant 0 : i32
    %c0_i32_1 = arith.constant 0 : i32
    return %c0_i32, %c0_i32_0 : i32, i32
  }
  func.func @transform_3(%arg0: i32, %arg1: memref<1xi32, #tpu.memory_space<smem>>) -> (i32, i32) {
    %c0_i32 = arith.constant 0 : i32
    %c0_i32_0 = arith.constant 0 : i32
    %c0_i32_1 = arith.constant 0 : i32
    return %c0_i32, %c0_i32_0 : i32, i32
  }
  func.func @transform_4(%arg0: i32, %arg1: memref<1xi32, #tpu.memory_space<smem>>) -> (i32, i32) {
    %c0_i32 = arith.constant 0 : i32
    %c0_i32_0 = arith.constant 0 : i32
    %c0_i32_1 = arith.constant 0 : i32
    return %c0_i32, %c0_i32_0 : i32, i32
  }
  func.func @transform_5(%arg0: i32, %arg1: memref<1xi32, #tpu.memory_space<smem>>) -> (i32, i32) {
    %c0_i32 = arith.constant 0 : i32
    %c0_i32_0 = arith.constant 0 : i32
    %c0_i32_1 = arith.constant 0 : i32
    return %c0_i32, %c0_i32_0 : i32, i32
  }
  func.func @transform_6(%arg0: i32, %arg1: memref<1xi32, #tpu.memory_space<smem>>) -> (i32, i32) {
    %c0_i32 = arith.constant 0 : i32
    %c0_i32_0 = arith.constant 0 : i32
    %c0_i32_1 = arith.constant 0 : i32
    return %c0_i32, %c0_i32_0 : i32, i32
  }
  func.func @transform_7(%arg0: i32, %arg1: memref<1xi32, #tpu.memory_space<smem>>) -> (i32, i32) {
    %c0_i32 = arith.constant 0 : i32
    %c0_i32_0 = arith.constant 0 : i32
    %c0_i32_1 = arith.constant 0 : i32
    return %c0_i32, %c0_i32_0 : i32, i32
  }
  func.func @transform_8(%arg0: i32, %arg1: memref<1xi32, #tpu.memory_space<smem>>) -> (i32, i32) {
    %c0_i32 = arith.constant 0 : i32
    %c0_i32_0 = arith.constant 0 : i32
    return %arg0, %c0_i32 : i32, i32
  }
  func.func @transform_9(%arg0: i32, %arg1: memref<1xi32, #tpu.memory_space<smem>>) -> (i32, i32, i32) {
    %c0_i32 = arith.constant 0 : i32
    %c0_i32_0 = arith.constant 0 : i32
    %c0_i32_1 = arith.constant 0 : i32
    return %arg0, %c0_i32, %c0_i32_0 : i32, i32, i32
  }
  func.func @transform_10(%arg0: i32, %arg1: memref<1xi32, #tpu.memory_space<smem>>) -> (i32, i32, i32) {
    %c0_i32 = arith.constant 0 : i32
    %c0_i32_0 = arith.constant 0 : i32
    %c0_i32_1 = arith.constant 0 : i32
    return %arg0, %c0_i32, %c0_i32_0 : i32, i32, i32
  }
}

module attributes {stable_mosaic.version = 11 : i64} {
  func.func @_affine_kernel(%arg0: i32, %arg1: memref<64x128xf32, #tpu.memory_space<vmem>>, %arg2: memref<1x128xf32, #tpu.memory_space<vmem>>, %arg3: memref<1x128xf32, #tpu.memory_space<vmem>>, %arg4: memref<64x128xf32, #tpu.memory_space<vmem>>) attributes {dimension_semantics = [#tpu.dimension_semantics<parallel>], iteration_bounds = array<i64: 2>, scalar_prefetch = 0 : i64, scratch_operands = 0 : i64, tpu.core_type = #tpu.core_type<tc>, window_params = [{transform_indices = @transform_0, window_bounds = array<i64: 64, 128>}, {pipeline_mode = #tpu.pipeline_mode<synchronous>, transform_indices = @transform_1, window_bounds = array<i64: 1, 128>}, {pipeline_mode = #tpu.pipeline_mode<synchronous>, transform_indices = @transform_2, window_bounds = array<i64: 1, 128>}, {transform_indices = @transform_3, window_bounds = array<i64: 64, 128>}]} {
    %c0 = arith.constant 0 : index
    %c0_0 = arith.constant 0 : index
    %0 = vector.load %arg1[%c0, %c0_0] : memref<64x128xf32, #tpu.memory_space<vmem>>, vector<64x128xf32>
    %c0_1 = arith.constant 0 : index
    %c0_2 = arith.constant 0 : index
    %1 = vector.load %arg2[%c0_1, %c0_2] : memref<1x128xf32, #tpu.memory_space<vmem>>, vector<1x128xf32>
    %2 = vector.broadcast %1 : vector<1x128xf32> to vector<64x128xf32>
    %3 = arith.mulf %0, %2 : vector<64x128xf32>
    %c0_3 = arith.constant 0 : index
    %c0_4 = arith.constant 0 : index
    %4 = vector.load %arg3[%c0_3, %c0_4] : memref<1x128xf32, #tpu.memory_space<vmem>>, vector<1x128xf32>
    %5 = vector.broadcast %4 : vector<1x128xf32> to vector<64x128xf32>
    %6 = arith.addf %3, %5 : vector<64x128xf32>
    %c0_5 = arith.constant 0 : index
    %c0_6 = arith.constant 0 : index
    %7 = vector.load %arg4[%c0_5, %c0_6] : memref<64x128xf32, #tpu.memory_space<vmem>>, vector<64x128xf32>
    tpu.vector_store %arg4[%c0_5, %c0_6], %6 {strides = array<i32>} : memref<64x128xf32, #tpu.memory_space<vmem>>, vector<64x128xf32>,
    return
  }
  func.func @transform_0(%arg0: i32) -> (i32, i32) {
    %c0_i32 = arith.constant 0 : i32
    %c0_i32_0 = arith.constant 0 : i32
    return %arg0, %c0_i32 : i32, i32
  }
  func.func @transform_1(%arg0: i32) -> (i32, i32) {
    %c0_i32 = arith.constant 0 : i32
    %c0_i32_0 = arith.constant 0 : i32
    %c0_i32_1 = arith.constant 0 : i32
    return %c0_i32, %c0_i32_0 : i32, i32
  }
  func.func @transform_2(%arg0: i32) -> (i32, i32) {
    %c0_i32 = arith.constant 0 : i32
    %c0_i32_0 = arith.constant 0 : i32
    %c0_i32_1 = arith.constant 0 : i32
    return %c0_i32, %c0_i32_0 : i32, i32
  }
  func.func @transform_3(%arg0: i32) -> (i32, i32) {
    %c0_i32 = arith.constant 0 : i32
    %c0_i32_0 = arith.constant 0 : i32
    return %arg0, %c0_i32 : i32, i32
  }
}

</mosaic_0001>

<bundles_post_ra>
// kernel: neg.1
= control target key start
LH: loop header
LB: loop body
LE: loop exit
PB: predicated region body
PF: predicated region fallthrough
CT: control target
= control target key end

     0   :  { %s520_s0 = inlined_call_operand.vmem [shape: f32[2,64,256], index: 0, kind: input, shape index: {}]   ;;  %s521_s1 = inlined_call_operand.vmem [shape: f32[2,64,256], index: 1, kind: output, shape index: {}]  }
   0x1   :  { %v2_v0 = vld [vmem:[%s520_s0] sm:$0xff]  ;;  %v258_v2 = vld [vmem:[%s520_s0 + $0x10] sm:$0xff]  ;;  %v286_v30 = vld [vmem:[%s520_s0 + $0x8] sm:$0xff] }
   0x2   :  { %v256_v1 = vld [vmem:[%s520_s0 + $0x80] sm:$0xff]  ;;  %v5_v3 = vxor.u32 2147483648, %v2_v0  ;;  %v20_v5 = vxor.u32 2147483648, %v258_v2  ;;  %v260_v6 = vld [vmem:[%s520_s0 + $0x90] sm:$0xff]  ;;  %v288_v32 = vld [vmem:[%s520_s0 + $0x88] sm:$0xff]  ;;  %v132_v35 = vxor.u32 2147483648, %v286_v30 }
   0x3   :  { %v12_v4 = vxor.u32 2147483648, %v256_v1  ;;  %v262_v7 = vld [vmem:[%s520_s0 + $0x20] sm:$0xff]  ;;  %v28_v9 = vxor.u32 2147483648, %v260_v6  ;;  %v266_v10 = vld [vmem:[%s520_s0 + $0x30] sm:$0xff]  ;;  %v290_v34 = vld [vmem:[%s520_s0 + $0x18] sm:$0xff]  ;;  %v140_v37 = vxor.u32 2147483648, %v288_v32 }
   0x4   :  { %v264_v8 = vld [vmem:[%s520_s0 + $0xa0] sm:$0xff]  ;;  %7 = vst [vmem:[%s521_s1] sm:$0xff] %v5_v3  ;;  %v36_v11 = vxor.u32 2147483648, %v262_v7  ;;  %v268_v12 = vld [vmem:[%s520_s0 + $0xb0] sm:$0xff]  ;;  %v52_v15 = vxor.u32 2147483648, %v266_v10  ;;  %v292_v36 = vld [vmem:[%s520_s0 + $0x98] sm:$0xff]  ;;  %v148_v39 = vxor.u32 2147483648, %v290_v34 }
   0x5   :  { %257 = vst [vmem:[%s521_s1 + $0x80] sm:$0xff] %v12_v4  ;;  %v44_v13 = vxor.u32 2147483648, %v264_v8  ;;  %v270_v14 = vld [vmem:[%s520_s0 + $0x40] sm:$0xff]  ;;  %v60_v17 = vxor.u32 2147483648, %v268_v12  ;;  %v274_v18 = vld [vmem:[%s520_s0 + $0x50] sm:$0xff]  ;;  %v294_v38 = vld [vmem:[%s520_s0 + $0x28] sm:$0xff] }
   0x6   :  { %259 = vst [vmem:[%s521_s1 + $0x10] sm:$0xff] %v20_v5  ;;  %v272_v16 = vld [vmem:[%s520_s0 + $0xc0] sm:$0xff]  ;;  %v68_v19 = vxor.u32 2147483648, %v270_v14  ;;  %v276_v20 = vld [vmem:[%s520_s0 + $0xd0] sm:$0xff]  ;;  %v84_v23 = vxor.u32 2147483648, %v274_v18  ;;  %v296_v40 = vld [vmem:[%s520_s0 + $0xa8] sm:$0xff] }
   0x7   :  { %261 = vst [vmem:[%s521_s1 + $0x90] sm:$0xff] %v28_v9  ;;  %v76_v21 = vxor.u32 2147483648, %v272_v16  ;;  %v278_v22 = vld [vmem:[%s520_s0 + $0x60] sm:$0xff]  ;;  %v92_v25 = vxor.u32 2147483648, %v276_v20  ;;  %v282_v26 = vld [vmem:[%s520_s0 + $0x70] sm:$0xff]  ;;  %v156_v41 = vxor.u32 2147483648, %v292_v36 }
   0x8   :  { %263 = vst [vmem:[%s521_s1 + $0x20] sm:$0xff] %v36_v11  ;;  %v280_v24 = vld [vmem:[%s520_s0 + $0xe0] sm:$0xff]  ;;  %v100_v27 = vxor.u32 2147483648, %v278_v22  ;;  %v284_v28 = vld [vmem:[%s520_s0 + $0xf0] sm:$0xff]  ;;  %v116_v31 = vxor.u32 2147483648, %v282_v26  ;;  %v298_v42 = vld [vmem:[%s520_s0 + $0x38] sm:$0xff] }
   0x9   :  { %265 = vst [vmem:[%s521_s1 + $0xa0] sm:$0xff] %v44_v13  ;;  %v108_v29 = vxor.u32 2147483648, %v280_v24  ;;  %v124_v33 = vxor.u32 2147483648, %v284_v28  ;;  %v164_v43 = vxor.u32 2147483648, %v294_v38  ;;  %v300_v44 = vld [vmem:[%s520_s0 + $0xb8] sm:$0xff]  ;;  %v172_v45 = vxor.u32 2147483648, %v296_v40 }
   0xa   :  { %267 = vst [vmem:[%s521_s1 + $0x30] sm:$0xff] %v52_v15  ;;  %v302_v46 = vld [vmem:[%s520_s0 + $0x48] sm:$0xff]  ;;  %v180_v47 = vxor.u32 2147483648, %v298_v42  ;;  %v188_v49 = vxor.u32 2147483648, %v300_v44  ;;  %v306_v50 = vld [vmem:[%s520_s0 + $0x58] sm:$0xff] }
   0xb   :  { %269 = vst [vmem:[%s521_s1 + $0xb0] sm:$0xff] %v60_v17  ;;  %v304_v48 = vld [vmem:[%s520_s0 + $0xc8] sm:$0xff]  ;;  %v196_v51 = vxor.u32 2147483648, %v302_v46  ;;  %v308_v52 = vld [vmem:[%s520_s0 + $0xd8] sm:$0xff]  ;;  %v212_v55 = vxor.u32 2147483648, %v306_v50 }
   0xc   :  { %271 = vst [vmem:[%s521_s1 + $0x40] sm:$0xff] %v68_v19  ;;  %v204_v53 = vxor.u32 2147483648, %v304_v48  ;;  %v310_v54 = vld [vmem:[%s520_s0 + $0x68] sm:$0xff]  ;;  %v220_v57 = vxor.u32 2147483648, %v308_v52  ;;  %v314_v58 = vld [vmem:[%s520_s0 + $0x78] sm:$0xff] }
   0xd   :  { %273 = vst [vmem:[%s521_s1 + $0xc0] sm:$0xff] %v76_v21  ;;  %v312_v56 = vld [vmem:[%s520_s0 + $0xe8] sm:$0xff]  ;;  %v228_v59 = vxor.u32 2147483648, %v310_v54  ;;  %v316_v60 = vld [vmem:[%s520_s0 + $0xf8] sm:$0xff]  ;;  %v244_v62 = vxor.u32 2147483648, %v314_v58 }
   0xe   :  { %275 = vst [vmem:[%s521_s1 + $0x50] sm:$0xff] %v84_v23  ;;  %v236_v61 = vxor.u32 2147483648, %v312_v56  ;;  %v252_v63 = vxor.u32 2147483648, %v316_v60 }
   0xf   :  { %277 = vst [vmem:[%s521_s1 + $0xd0] sm:$0xff] %v92_v25 }
  0x10   :  { %279 = vst [vmem:[%s521_s1 + $0x60] sm:$0xff] %v100_v27 }
  0x11   :  { %281 = vst [vmem:[%s521_s1 + $0xe0] sm:$0xff] %v108_v29 }
  0x12   :  { %283 = vst [vmem:[%s521_s1 + $0x70] sm:$0xff] %v116_v31 }
  0x13   :  { %285 = vst [vmem:[%s521_s1 + $0xf0] sm:$0xff] %v124_v33 }
  0x14   :  { %287 = vst [vmem:[%s521_s1 + $0x8] sm:$0xff] %v132_v35 }
  0x15   :  { %289 = vst [vmem:[%s521_s1 + $0x88] sm:$0xff] %v140_v37 }
  0x16   :  { %291 = vst [vmem:[%s521_s1 + $0x18] sm:$0xff] %v148_v39 }
  0x17   :  { %293 = vst [vmem:[%s521_s1 + $0x98] sm:$0xff] %v156_v41 }
  0x18   :  { %295 = vst [vmem:[%s521_s1 + $0x28] sm:$0xff] %v164_v43 }
  0x19   :  { %297 = vst [vmem:[%s521_s1 + $0xa8] sm:$0xff] %v172_v45 }
  0x1a   :  { %299 = vst [vmem:[%s521_s1 + $0x38] sm:$0xff] %v180_v47 }
  0x1b   :  { %301 = vst [vmem:[%s521_s1 + $0xb8] sm:$0xff] %v188_v49 }
  0x1c   :  { %303 = vst [vmem:[%s521_s1 + $0x48] sm:$0xff] %v196_v51 }
  0x1d   :  { %305 = vst [vmem:[%s521_s1 + $0xc8] sm:$0xff] %v204_v53 }
  0x1e   :  { %307 = vst [vmem:[%s521_s1 + $0x58] sm:$0xff] %v212_v55 }
  0x1f   :  { %309 = vst [vmem:[%s521_s1 + $0xd8] sm:$0xff] %v220_v57 }
  0x20   :  { %311 = vst [vmem:[%s521_s1 + $0x68] sm:$0xff] %v228_v59 }
  0x21   :  { %313 = vst [vmem:[%s521_s1 + $0xe8] sm:$0xff] %v236_v61 }
  0x22   :  { %315 = vst [vmem:[%s521_s1 + $0x78] sm:$0xff] %v244_v62 }
  0x23   :  { %317 = vst [vmem:[%s521_s1 + $0xf8] sm:$0xff] %v252_v63 }

// kernel: upsample_layer_batch_forward.3
= control target key start
LH: loop header
LB: loop body
LE: loop exit
PB: predicated region body
PF: predicated region fallthrough
CT: control target
= control target key end

     0   :  { %s725_s12 = smov 0   ;;  %s863_s0 = inlined_call_operand.vmem [shape: bf16[512,64], index: 0, kind: input, shape index: {}]   ;;  %s864_s1 = inlined_call_operand.vmem [shape: bf16[64,128], index: 1, kind: input, shape index: {}]   ;;  %s865_s2 = inlined_call_operand.vmem [shape: f32[1,128], index: 2, kind: input, shape index: {}]   ;;  %s866_s3 = inlined_call_operand.vmem [shape: f32[512,128], index: 3, kind: output, shape index: {}]  }
   0x1 LB: > { %s549_s13 = sadd.s32 4294967295, %s703_s12   ;;  %p553_p0 = scmp.ge.s32.totalorder %s703_s12, 1  ;;  %s703_s12 = sphi %s725_s12, %s13_s12  }
   0x2   : > { %p138_p1 = scmp.lt.s32.totalorder %s703_s12, 3 }
   0x4   : > { %p139_p2 = pnand %p553_p0, %p138_p1 }
   0x5   : > { %s554_s16 = sshll.u32 (!%p139_p2), %s549_s13, 5 }
   0x6   : > { %142 = sbr.rel (%p139_p2) target bundleno = 220 (0xdc), region = 32  ;;  %p163_p3 = scmp.lt.s32.totalorder (!%p139_p2), %s554_s16, 63 }
   0xb   : > { %v675_v0 = vld [vmem:[%s864_s1 + $0x18] sm:$0xff]  ;;  %v674_v1 = vld [vmem:[%s864_s1 + $0x10] sm:$0xff]  ;;  %s868_s16 = smov (!%p163_p3, %s554_s16), 63  ;;  %v673_v2 = vld [vmem:[%s864_s1 + $0x8] sm:$0xff]  ;;  %vm323_vm0 = vcmask 523264  }
   0xc   : > { %376 = vmatpush.bf16.msra.mxu0 %v675_v0  ;;  %676 = vmatpush.bf16.msra.mxu1 %v675_v0  ;;  %s555_s21 = sshll.u32 %s868_s16, 2  ;;  %v672_v3 = vld [vmem:[%s864_s1] sm:$0xff]  ;;  %s557_s27 = sshll.u32 %s868_s16, 3 }
   0xd   : > { %677 = vmatpush.bf16.msra.mxu2 %v675_v0  ;;  %678 = vmatpush.bf16.msra.mxu3 %v675_v0  ;;  %s751_s26 = scalar_lea.vmem %s863_s0, %s555_s21  ;;  %v789_v20 = vld [vmem:[%s865_s2] ss:$0 sm:$0xff]  ;;  %s794_s5 = scalar_lea.vmem %s866_s3, %s557_s27 }
   0xe   : > { %v656_v4 = vld [vmem:[%s751_s26] sm:$0xff]  ;;  %v657_v8 = vld [vmem:[%s751_s26 + $0x8] sm:$0xff]  ;;  %v658_v12 = vld [vmem:[%s751_s26 + $0x10] sm:$0xff] }
   0xf   : > { %v660_v5 = vld [vmem:[%s751_s26 + $0x20] sm:$0xff]  ;;  %v661_v9 = vld [vmem:[%s751_s26 + $0x28] sm:$0xff]  ;;  %v662_v13 = vld [vmem:[%s751_s26 + $0x30] sm:$0xff] }
  0x10   : > { %377 = vmatpush.bf16.msra.mxu0 %v674_v1  ;;  %679 = vmatpush.bf16.msra.mxu1 %v674_v1  ;;  %v664_v6 = vld [vmem:[%s751_s26 + $0x40] sm:$0xff]  ;;  %v665_v10 = vld [vmem:[%s751_s26 + $0x48] sm:$0xff]  ;;  %v666_v14 = vld [vmem:[%s751_s26 + $0x50] sm:$0xff] }
  0x11   : > { %680 = vmatpush.bf16.msra.mxu2 %v674_v1  ;;  %681 = vmatpush.bf16.msra.mxu3 %v674_v1  ;;  %v668_v7 = vld [vmem:[%s751_s26 + $0x60] sm:$0xff]  ;;  %v669_v11 = vld [vmem:[%s751_s26 + $0x68] sm:$0xff]  ;;  %v670_v15 = vld [vmem:[%s751_s26 + $0x70] sm:$0xff] }
  0x12   : > { %v659_v16 = vld [vmem:[%s751_s26 + $0x18] sm:$0xff] }
  0x13   : > { %v663_v17 = vld [vmem:[%s751_s26 + $0x38] sm:$0xff] }
  0x14   : > { %378 = vmatpush.bf16.msra.mxu0 %v673_v2  ;;  %682 = vmatpush.bf16.msra.mxu1 %v673_v2  ;;  %v667_v18 = vld [vmem:[%s751_s26 + $0x58] sm:$0xff] }
  0x15   : > { %683 = vmatpush.bf16.msra.mxu2 %v673_v2  ;;  %684 = vmatpush.bf16.msra.mxu3 %v673_v2  ;;  %v671_v19 = vld [vmem:[%s751_s26 + $0x78] sm:$0xff] }
  0x18   : > { %379 = vmatpush.bf16.msra.mxu0 %v672_v3  ;;  %685 = vmatpush.bf16.msra.mxu1 %v672_v3 }
  0x19   : > { %686 = vmatpush.bf16.msra.mxu2 %v672_v3  ;;  %687 = vmatpush.bf16.msra.mxu3 %v672_v3 }
  0x1b   : > { %638 = vmatmul.msk.bf16.vlgmr.msra.gmra.mxu0 %vm323_vm0, %v656_v4  ;;  %642 = vmatmul.msk.bf16.vlgmr.msra.gmra.mxu1 %vm323_vm0, %v660_v5 }
  0x1c   : > { %646 = vmatmul.msk.bf16.vlgmr.msra.gmra.mxu2 %vm323_vm0, %v664_v6  ;;  %650 = vmatmul.msk.bf16.vlgmr.msra.gmra.mxu3 %vm323_vm0, %v668_v7 }
  0x2b   : > { %639 = vmatmul.msk.bf16.gmra.mxu0 %vm323_vm0, %v657_v8  ;;  %643 = vmatmul.msk.bf16.gmra.mxu1 %vm323_vm0, %v661_v9 }
  0x2c   : > { %647 = vmatmul.msk.bf16.gmra.mxu2 %vm323_vm0, %v665_v10  ;;  %651 = vmatmul.msk.bf16.gmra.mxu3 %vm323_vm0, %v669_v11 }
  0x3b   : > { %640 = vmatmul.msk.bf16.gmra.mxu0 %vm323_vm0, %v658_v12  ;;  %644 = vmatmul.msk.bf16.gmra.mxu1 %vm323_vm0, %v662_v13 }
  0x3c   : > { %648 = vmatmul.msk.bf16.gmra.mxu2 %vm323_vm0, %v666_v14  ;;  %652 = vmatmul.msk.bf16.gmra.mxu3 %vm323_vm0, %v670_v15 }
  0x4b   : > { %641 = vmatmul.msk.bf16.gmra.mxu0 %vm323_vm0, %v659_v16  ;;  %645 = vmatmul.msk.bf16.gmra.mxu1 %vm323_vm0, %v663_v17 }
  0x4c   : > { %649 = vmatmul.msk.bf16.gmra.mxu2 %vm323_vm0, %v667_v18  ;;  %653 = vmatmul.msk.bf16.gmra.mxu3 %vm323_vm0, %v671_v19 }
  0x98   : > { %v381_v21 = vpop.f32.mrf.mxu0  ;;  %v401_v22 = vpop.f32.mrf.mxu1 }
  0x99   : > { %v382_v23 = vadd.f32 %v789_v20, %v381_v21  ;;  %v402_v24 = vadd.f32 %v789_v20, %v401_v22 }
  0x9b   : > { %461 = vst [vmem:[%s794_s5] sm:$0xff] %v382_v23 }
  0x9c   : > { %469 = vst [vmem:[%s794_s5 + $0x40] sm:$0xff] %v402_v24 }
  0x9f   : > { %v421_v25 = vpop.f32.mrf.mxu2  ;;  %v441_v26 = vpop.f32.mrf.mxu3 }
  0xa0   : > { %v422_v27 = vadd.f32 %v789_v20, %v421_v25  ;;  %v442_v28 = vadd.f32 %v789_v20, %v441_v26  ;;  %v383_v29 = vpop.f32.mrf.mxu0  ;;  %v403_v30 = vpop.f32.mrf.mxu1 }
  0xa1   : > { %v384_v31 = vadd.f32 %v789_v20, %v383_v29  ;;  %v404_v32 = vadd.f32 %v789_v20, %v403_v30 }
  0xa2   : > { %477 = vst [vmem:[%s794_s5 + $0x80] sm:$0xff] %v422_v27 }
  0xa3   : > { %485 = vst [vmem:[%s794_s5 + $0xc0] sm:$0xff] %v442_v28 }
  0xa4   : > { %462 = vst [vmem:[%s794_s5 + $0x8] sm:$0xff] %v384_v31 }
  0xa5   : > { %470 = vst [vmem:[%s794_s5 + $0x48] sm:$0xff] %v404_v32 }
  0xa7   : > { %v423_v33 = vpop.f32.mrf.mxu2  ;;  %v443_v34 = vpop.f32.mrf.mxu3 }
  0xa8   : > { %v424_v35 = vadd.f32 %v789_v20, %v423_v33  ;;  %v444_v36 = vadd.f32 %v789_v20, %v443_v34  ;;  %v386_v37 = vpop.f32.mrf.mxu0  ;;  %v406_v38 = vpop.f32.mrf.mxu1 }
  0xa9   : > { %v387_v39 = vadd.f32 %v789_v20, %v386_v37  ;;  %v407_v40 = vadd.f32 %v789_v20, %v406_v38 }
  0xaa   : > { %478 = vst [vmem:[%s794_s5 + $0x88] sm:$0xff] %v424_v35 }
  0xab   : > { %486 = vst [vmem:[%s794_s5 + $0xc8] sm:$0xff] %v444_v36 }
  0xac   : > { %463 = vst [vmem:[%s794_s5 + $0x10] sm:$0xff] %v387_v39 }
  0xad   : > { %471 = vst [vmem:[%s794_s5 + $0x50] sm:$0xff] %v407_v40 }
  0xaf   : > { %v426_v41 = vpop.f32.mrf.mxu2  ;;  %v446_v42 = vpop.f32.mrf.mxu3 }
  0xb0   : > { %v427_v43 = vadd.f32 %v789_v20, %v426_v41  ;;  %v447_v44 = vadd.f32 %v789_v20, %v446_v42  ;;  %v388_v45 = vpop.f32.mrf.mxu0  ;;  %v408_v46 = vpop.f32.mrf.mxu1 }
  0xb1   : > { %v389_v47 = vadd.f32 %v789_v20, %v388_v45  ;;  %v409_v48 = vadd.f32 %v789_v20, %v408_v46 }
  0xb2   : > { %479 = vst [vmem:[%s794_s5 + $0x90] sm:$0xff] %v427_v43 }
  0xb3   : > { %487 = vst [vmem:[%s794_s5 + $0xd0] sm:$0xff] %v447_v44 }
  0xb4   : > { %464 = vst [vmem:[%s794_s5 + $0x18] sm:$0xff] %v389_v47 }
  0xb5   : > { %472 = vst [vmem:[%s794_s5 + $0x58] sm:$0xff] %v409_v48 }
  0xb7   : > { %v428_v49 = vpop.f32.mrf.mxu2  ;;  %v448_v50 = vpop.f32.mrf.mxu3 }
  0xb8   : > { %v429_v51 = vadd.f32 %v789_v20, %v428_v49  ;;  %v449_v52 = vadd.f32 %v789_v20, %v448_v50  ;;  %v391_v53 = vpop.f32.mrf.mxu0  ;;  %v411_v54 = vpop.f32.mrf.mxu1 }
  0xb9   : > { %v392_v55 = vadd.f32 %v789_v20, %v391_v53  ;;  %v412_v56 = vadd.f32 %v789_v20, %v411_v54 }
  0xba   : > { %480 = vst [vmem:[%s794_s5 + $0x98] sm:$0xff] %v429_v51 }
  0xbb   : > { %488 = vst [vmem:[%s794_s5 + $0xd8] sm:$0xff] %v449_v52 }
  0xbc   : > { %465 = vst [vmem:[%s794_s5 + $0x20] sm:$0xff] %v392_v55 }
  0xbd   : > { %473 = vst [vmem:[%s794_s5 + $0x60] sm:$0xff] %v412_v56 }
  0xbf   : > { %v431_v57 = vpop.f32.mrf.mxu2  ;;  %v451_v58 = vpop.f32.mrf.mxu3 }
  0xc0   : > { %v432_v59 = vadd.f32 %v789_v20, %v431_v57  ;;  %v452_v60 = vadd.f32 %v789_v20, %v451_v58  ;;  %v393_v61 = vpop.f32.mrf.mxu0  ;;  %v413_v62 = vpop.f32.mrf.mxu1 }
  0xc1   : > { %v394_v63 = vadd.f32 %v789_v20, %v393_v61  ;;  %v414_v0 = vadd.f32 %v789_v20, %v413_v62 }
  0xc2   : > { %481 = vst [vmem:[%s794_s5 + $0xa0] sm:$0xff] %v432_v59 }
  0xc3   : > { %489 = vst [vmem:[%s794_s5 + $0xe0] sm:$0xff] %v452_v60 }
  0xc4   : > { %466 = vst [vmem:[%s794_s5 + $0x28] sm:$0xff] %v394_v63 }
  0xc5   : > { %474 = vst [vmem:[%s794_s5 + $0x68] sm:$0xff] %v414_v0 }
  0xc7   : > { %v433_v1 = vpop.f32.mrf.mxu2  ;;  %v453_v2 = vpop.f32.mrf.mxu3 }
  0xc8   : > { %v434_v3 = vadd.f32 %v789_v20, %v433_v1  ;;  %v454_v4 = vadd.f32 %v789_v20, %v453_v2  ;;  %v396_v5 = vpop.f32.mrf.mxu0  ;;  %v416_v6 = vpop.f32.mrf.mxu1 }
  0xc9   : > { %v397_v7 = vadd.f32 %v789_v20, %v396_v5  ;;  %v417_v8 = vadd.f32 %v789_v20, %v416_v6 }
  0xca   : > { %482 = vst [vmem:[%s794_s5 + $0xa8] sm:$0xff] %v434_v3 }
  0xcb   : > { %490 = vst [vmem:[%s794_s5 + $0xe8] sm:$0xff] %v454_v4 }
  0xcc   : > { %467 = vst [vmem:[%s794_s5 + $0x30] sm:$0xff] %v397_v7 }
  0xcd   : > { %475 = vst [vmem:[%s794_s5 + $0x70] sm:$0xff] %v417_v8 }
  0xcf   : > { %v436_v9 = vpop.f32.mrf.mxu2  ;;  %v456_v10 = vpop.f32.mrf.mxu3 }
  0xd0   : > { %v437_v11 = vadd.f32 %v789_v20, %v436_v9  ;;  %v457_v12 = vadd.f32 %v789_v20, %v456_v10  ;;  %v398_v13 = vpop.f32.mrf.mxu0  ;;  %v418_v14 = vpop.f32.mrf.mxu1 }
  0xd1   : > { %v399_v15 = vadd.f32 %v789_v20, %v398_v13  ;;  %v419_v16 = vadd.f32 %v789_v20, %v418_v14 }
  0xd2   : > { %483 = vst [vmem:[%s794_s5 + $0xb0] sm:$0xff] %v437_v11 }
  0xd3   : > { %491 = vst [vmem:[%s794_s5 + $0xf0] sm:$0xff] %v457_v12 }
  0xd4   : > { %468 = vst [vmem:[%s794_s5 + $0x38] sm:$0xff] %v399_v15 }
  0xd5   : > { %476 = vst [vmem:[%s794_s5 + $0x78] sm:$0xff] %v419_v16 }
  0xd7   : > { %v438_v17 = vpop.f32.mrf.mxu2  ;;  %v458_v18 = vpop.f32.mrf.mxu3 }
  0xd8   : > { %v439_v19 = vadd.f32 %v789_v20, %v438_v17  ;;  %v459_v21 = vadd.f32 %v789_v20, %v458_v18 }
  0xda   : > { %484 = vst [vmem:[%s794_s5 + $0xb8] sm:$0xff] %v439_v19 }
  0xdb   : > { %492 = vst [vmem:[%s794_s5 + $0xf8] sm:$0xff] %v459_v21 }
  0xdc PF: > { %s13_s12 = sadd.s32 1, %s703_s12  }
  0xdd   : > { %p10_p4 = scmp.ge.s32.totalorder %s13_s12, 4  }
  0xdf   :  { %12 = sbr.rel (!%p10_p4) target bundleno = 1 (0x1), region = 62 }

// kernel: upsample_layer_batch_forward.5
= control target key start
LH: loop header
LB: loop body
LE: loop exit
PB: predicated region body
PF: predicated region fallthrough
CT: control target
= control target key end

     0   :  { %8 = vsyncpa [#allocation3], 0  ;;  %s526_s0 = inlined_call_operand.vmem [shape: f32[128,128], index: 0, kind: input, shape index: {}]   ;;  %s527_s1 = inlined_call_operand.vmem [shape: f32[1,128], index: 1, kind: input, shape index: {}]   ;;  %s528_s2 = inlined_call_operand.vmem [shape: f32[1,128], index: 2, kind: input, shape index: {}]   ;;  %s529_s3 = inlined_call_operand.hbm [shape: f32[128,128], index: 3, kind: output, shape index: {}]  }
   0x1   :  { %10 = vsyncpa [#allocation3 + $0x1], 0  ;;  %s432_s12 = smov 0   ;;  %s434_s13 = smov 0  }
   0x2   :  { %s436_s14 = smov 0   ;;  %s438_s15 = smov 0  }
   0x3 LB: > { %s453_s16 = sadd.s32 4294967295, %s408_s15   ;;  %s290_s17 = sadd.s32 4294967294, %s408_s15   ;;  %s408_s15 = sphi %s438_s15, %s535_s15   ;;  %s404_s14 = sphi %s436_s14, %s534_s14   ;;  %s400_s13 = sphi %s434_s13, %s533_s13   ;;  %s396_s12 = sphi %s432_s12, %s532_s12  }
   0x4   : > { %s457_s18 = sadd.s32 1, %s408_s15   ;;  %s91_s19 = sadd.s32 1, %s404_s14 }
   0x5   : > { %s88_s20 = ssub.s32 %s408_s15, %s457_s18  ;;  %p101_p0 = scmp.ne.s32.totalorder %s404_s14, %s400_s13 }
   0x6   : > { %p89_p1 = scmp.eq.s32.totalorder %s88_s20, 0  ;;  %p102_p2 = scmp.eq.s32.totalorder %s453_s16, 1 }
   0x7   : > { %p107_p3 = scmp.ne.s32.totalorder %s400_s13, %s396_s12  ;;  %p108_p4 = scmp.eq.s32.totalorder %s290_s17, 1 }
   0x8   : > { %s468_s21 = scalar_select %p89_p1, %s404_s14, %s91_s19  }
   0x9   : > { %p470_p5 = por %p102_p2, %p101_p0  ;;  %p474_p6 = por %p108_p4, %p107_p3 }
   0xa   : > { %p293_p7 = scmp.ge.s32.totalorder %s408_s15, 1  ;;  %p141_p8 = scmp.lt.s32.totalorder %s408_s15, 3 }
   0xc   : > { %p142_p9 = pnand %p293_p7, %p141_p8 }
   0xd   : > { %s295_s24 = sshll.u32 (!%p142_p9), %s453_s16, 3  ;;  %s162_s25 = sand.u32 (!%p142_p9), 1, %s400_s13  }
   0xe   : > { %145 = sbr.rel (%p142_p9) target bundleno = 38 (0x26), region = 32  ;;  %p166_p10 = scmp.lt.s32.totalorder (!%p142_p9), %s295_s24, 15 }
   0xf   : > { %s294_s29 = sshll.u32 (!%p142_p9), %s162_s25, 6  ;;  %s302_s8 = sshll.u32 (!%p142_p9), %s453_s16, 6 }
  0x10   : > { %s224_s11 = scalar_lea.hbm (!%p142_p9), %s529_s3, %s302_s8  ;;  %s164_s17 = scalar_lea.vmem (!%p142_p9), [#allocation2], %s294_s29 }
  0x11   : > { %s225_s16 = sshll.u32 (!%p142_p9), %s164_s17, 4  ;;  %s227_s19 = sshll.u32 (!%p142_p9), %s224_s11, 4  ;;  %s226_s16 = int_to_ptr.vmem [resolvable:$true] %s225_s16  ;;  %s228_s19 = int_to_ptr.hbm [resolvable:$true] %s227_s19 }
  0x12   : > { %s213_s20 = scalar_lea.sflag (!%p142_p9), [#allocation3], %s162_s25  ;;  %s366_s29 = scalar_lea.hbm (!%p142_p9), %s529_s3, 128 }
  0x13   : > { %s537_s24 = smov (!%p166_p10, %s295_s24), 15  ;;  %v344_v0 = vld [vmem:[%s527_s1] ss:$0 sm:$0xff] }
  0x14   : > { %s296_s28 = sshll.u32 %s537_s24, 3  ;;  %v345_v1 = vld [vmem:[%s528_s2] ss:$0 sm:$0xff]  ;;  %s360_s24 = sshra.s32 %s228_s19, 4  ;;  %s361_s24 = int_to_ptr.hbm [resolvable:$true] %s360_s24 }
  0x15   : > { %s169_s5 = scalar_lea.vmem %s526_s0, %s296_s28  ;;  %s362_s26 = scalar_lea.hbm %s361_s24, 64 }
  0x16   : > { %v172_v2 = vld [vmem:[%s169_s5] sm:$0xff]  ;;  %v173_v3 = vld [vmem:[%s169_s5 + $0x8] sm:$0xff]  ;;  %v174_v4 = vld [vmem:[%s169_s5 + $0x10] sm:$0xff]  ;;  %p363_p11 = scmp.ne.s32.totalorder %s361_s24, %s362_s26  ;;  %p367_p0 = scmp.lt.s32.totalorder %s361_s24, %s529_s3 }
  0x17   : > { %v184_v5 = vmul.f32 %v344_v0, %v172_v2  ;;  %v185_v6 = vmul.f32 %v344_v0, %v173_v3  ;;  %v186_v7 = vmul.f32 %v344_v0, %v174_v4  ;;  %v175_v8 = vld [vmem:[%s169_s5 + $0x18] sm:$0xff]  ;;  %v176_v9 = vld [vmem:[%s169_s5 + $0x20] sm:$0xff]  ;;  %v177_v10 = vld [vmem:[%s169_s5 + $0x28] sm:$0xff]  ;;  %p368_p1 = scmp.lt.s32.totalorder %s366_s29, %s362_s26 }
  0x18   : > { %v187_v11 = vmul.f32 %v344_v0, %v175_v8  ;;  %v188_v12 = vmul.f32 %v344_v0, %v176_v9  ;;  %v189_v13 = vmul.f32 %v344_v0, %v177_v10  ;;  %v178_v14 = vld [vmem:[%s169_s5 + $0x30] sm:$0xff]  ;;  %v179_v15 = vld [vmem:[%s169_s5 + $0x38] sm:$0xff]  ;;  %p364_p12 = pnand %p363_p11, %p470_p5 }
  0x19   : > { %v196_v16 = vadd.f32 %v345_v1, %v184_v5  ;;  %v197_v17 = vadd.f32 %v345_v1, %v185_v6  ;;  %v198_v18 = vadd.f32 %v345_v1, %v186_v7  ;;  %v190_v19 = vmul.f32 %v344_v0, %v178_v14  ;;  %p369_p2 = por %p368_p1, %p367_p0 }
  0x1a   : > { %v199_v20 = vadd.f32 %v345_v1, %v187_v11  ;;  %v191_v21 = vmul.f32 %v344_v0, %v179_v15  ;;  %v200_v22 = vadd.f32 %v345_v1, %v188_v12  ;;  %v201_v23 = vadd.f32 %v345_v1, %v189_v13  ;;  %p365_p13 = pneg %p364_p12 }
  0x1b   : > { %204 = vst [vmem:[%s164_s17] sm:$0xff] %v196_v16  ;;  %v202_v24 = vadd.f32 %v345_v1, %v190_v19 }
  0x1c   : > { %205 = vst [vmem:[%s164_s17 + $0x8] sm:$0xff] %v197_v17  ;;  %v203_v25 = vadd.f32 %v345_v1, %v191_v21  ;;  %p370_p3 = pnand %p369_p2, %p365_p13 }
  0x1d   : > { %206 = vst [vmem:[%s164_s17 + $0x10] sm:$0xff] %v198_v18 }
  0x1e   : > { %207 = vst [vmem:[%s164_s17 + $0x18] sm:$0xff] %v199_v20 }
  0x1f   : > { %208 = vst [vmem:[%s164_s17 + $0x20] sm:$0xff] %v200_v22 }
  0x20   : > { %209 = vst [vmem:[%s164_s17 + $0x28] sm:$0xff] %v201_v23 }
  0x21   : > { %210 = vst [vmem:[%s164_s17 + $0x30] sm:$0xff] %v202_v24 }
  0x22   : > { %211 = vst [vmem:[%s164_s17 + $0x38] sm:$0xff] %v203_v25 }
  0x23   : > { %373 = shalt.err (!%p370_p3)
}
  0x24   : > { %s410_s25 = smov 128   ;;  %s411_s5 = smov 8  }
  0x25   : > { %303 = dma.vmem_to_hbm [thread:$0]  (%p470_p5), %s226_s16, 1024, %s228_s19, %s213_s20, %s410_s25, %s410_s25, %s411_s5  }
  0x26 PF: > { %p309_p4 = scmp.ge.s32.totalorder %s408_s15, 2  ;;  %s242_s6 = sand.u32 1, %s396_s12  }
  0x27   : > { %s243_s7 = scalar_lea.sflag [#allocation3], %s242_s6 }
  0x28   : > { %p306_p7 = pnand %p309_p4, %p474_p6 }
  0x2a   : > { %p307_p8 = pneg %p306_p7 }
  0x2c   : > { %391 = dma.done.wait (%p307_p8), %s243_s7, 1024  }
  0x2d   : > { %393 = vsyncadd (%p307_p8), %s243_s7, 4294966272  ;;  %p13_p9 = scmp.ge.s32.totalorder %s457_s18, 4   ;;  %s532_s12 = smov %s400_s13 }
  0x2e   : > { %s533_s13 = smov %s404_s14  ;;  %s534_s14 = smov %s468_s21 }
  0x2f   : > { %s535_s15 = smov %s457_s18  ;;  %15 = sbr.rel (!%p13_p9) target bundleno = 3 (0x3), region = 67 }
  0x34   :  { %249 = vsyncpa [#allocation3], 1 }
  0x35   :  { %251 = vsyncpa [#allocation3 + $0x1], 1 }

// kernel: upsample_layer_batch_forward.4
= control target key start
LH: loop header
LB: loop body
LE: loop exit
PB: predicated region body
PF: predicated region fallthrough
CT: control target
= control target key end

     0   :  { %s8052_s0 = inlined_call_operand.<no memory space> [shape: s32[1], index: 0, kind: input, shape index: {}]   ;;  %s8053_s1 = inlined_call_operand.vmem [shape: bf16[12,128,64], index: 1, kind: input, shape index: {}]   ;;  %s8054_s2 = inlined_call_operand.vmem [shape: f32[12,128,128], index: 2, kind: input, shape index: {}]   ;;  %s8055_s3 = inlined_call_operand.vmem [shape: bf16[64,128], index: 3, kind: input, shape index: {}]   ;;  %s8056_s4 = inlined_call_operand.vmem [shape: f32[1,128], index: 4, kind: input, shape index: {}]   ;;  %s8057_s5 = inlined_call_operand.vmem [shape: bf16[128,128], index: 5, kind: input, shape index: {}]   ;;  %s8058_s6 = inlined_call_operand.vmem [shape: f32[1,128], index: 6, kind: input, shape index: {}]   ;;  %s8059_s7 = inlined_call_operand.vmem [shape: bf16[256,128], index: 7, kind: input, shape index: {}]   ;;  %s8060_s8 = inlined_call_operand.vmem [shape: f32[1,128], index: 8, kind: input, shape index: {}]   ;;  %s8061_s9 = inlined_call_operand.vmem [shape: f32[128,128], index: 9, kind: output, shape index: {0}]   ;;  %s8062_s10 = inlined_call_operand.vmem [shape: f32[2,1,128], index: 10, kind: output, shape index: {1}]   ;;  %s8063_s11 = inlined_call_operand.vmem [shape: f32[2,1,128], index: 11, kind: output, shape index: {2}]  }
   0x1   :  { %17 = sst [smem:[#allocation3]] %s8052_s0 }
   0x2   :  { %s5258_s19 = smov 0   ;;  %s5260_s20 = smov 0  }
   0x3   :  { %s5262_s21 = smov 0  }
   0x4 LB: > { %s5274_s0 = sadd.s32 4294967295, %s5192_s21   ;;  %s5277_s22 = sadd.s32 1, %s5192_s21   ;;  %s5192_s21 = sphi %s5262_s21, %s8650_s21   ;;  %s5188_s20 = sphi %s5260_s20, %s8649_s20   ;;  %s5184_s19 = sphi %s5258_s19, %s8648_s19  }
   0x5   : > { %s27_s23 = ssub.s32 %s5192_s21, %s5277_s22  ;;  %s30_s24 = sadd.s32 1, %s5188_s20 }
   0x6   : > { %p28_p0 = scmp.eq.s32.totalorder %s27_s23, 0  ;;  %p37_p1 = scmp.ne.s32.totalorder %s5188_s20, %s5184_s19 }
   0x7   : > { %p38_p2 = scmp.eq.s32.totalorder %s5192_s21, 0  ;;  %p4474_p4 = scmp.ge.s32.totalorder %s5192_s21, 2 }
   0x8   : > { %s5286_s25 = scalar_select %p28_p0, %s5188_s20, %s30_s24  }
   0x9   : > { %p5288_p3 = por %p38_p2, %p37_p1  ;;  %311 = sbr.rel (%p4474_p4) target bundleno = 166 (0xa6), region = 40 }
   0xe   : > { %314 = sbr.rel (!%p5288_p3) target bundleno = 66 (0x42), region = 44  ;;  %s316_s27 = sand.u32 (%p5288_p3), 1, %s5188_s20  }
   0xf   : > { %s4845_s28 = sshll.u32 (%p5288_p3), %s5192_s21, 5  ;;  %s4923_s29 = smul.u32 (%p5288_p3), 384, %s316_s27 }
  0x10   : > { %s5300_s13 = scalar_lea.vmem (%p5288_p3), %s8053_s1, %s4845_s28 }
  0x11   : > { %v338_v0 = vld [vmem:[%s5300_s13] sm:$0xff] (%p5288_p3)   ;;  %v342_v1 = vld [vmem:[%s5300_s13 + $0x8] sm:$0xff] (%p5288_p3)   ;;  %v346_v2 = vld [vmem:[%s5300_s13 + $0x10] sm:$0xff] (%p5288_p3)   ;;  %s5305_s14 = scalar_lea.vmem (%p5288_p3), [#allocation4], %s4923_s29 }
  0x12   : > { %339 = vst [vmem:[%s5305_s14] sm:$0xff] (%p5288_p3), %v338_v0   ;;  %v350_v3 = vld [vmem:[%s5300_s13 + $0x18] sm:$0xff] (%p5288_p3)   ;;  %v354_v4 = vld [vmem:[%s5300_s13 + $0x40] sm:$0xff] (%p5288_p3)   ;;  %v358_v5 = vld [vmem:[%s5300_s13 + $0x48] sm:$0xff] (%p5288_p3)  }
  0x13   : > { %343 = vst [vmem:[%s5305_s14 + $0x8] sm:$0xff] %v342_v1   ;;  %v362_v6 = vld [vmem:[%s5300_s13 + $0x50] sm:$0xff]   ;;  %v366_v7 = vld [vmem:[%s5300_s13 + $0x58] sm:$0xff]   ;;  %v370_v8 = vld [vmem:[%s5300_s13 + $0x80] sm:$0xff]  }
  0x14   : > { %347 = vst [vmem:[%s5305_s14 + $0x10] sm:$0xff] %v346_v2   ;;  %v374_v9 = vld [vmem:[%s5300_s13 + $0x88] sm:$0xff]   ;;  %v378_v10 = vld [vmem:[%s5300_s13 + $0x90] sm:$0xff]   ;;  %v382_v11 = vld [vmem:[%s5300_s13 + $0x98] sm:$0xff]  }
  0x15   : > { %351 = vst [vmem:[%s5305_s14 + $0x18] sm:$0xff] %v350_v3   ;;  %v386_v12 = vld [vmem:[%s5300_s13 + $0xc0] sm:$0xff]   ;;  %v390_v13 = vld [vmem:[%s5300_s13 + $0xc8] sm:$0xff]   ;;  %v394_v14 = vld [vmem:[%s5300_s13 + $0xd0] sm:$0xff]  }
  0x16   : > { %355 = vst [vmem:[%s5305_s14 + $0x20] sm:$0xff] %v354_v4   ;;  %v398_v15 = vld [vmem:[%s5300_s13 + $0xd8] sm:$0xff]   ;;  %v402_v16 = vld [vmem:[%s5300_s13 + $0x100] sm:$0xff]   ;;  %v406_v17 = vld [vmem:[%s5300_s13 + $0x108] sm:$0xff]  }
  0x17   : > { %359 = vst [vmem:[%s5305_s14 + $0x28] sm:$0xff] %v358_v5   ;;  %v410_v18 = vld [vmem:[%s5300_s13 + $0x110] sm:$0xff]   ;;  %v414_v19 = vld [vmem:[%s5300_s13 + $0x118] sm:$0xff]   ;;  %v418_v20 = vld [vmem:[%s5300_s13 + $0x140] sm:$0xff]  }
  0x18   : > { %363 = vst [vmem:[%s5305_s14 + $0x30] sm:$0xff] %v362_v6   ;;  %v422_v21 = vld [vmem:[%s5300_s13 + $0x148] sm:$0xff]   ;;  %v426_v22 = vld [vmem:[%s5300_s13 + $0x150] sm:$0xff]   ;;  %v430_v23 = vld [vmem:[%s5300_s13 + $0x158] sm:$0xff]  }
  0x19   : > { %367 = vst [vmem:[%s5305_s14 + $0x38] sm:$0xff] %v366_v7   ;;  %v434_v24 = vld [vmem:[%s5300_s13 + $0x180] sm:$0xff]   ;;  %v438_v25 = vld [vmem:[%s5300_s13 + $0x188] sm:$0xff]   ;;  %v442_v26 = vld [vmem:[%s5300_s13 + $0x190] sm:$0xff]  }
  0x1a   : > { %371 = vst [vmem:[%s5305_s14 + $0x40] sm:$0xff] %v370_v8   ;;  %v446_v27 = vld [vmem:[%s5300_s13 + $0x198] sm:$0xff]   ;;  %v450_v28 = vld [vmem:[%s5300_s13 + $0x1c0] sm:$0xff]   ;;  %v454_v29 = vld [vmem:[%s5300_s13 + $0x1c8] sm:$0xff]  }
  0x1b   : > { %375 = vst [vmem:[%s5305_s14 + $0x48] sm:$0xff] %v374_v9   ;;  %v458_v30 = vld [vmem:[%s5300_s13 + $0x1d0] sm:$0xff]   ;;  %v462_v31 = vld [vmem:[%s5300_s13 + $0x1d8] sm:$0xff]   ;;  %v466_v32 = vld [vmem:[%s5300_s13 + $0x200] sm:$0xff]  }
  0x1c   : > { %379 = vst [vmem:[%s5305_s14 + $0x50] sm:$0xff] %v378_v10   ;;  %v470_v33 = vld [vmem:[%s5300_s13 + $0x208] sm:$0xff]   ;;  %v474_v34 = vld [vmem:[%s5300_s13 + $0x210] sm:$0xff]   ;;  %v478_v35 = vld [vmem:[%s5300_s13 + $0x218] sm:$0xff]  }
  0x1d   : > { %383 = vst [vmem:[%s5305_s14 + $0x58] sm:$0xff] %v382_v11   ;;  %v482_v36 = vld [vmem:[%s5300_s13 + $0x240] sm:$0xff]   ;;  %v486_v37 = vld [vmem:[%s5300_s13 + $0x248] sm:$0xff]   ;;  %v490_v38 = vld [vmem:[%s5300_s13 + $0x250] sm:$0xff]  }
  0x1e   : > { %387 = vst [vmem:[%s5305_s14 + $0x60] sm:$0xff] %v386_v12   ;;  %v494_v39 = vld [vmem:[%s5300_s13 + $0x258] sm:$0xff]   ;;  %v498_v40 = vld [vmem:[%s5300_s13 + $0x280] sm:$0xff]   ;;  %v502_v41 = vld [vmem:[%s5300_s13 + $0x288] sm:$0xff]  }
  0x1f   : > { %391 = vst [vmem:[%s5305_s14 + $0x68] sm:$0xff] %v390_v13   ;;  %v506_v42 = vld [vmem:[%s5300_s13 + $0x290] sm:$0xff]   ;;  %v510_v43 = vld [vmem:[%s5300_s13 + $0x298] sm:$0xff]   ;;  %v514_v44 = vld [vmem:[%s5300_s13 + $0x2c0] sm:$0xff]  }
  0x20   : > { %395 = vst [vmem:[%s5305_s14 + $0x70] sm:$0xff] %v394_v14   ;;  %v518_v45 = vld [vmem:[%s5300_s13 + $0x2c8] sm:$0xff]   ;;  %v522_v46 = vld [vmem:[%s5300_s13 + $0x2d0] sm:$0xff]   ;;  %v526_v47 = vld [vmem:[%s5300_s13 + $0x2d8] sm:$0xff]  }
  0x21   : > { %399 = vst [vmem:[%s5305_s14 + $0x78] sm:$0xff] %v398_v15  }
  0x22   : > { %403 = vst [vmem:[%s5305_s14 + $0x80] sm:$0xff] %v402_v16  }
  0x23   : > { %407 = vst [vmem:[%s5305_s14 + $0x88] sm:$0xff] %v406_v17  }
  0x24   : > { %411 = vst [vmem:[%s5305_s14 + $0x90] sm:$0xff] %v410_v18  }
  0x25   : > { %415 = vst [vmem:[%s5305_s14 + $0x98] sm:$0xff] %v414_v19  }
  0x26   : > { %419 = vst [vmem:[%s5305_s14 + $0xa0] sm:$0xff] %v418_v20  }
  0x27   : > { %423 = vst [vmem:[%s5305_s14 + $0xa8] sm:$0xff] %v422_v21  }
  0x28   : > { %427 = vst [vmem:[%s5305_s14 + $0xb0] sm:$0xff] %v426_v22  }
  0x29   : > { %431 = vst [vmem:[%s5305_s14 + $0xb8] sm:$0xff] %v430_v23  }
  0x2a   : > { %435 = vst [vmem:[%s5305_s14 + $0xc0] sm:$0xff] %v434_v24  }
  0x2b   : > { %439 = vst [vmem:[%s5305_s14 + $0xc8] sm:$0xff] %v438_v25  }
  0x2c   : > { %443 = vst [vmem:[%s5305_s14 + $0xd0] sm:$0xff] %v442_v26  }
  0x2d   : > { %447 = vst [vmem:[%s5305_s14 + $0xd8] sm:$0xff] %v446_v27  }
  0x2e   : > { %451 = vst [vmem:[%s5305_s14 + $0xe0] sm:$0xff] %v450_v28  }
  0x2f   : > { %455 = vst [vmem:[%s5305_s14 + $0xe8] sm:$0xff] %v454_v29  }
  0x30   : > { %459 = vst [vmem:[%s5305_s14 + $0xf0] sm:$0xff] %v458_v30  }
  0x31   : > { %463 = vst [vmem:[%s5305_s14 + $0xf8] sm:$0xff] %v462_v31  }
  0x32   : > { %467 = vst [vmem:[%s5305_s14 + $0x100] sm:$0xff] %v466_v32  }
  0x33   : > { %471 = vst [vmem:[%s5305_s14 + $0x108] sm:$0xff] %v470_v33  }
  0x34   : > { %475 = vst [vmem:[%s5305_s14 + $0x110] sm:$0xff] %v474_v34  }
  0x35   : > { %479 = vst [vmem:[%s5305_s14 + $0x118] sm:$0xff] %v478_v35  }
  0x36   : > { %483 = vst [vmem:[%s5305_s14 + $0x120] sm:$0xff] %v482_v36  }
  0x37   : > { %487 = vst [vmem:[%s5305_s14 + $0x128] sm:$0xff] %v486_v37  }
  0x38   : > { %491 = vst [vmem:[%s5305_s14 + $0x130] sm:$0xff] %v490_v38  }
  0x39   : > { %495 = vst [vmem:[%s5305_s14 + $0x138] sm:$0xff] %v494_v39  }
  0x3a   : > { %499 = vst [vmem:[%s5305_s14 + $0x140] sm:$0xff] %v498_v40  }
  0x3b   : > { %503 = vst [vmem:[%s5305_s14 + $0x148] sm:$0xff] %v502_v41  }
  0x3c   : > { %507 = vst [vmem:[%s5305_s14 + $0x150] sm:$0xff] %v506_v42  }
  0x3d   : > { %511 = vst [vmem:[%s5305_s14 + $0x158] sm:$0xff] %v510_v43  }
  0x3e   : > { %515 = vst [vmem:[%s5305_s14 + $0x160] sm:$0xff] %v514_v44  }
  0x3f   : > { %519 = vst [vmem:[%s5305_s14 + $0x168] sm:$0xff] %v518_v45  }
  0x40   : > { %523 = vst [vmem:[%s5305_s14 + $0x170] sm:$0xff] %v522_v46  }
  0x41   : > { %527 = vst [vmem:[%s5305_s14 + $0x178] sm:$0xff] %v526_v47  }
  0x42 PF: > { %745 = sbr.rel (!%p5288_p3) target bundleno = 166 (0xa6), region = 85  ;;  %s747_s15 = sand.u32 (%p5288_p3), 1, %s5188_s20  }
  0x43   : > { %s4846_s16 = sshll.u32 (%p5288_p3), %s5192_s21, 6  ;;  %s4924_s17 = smul.u32 (%p5288_p3), 768, %s747_s15 }
  0x44   : > { %s5407_s24 = scalar_lea.vmem (%p5288_p3), %s8054_s2, %s4846_s16 }
  0x45   : > { %v971_v48 = vld [vmem:[%s5407_s24] sm:$0xff] (%p5288_p3)  ;;  %v973_v49 = vld [vmem:[%s5407_s24 + $0x8] sm:$0xff] (%p5288_p3)  ;;  %v975_v50 = vld [vmem:[%s5407_s24 + $0x10] sm:$0xff] (%p5288_p3)  ;;  %s5412_s26 = scalar_lea.vmem (%p5288_p3), [#allocation5], %s4924_s17 }
  0x46   : > { %972 = vst [vmem:[%s5412_s26] sm:$0xff] (%p5288_p3), %v971_v48  ;;  %v977_v51 = vld [vmem:[%s5407_s24 + $0x18] sm:$0xff] (%p5288_p3)  ;;  %v979_v52 = vld [vmem:[%s5407_s24 + $0x20] sm:$0xff] (%p5288_p3)  ;;  %v981_v53 = vld [vmem:[%s5407_s24 + $0x28] sm:$0xff] (%p5288_p3) }
  0x47   : > { %974 = vst [vmem:[%s5412_s26 + $0x8] sm:$0xff] %v973_v49  ;;  %v983_v54 = vld [vmem:[%s5407_s24 + $0x30] sm:$0xff]  ;;  %v985_v55 = vld [vmem:[%s5407_s24 + $0x38] sm:$0xff]  ;;  %v987_v56 = vld [vmem:[%s5407_s24 + $0x80] sm:$0xff] }
  0x48   : > { %976 = vst [vmem:[%s5412_s26 + $0x10] sm:$0xff] %v975_v50  ;;  %v989_v57 = vld [vmem:[%s5407_s24 + $0x88] sm:$0xff]  ;;  %v991_v58 = vld [vmem:[%s5407_s24 + $0x90] sm:$0xff]  ;;  %v993_v59 = vld [vmem:[%s5407_s24 + $0x98] sm:$0xff] }
  0x49   : > { %978 = vst [vmem:[%s5412_s26 + $0x18] sm:$0xff] %v977_v51  ;;  %v995_v60 = vld [vmem:[%s5407_s24 + $0xa0] sm:$0xff]  ;;  %v997_v61 = vld [vmem:[%s5407_s24 + $0xa8] sm:$0xff]  ;;  %v999_v62 = vld [vmem:[%s5407_s24 + $0xb0] sm:$0xff] }
  0x4a   : > { %980 = vst [vmem:[%s5412_s26 + $0x20] sm:$0xff] %v979_v52  ;;  %v1001_v63 = vld [vmem:[%s5407_s24 + $0xb8] sm:$0xff]  ;;  %v1003_v0 = vld [vmem:[%s5407_s24 + $0x100] sm:$0xff]  ;;  %v1005_v1 = vld [vmem:[%s5407_s24 + $0x108] sm:$0xff] }
  0x4b   : > { %982 = vst [vmem:[%s5412_s26 + $0x28] sm:$0xff] %v981_v53  ;;  %v1007_v2 = vld [vmem:[%s5407_s24 + $0x110] sm:$0xff]  ;;  %v1009_v3 = vld [vmem:[%s5407_s24 + $0x118] sm:$0xff]  ;;  %v1011_v4 = vld [vmem:[%s5407_s24 + $0x120] sm:$0xff] }
  0x4c   : > { %984 = vst [vmem:[%s5412_s26 + $0x30] sm:$0xff] %v983_v54  ;;  %v1013_v5 = vld [vmem:[%s5407_s24 + $0x128] sm:$0xff]  ;;  %v1015_v6 = vld [vmem:[%s5407_s24 + $0x130] sm:$0xff]  ;;  %v1017_v7 = vld [vmem:[%s5407_s24 + $0x138] sm:$0xff] }
  0x4d   : > { %986 = vst [vmem:[%s5412_s26 + $0x38] sm:$0xff] %v985_v55  ;;  %v1019_v8 = vld [vmem:[%s5407_s24 + $0x180] sm:$0xff]  ;;  %v1021_v9 = vld [vmem:[%s5407_s24 + $0x188] sm:$0xff]  ;;  %v1023_v10 = vld [vmem:[%s5407_s24 + $0x190] sm:$0xff] }
  0x4e   : > { %988 = vst [vmem:[%s5412_s26 + $0x40] sm:$0xff] %v987_v56  ;;  %v1025_v11 = vld [vmem:[%s5407_s24 + $0x198] sm:$0xff]  ;;  %v1027_v12 = vld [vmem:[%s5407_s24 + $0x1a0] sm:$0xff]  ;;  %v1029_v13 = vld [vmem:[%s5407_s24 + $0x1a8] sm:$0xff] }
  0x4f   : > { %990 = vst [vmem:[%s5412_s26 + $0x48] sm:$0xff] %v989_v57  ;;  %v1031_v14 = vld [vmem:[%s5407_s24 + $0x1b0] sm:$0xff]  ;;  %v1033_v15 = vld [vmem:[%s5407_s24 + $0x1b8] sm:$0xff]  ;;  %v1035_v16 = vld [vmem:[%s5407_s24 + $0x200] sm:$0xff] }
  0x50   : > { %992 = vst [vmem:[%s5412_s26 + $0x50] sm:$0xff] %v991_v58  ;;  %v1037_v17 = vld [vmem:[%s5407_s24 + $0x208] sm:$0xff]  ;;  %v1039_v18 = vld [vmem:[%s5407_s24 + $0x210] sm:$0xff]  ;;  %v1041_v19 = vld [vmem:[%s5407_s24 + $0x218] sm:$0xff] }
  0x51   : > { %994 = vst [vmem:[%s5412_s26 + $0x58] sm:$0xff] %v993_v59  ;;  %v1043_v20 = vld [vmem:[%s5407_s24 + $0x220] sm:$0xff]  ;;  %v1045_v21 = vld [vmem:[%s5407_s24 + $0x228] sm:$0xff]  ;;  %v1047_v22 = vld [vmem:[%s5407_s24 + $0x230] sm:$0xff] }
  0x52   : > { %996 = vst [vmem:[%s5412_s26 + $0x60] sm:$0xff] %v995_v60  ;;  %v1049_v23 = vld [vmem:[%s5407_s24 + $0x238] sm:$0xff]  ;;  %v1051_v24 = vld [vmem:[%s5407_s24 + $0x280] sm:$0xff]  ;;  %v1053_v25 = vld [vmem:[%s5407_s24 + $0x288] sm:$0xff] }
  0x53   : > { %998 = vst [vmem:[%s5412_s26 + $0x68] sm:$0xff] %v997_v61  ;;  %v1055_v26 = vld [vmem:[%s5407_s24 + $0x290] sm:$0xff]  ;;  %v1057_v27 = vld [vmem:[%s5407_s24 + $0x298] sm:$0xff]  ;;  %v1059_v28 = vld [vmem:[%s5407_s24 + $0x2a0] sm:$0xff] }
  0x54   : > { %1000 = vst [vmem:[%s5412_s26 + $0x70] sm:$0xff] %v999_v62  ;;  %v1061_v29 = vld [vmem:[%s5407_s24 + $0x2a8] sm:$0xff]  ;;  %v1063_v30 = vld [vmem:[%s5407_s24 + $0x2b0] sm:$0xff]  ;;  %v1065_v31 = vld [vmem:[%s5407_s24 + $0x2b8] sm:$0xff] }
  0x55   : > { %1002 = vst [vmem:[%s5412_s26 + $0x78] sm:$0xff] %v1001_v63  ;;  %v1067_v32 = vld [vmem:[%s5407_s24 + $0x300] sm:$0xff]  ;;  %v1069_v33 = vld [vmem:[%s5407_s24 + $0x308] sm:$0xff]  ;;  %v1071_v34 = vld [vmem:[%s5407_s24 + $0x310] sm:$0xff] }
  0x56   : > { %1004 = vst [vmem:[%s5412_s26 + $0x80] sm:$0xff] %v1003_v0  ;;  %v1073_v35 = vld [vmem:[%s5407_s24 + $0x318] sm:$0xff]  ;;  %v1075_v36 = vld [vmem:[%s5407_s24 + $0x320] sm:$0xff]  ;;  %v1077_v37 = vld [vmem:[%s5407_s24 + $0x328] sm:$0xff] }
  0x57   : > { %1006 = vst [vmem:[%s5412_s26 + $0x88] sm:$0xff] %v1005_v1  ;;  %v1079_v38 = vld [vmem:[%s5407_s24 + $0x330] sm:$0xff]  ;;  %v1081_v39 = vld [vmem:[%s5407_s24 + $0x338] sm:$0xff]  ;;  %v1083_v40 = vld [vmem:[%s5407_s24 + $0x380] sm:$0xff] }
  0x58   : > { %1008 = vst [vmem:[%s5412_s26 + $0x90] sm:$0xff] %v1007_v2  ;;  %v1085_v41 = vld [vmem:[%s5407_s24 + $0x388] sm:$0xff]  ;;  %v1087_v42 = vld [vmem:[%s5407_s24 + $0x390] sm:$0xff]  ;;  %v1089_v43 = vld [vmem:[%s5407_s24 + $0x398] sm:$0xff] }
  0x59   : > { %1010 = vst [vmem:[%s5412_s26 + $0x98] sm:$0xff] %v1009_v3  ;;  %v1091_v44 = vld [vmem:[%s5407_s24 + $0x3a0] sm:$0xff]  ;;  %v1093_v45 = vld [vmem:[%s5407_s24 + $0x3a8] sm:$0xff]  ;;  %v1095_v46 = vld [vmem:[%s5407_s24 + $0x3b0] sm:$0xff] }
  0x5a   : > { %1012 = vst [vmem:[%s5412_s26 + $0xa0] sm:$0xff] %v1011_v4  ;;  %v1097_v47 = vld [vmem:[%s5407_s24 + $0x3b8] sm:$0xff]  ;;  %v1099_v48 = vld [vmem:[%s5407_s24 + $0x400] sm:$0xff]  ;;  %v1101_v49 = vld [vmem:[%s5407_s24 + $0x408] sm:$0xff] }
  0x5b   : > { %1014 = vst [vmem:[%s5412_s26 + $0xa8] sm:$0xff] %v1013_v5  ;;  %v1103_v50 = vld [vmem:[%s5407_s24 + $0x410] sm:$0xff]  ;;  %v1105_v51 = vld [vmem:[%s5407_s24 + $0x418] sm:$0xff]  ;;  %v1107_v52 = vld [vmem:[%s5407_s24 + $0x420] sm:$0xff] }
  0x5c   : > { %1016 = vst [vmem:[%s5412_s26 + $0xb0] sm:$0xff] %v1015_v6  ;;  %v1109_v53 = vld [vmem:[%s5407_s24 + $0x428] sm:$0xff]  ;;  %v1111_v54 = vld [vmem:[%s5407_s24 + $0x430] sm:$0xff]  ;;  %v1113_v55 = vld [vmem:[%s5407_s24 + $0x438] sm:$0xff] }
  0x5d   : > { %1018 = vst [vmem:[%s5412_s26 + $0xb8] sm:$0xff] %v1017_v7  ;;  %v1115_v56 = vld [vmem:[%s5407_s24 + $0x480] sm:$0xff]  ;;  %v1117_v57 = vld [vmem:[%s5407_s24 + $0x488] sm:$0xff]  ;;  %v1119_v58 = vld [vmem:[%s5407_s24 + $0x490] sm:$0xff] }
  0x5e   : > { %1020 = vst [vmem:[%s5412_s26 + $0xc0] sm:$0xff] %v1019_v8  ;;  %v1121_v59 = vld [vmem:[%s5407_s24 + $0x498] sm:$0xff]  ;;  %v1123_v60 = vld [vmem:[%s5407_s24 + $0x4a0] sm:$0xff]  ;;  %v1125_v61 = vld [vmem:[%s5407_s24 + $0x4a8] sm:$0xff] }
  0x5f   : > { %1022 = vst [vmem:[%s5412_s26 + $0xc8] sm:$0xff] %v1021_v9  ;;  %v1127_v62 = vld [vmem:[%s5407_s24 + $0x4b0] sm:$0xff]  ;;  %v1129_v63 = vld [vmem:[%s5407_s24 + $0x4b8] sm:$0xff]  ;;  %v1131_v0 = vld [vmem:[%s5407_s24 + $0x500] sm:$0xff] }
  0x60   : > { %1024 = vst [vmem:[%s5412_s26 + $0xd0] sm:$0xff] %v1023_v10  ;;  %v1133_v1 = vld [vmem:[%s5407_s24 + $0x508] sm:$0xff]  ;;  %v1135_v2 = vld [vmem:[%s5407_s24 + $0x510] sm:$0xff]  ;;  %v1137_v3 = vld [vmem:[%s5407_s24 + $0x518] sm:$0xff] }
  0x61   : > { %1026 = vst [vmem:[%s5412_s26 + $0xd8] sm:$0xff] %v1025_v11  ;;  %v1139_v4 = vld [vmem:[%s5407_s24 + $0x520] sm:$0xff]  ;;  %v1141_v5 = vld [vmem:[%s5407_s24 + $0x528] sm:$0xff]  ;;  %v1143_v6 = vld [vmem:[%s5407_s24 + $0x530] sm:$0xff] }
  0x62   : > { %1028 = vst [vmem:[%s5412_s26 + $0xe0] sm:$0xff] %v1027_v12  ;;  %v1145_v7 = vld [vmem:[%s5407_s24 + $0x538] sm:$0xff]  ;;  %v1147_v8 = vld [vmem:[%s5407_s24 + $0x580] sm:$0xff]  ;;  %v1149_v9 = vld [vmem:[%s5407_s24 + $0x588] sm:$0xff] }
  0x63   : > { %1030 = vst [vmem:[%s5412_s26 + $0xe8] sm:$0xff] %v1029_v13  ;;  %v1151_v10 = vld [vmem:[%s5407_s24 + $0x590] sm:$0xff]  ;;  %v1153_v11 = vld [vmem:[%s5407_s24 + $0x598] sm:$0xff]  ;;  %v1155_v12 = vld [vmem:[%s5407_s24 + $0x5a0] sm:$0xff] }
  0x64   : > { %1032 = vst [vmem:[%s5412_s26 + $0xf0] sm:$0xff] %v1031_v14  ;;  %v1157_v13 = vld [vmem:[%s5407_s24 + $0x5a8] sm:$0xff]  ;;  %v1159_v14 = vld [vmem:[%s5407_s24 + $0x5b0] sm:$0xff] }
  0x65   : > { %1034 = vst [vmem:[%s5412_s26 + $0xf8] sm:$0xff] %v1033_v15  ;;  %v1161_v15 = vld [vmem:[%s5407_s24 + $0x5b8] sm:$0xff] }
  0x66   : > { %1036 = vst [vmem:[%s5412_s26 + $0x100] sm:$0xff] %v1035_v16 }
  0x67   : > { %1038 = vst [vmem:[%s5412_s26 + $0x108] sm:$0xff] %v1037_v17 }
  0x68   : > { %1040 = vst [vmem:[%s5412_s26 + $0x110] sm:$0xff] %v1039_v18 }
  0x69   : > { %1042 = vst [vmem:[%s5412_s26 + $0x118] sm:$0xff] %v1041_v19 }
  0x6a   : > { %1044 = vst [vmem:[%s5412_s26 + $0x120] sm:$0xff] %v1043_v20 }
  0x6b   : > { %1046 = vst [vmem:[%s5412_s26 + $0x128] sm:$0xff] %v1045_v21 }
  0x6c   : > { %1048 = vst [vmem:[%s5412_s26 + $0x130] sm:$0xff] %v1047_v22 }
  0x6d   : > { %1050 = vst [vmem:[%s5412_s26 + $0x138] sm:$0xff] %v1049_v23 }
  0x6e   : > { %1052 = vst [vmem:[%s5412_s26 + $0x140] sm:$0xff] %v1051_v24 }
  0x6f   : > { %1054 = vst [vmem:[%s5412_s26 + $0x148] sm:$0xff] %v1053_v25 }
  0x70   : > { %1056 = vst [vmem:[%s5412_s26 + $0x150] sm:$0xff] %v1055_v26 }
  0x71   : > { %1058 = vst [vmem:[%s5412_s26 + $0x158] sm:$0xff] %v1057_v27 }
  0x72   : > { %1060 = vst [vmem:[%s5412_s26 + $0x160] sm:$0xff] %v1059_v28 }
  0x73   : > { %1062 = vst [vmem:[%s5412_s26 + $0x168] sm:$0xff] %v1061_v29 }
  0x74   : > { %1064 = vst [vmem:[%s5412_s26 + $0x170] sm:$0xff] %v1063_v30 }
  0x75   : > { %1066 = vst [vmem:[%s5412_s26 + $0x178] sm:$0xff] %v1065_v31 }
  0x76   : > { %1068 = vst [vmem:[%s5412_s26 + $0x180] sm:$0xff] %v1067_v32 }
  0x77   : > { %1070 = vst [vmem:[%s5412_s26 + $0x188] sm:$0xff] %v1069_v33 }
  0x78   : > { %1072 = vst [vmem:[%s5412_s26 + $0x190] sm:$0xff] %v1071_v34 }
  0x79   : > { %1074 = vst [vmem:[%s5412_s26 + $0x198] sm:$0xff] %v1073_v35 }
  0x7a   : > { %1076 = vst [vmem:[%s5412_s26 + $0x1a0] sm:$0xff] %v1075_v36 }
  0x7b   : > { %1078 = vst [vmem:[%s5412_s26 + $0x1a8] sm:$0xff] %v1077_v37 }
  0x7c   : > { %1080 = vst [vmem:[%s5412_s26 + $0x1b0] sm:$0xff] %v1079_v38 }
  0x7d   : > { %1082 = vst [vmem:[%s5412_s26 + $0x1b8] sm:$0xff] %v1081_v39 }
  0x7e   : > { %1084 = vst [vmem:[%s5412_s26 + $0x1c0] sm:$0xff] %v1083_v40 }
  0x7f   : > { %1086 = vst [vmem:[%s5412_s26 + $0x1c8] sm:$0xff] %v1085_v41 }
  0x80   : > { %1088 = vst [vmem:[%s5412_s26 + $0x1d0] sm:$0xff] %v1087_v42 }
  0x81   : > { %1090 = vst [vmem:[%s5412_s26 + $0x1d8] sm:$0xff] %v1089_v43 }
  0x82   : > { %1092 = vst [vmem:[%s5412_s26 + $0x1e0] sm:$0xff] %v1091_v44 }
  0x83   : > { %1094 = vst [vmem:[%s5412_s26 + $0x1e8] sm:$0xff] %v1093_v45 }
  0x84   : > { %1096 = vst [vmem:[%s5412_s26 + $0x1f0] sm:$0xff] %v1095_v46 }
  0x85   : > { %1098 = vst [vmem:[%s5412_s26 + $0x1f8] sm:$0xff] %v1097_v47 }
  0x86   : > { %1100 = vst [vmem:[%s5412_s26 + $0x200] sm:$0xff] %v1099_v48 }
  0x87   : > { %1102 = vst [vmem:[%s5412_s26 + $0x208] sm:$0xff] %v1101_v49 }
  0x88   : > { %1104 = vst [vmem:[%s5412_s26 + $0x210] sm:$0xff] %v1103_v50 }
  0x89   : > { %1106 = vst [vmem:[%s5412_s26 + $0x218] sm:$0xff] %v1105_v51 }
  0x8a   : > { %1108 = vst [vmem:[%s5412_s26 + $0x220] sm:$0xff] %v1107_v52 }
  0x8b   : > { %1110 = vst [vmem:[%s5412_s26 + $0x228] sm:$0xff] %v1109_v53 }
  0x8c   : > { %1112 = vst [vmem:[%s5412_s26 + $0x230] sm:$0xff] %v1111_v54 }
  0x8d   : > { %1114 = vst [vmem:[%s5412_s26 + $0x238] sm:$0xff] %v1113_v55 }
  0x8e   : > { %1116 = vst [vmem:[%s5412_s26 + $0x240] sm:$0xff] %v1115_v56 }
  0x8f   : > { %1118 = vst [vmem:[%s5412_s26 + $0x248] sm:$0xff] %v1117_v57 }
  0x90   : > { %1120 = vst [vmem:[%s5412_s26 + $0x250] sm:$0xff] %v1119_v58 }
  0x91   : > { %1122 = vst [vmem:[%s5412_s26 + $0x258] sm:$0xff] %v1121_v59 }
  0x92   : > { %1124 = vst [vmem:[%s5412_s26 + $0x260] sm:$0xff] %v1123_v60 }
  0x93   : > { %1126 = vst [vmem:[%s5412_s26 + $0x268] sm:$0xff] %v1125_v61 }
  0x94   : > { %1128 = vst [vmem:[%s5412_s26 + $0x270] sm:$0xff] %v1127_v62 }
  0x95   : > { %1130 = vst [vmem:[%s5412_s26 + $0x278] sm:$0xff] %v1129_v63 }
  0x96   : > { %1132 = vst [vmem:[%s5412_s26 + $0x280] sm:$0xff] %v1131_v0 }
  0x97   : > { %1134 = vst [vmem:[%s5412_s26 + $0x288] sm:$0xff] %v1133_v1 }
  0x98   : > { %1136 = vst [vmem:[%s5412_s26 + $0x290] sm:$0xff] %v1135_v2 }
  0x99   : > { %1138 = vst [vmem:[%s5412_s26 + $0x298] sm:$0xff] %v1137_v3 }
  0x9a   : > { %1140 = vst [vmem:[%s5412_s26 + $0x2a0] sm:$0xff] %v1139_v4 }
  0x9b   : > { %1142 = vst [vmem:[%s5412_s26 + $0x2a8] sm:$0xff] %v1141_v5 }
  0x9c   : > { %1144 = vst [vmem:[%s5412_s26 + $0x2b0] sm:$0xff] %v1143_v6 }
  0x9d   : > { %1146 = vst [vmem:[%s5412_s26 + $0x2b8] sm:$0xff] %v1145_v7 }
  0x9e   : > { %1148 = vst [vmem:[%s5412_s26 + $0x2c0] sm:$0xff] %v1147_v8 }
  0x9f   : > { %1150 = vst [vmem:[%s5412_s26 + $0x2c8] sm:$0xff] %v1149_v9 }
  0xa0   : > { %1152 = vst [vmem:[%s5412_s26 + $0x2d0] sm:$0xff] %v1151_v10 }
  0xa1   : > { %1154 = vst [vmem:[%s5412_s26 + $0x2d8] sm:$0xff] %v1153_v11 }
  0xa2   : > { %1156 = vst [vmem:[%s5412_s26 + $0x2e0] sm:$0xff] %v1155_v12 }
  0xa3   : > { %1158 = vst [vmem:[%s5412_s26 + $0x2e8] sm:$0xff] %v1157_v13 }
  0xa4   : > { %1160 = vst [vmem:[%s5412_s26 + $0x2f0] sm:$0xff] %v1159_v14 }
  0xa5   : > { %1162 = vst [vmem:[%s5412_s26 + $0x2f8] sm:$0xff] %v1161_v15 }
  0xa6 PF: > { %p4479_p5 = scmp.ge.s32.totalorder %s5192_s21, 1  ;;  %p1167_p6 = scmp.lt.s32.totalorder %s5192_s21, 3 }
  0xa8   : > { %p1168_p7 = pnand %p4479_p5, %p1167_p6 }
  0xaa   : > { %1171 = sbr.rel (%p1168_p7) target bundleno = 1578 (0x62a), region = 123 }
  0xaf   : > { %v4898_v16 = vld [vmem:[%s8055_s3 + $0x18] sm:$0xff]  ;;  %v4897_v17 = vld [vmem:[%s8055_s3 + $0x10] sm:$0xff]  ;;  %s1174_s12 = sand.u32 1, %s5184_s19   ;;  %v4896_v18 = vld [vmem:[%s8055_s3 + $0x8] sm:$0xff]  ;;  %vm1711_vm0 = vcmask 523264   ;;  %s7179_s18 = sld [smem:[#allocation3]] }
  0xb0   : > { %1860 = vmatpush.bf16.msra.mxu0 %v4898_v16  ;;  %s4925_s21 = smul.u32 384, %s1174_s12  ;;  %v4895_v19 = vld [vmem:[%s8055_s3] sm:$0xff]  ;;  %v4906_v25 = vld [vmem:[%s8057_s5 + $0x38] sm:$0xff]  ;;  %v4905_v27 = vld [vmem:[%s8057_s5 + $0x30] sm:$0xff]  ;;  %s4480_s19 = sshll.u32 %s5274_s0, 3 }
  0xb1   : > { %2317 = vmatpush.bf16.msra.mxu1 %v4906_v25  ;;  %v4904_v28 = vld [vmem:[%s8057_s5 + $0x28] sm:$0xff]  ;;  %v4903_v29 = vld [vmem:[%s8057_s5 + $0x20] sm:$0xff]  ;;  %v4902_v30 = vld [vmem:[%s8057_s5 + $0x18] sm:$0xff]  ;;  %s4926_s15 = smul.u32 768, %s1174_s12  ;;  %p7284_p8 = scmp.lt.s32.totalorder %s4480_s19, 15 }
  0xb2   : > { %s5620_s17 = scalar_lea.vmem [#allocation4], %s4925_s21  ;;  %v4901_v32 = vld [vmem:[%s8057_s5 + $0x10] sm:$0xff]  ;;  %v4900_v33 = vld [vmem:[%s8057_s5 + $0x8] sm:$0xff]  ;;  %v4899_v34 = vld [vmem:[%s8057_s5] sm:$0xff]  ;;  %p1236_p9 = scmp.lt.s32.totalorder %s5274_s0, 1 }
  0xb3   : > { %v4847_v20 = vld [vmem:[%s5620_s17] sm:$0xff]  ;;  %v4848_v21 = vld [vmem:[%s5620_s17 + $0x8] sm:$0xff]  ;;  %v4849_v22 = vld [vmem:[%s5620_s17 + $0x10] sm:$0xff]  ;;  %s5761_s23 = scalar_lea.vmem [#allocation5], %s4926_s15  ;;  %s8652_s19 = smov (!%p7284_p8, %s4480_s19), 15 }
  0xb4   : > { %1861 = vmatpush.bf16.msra.mxu0 %v4897_v17  ;;  %v4850_v23 = vld [vmem:[%s5620_s17 + $0x18] sm:$0xff]  ;;  %v4851_v24 = vld [vmem:[%s5620_s17 + $0x20] sm:$0xff]  ;;  %v4852_v26 = vld [vmem:[%s5620_s17 + $0x28] sm:$0xff]  ;;  %s4481_s24 = sshll.u32 %s8652_s19, 3 }
  0xb5   : > { %2318 = vmatpush.bf16.msra.mxu1 %v4905_v27  ;;  %v4853_v31 = vld [vmem:[%s5620_s17 + $0x30] sm:$0xff]  ;;  %v4854_v35 = vld [vmem:[%s5620_s17 + $0x38] sm:$0xff]  ;;  %v4855_v36 = vld [vmem:[%s5620_s17 + $0x40] sm:$0xff]  ;;  %s7356_s28 = scalar_lea.vmem %s8061_s9, %s4481_s24 }
  0xb6   : > { %v5666_v38 = vld [vmem:[%s8056_s4] ss:$0 sm:$0xff]  ;;  %v4856_v45 = vld [vmem:[%s5620_s17 + $0x48] sm:$0xff]  ;;  %v4857_v53 = vld [vmem:[%s5620_s17 + $0x50] sm:$0xff] }
  0xb7   : > { %v4858_v61 = vld [vmem:[%s5620_s17 + $0x58] sm:$0xff]  ;;  %v4859_v5 = vld [vmem:[%s5620_s17 + $0x60] sm:$0xff]  ;;  %v4860_v13 = vld [vmem:[%s5620_s17 + $0x68] sm:$0xff] }
  0xb8   : > { %1862 = vmatpush.bf16.msra.mxu0 %v4896_v18  ;;  %v4914_v17 = vld [vmem:[%s8059_s7 + $0x38] sm:$0xff]  ;;  %v4861_v25 = vld [vmem:[%s5620_s17 + $0x70] sm:$0xff]  ;;  %v4912_v27 = vld [vmem:[%s8059_s7 + $0x28] sm:$0xff] }
  0xb9   : > { %2319 = vmatpush.bf16.msra.mxu1 %v4904_v28  ;;  %2890 = vmatpush.bf16.msra.mxu2 %v4914_v17  ;;  %v4920_v28 = vld [vmem:[%s8059_s7 + $0x68] sm:$0xff] }
  0xbc   : > { %1863 = vmatpush.bf16.msra.mxu0 %v4895_v19  ;;  %v4922_v19 = vld [vmem:[%s8059_s7 + $0x78] sm:$0xff] }
  0xbd   : > { %2320 = vmatpush.bf16.msra.mxu1 %v4903_v29  ;;  %3139 = vmatpush.bf16.msra.mxu3 %v4922_v19  ;;  %v4911_v29 = vld [vmem:[%s8059_s7 + $0x20] sm:$0xff] }
  0xbf   : > { %4690 = vmatmul.msk.bf16.vlgmr.msra.gmra.mxu0 %vm1711_vm0, %v4847_v20 }
  0xc1   : > { %2321 = vmatpush.bf16.msra.mxu1 %v4902_v30  ;;  %v4919_v30 = vld [vmem:[%s8059_s7 + $0x60] sm:$0xff] }
  0xc5   : > { %2322 = vmatpush.bf16.msra.mxu1 %v4901_v32 }
  0xc9   : > { %2323 = vmatpush.bf16.msra.mxu1 %v4900_v33  ;;  %v4910_v33 = vld [vmem:[%s8059_s7 + $0x18] sm:$0xff] }
  0xcd   : > { %2324 = vmatpush.bf16.msra.mxu1 %v4899_v34 }
  0xcf   : > { %4691 = vmatmul.msk.bf16.gmra.mxu0 %vm1711_vm0, %v4848_v21 }
  0xdf   : > { %4692 = vmatmul.msk.bf16.gmra.mxu0 %vm1711_vm0, %v4849_v22  ;;  %v4913_v22 = vld [vmem:[%s8059_s7 + $0x30] sm:$0xff] }
  0xe0   : > { %2891 = vmatpush.bf16.msra.mxu2 %v4913_v22 }
  0xe4   : > { %2892 = vmatpush.bf16.msra.mxu2 %v4912_v27 }
  0xe8   : > { %2893 = vmatpush.bf16.msra.mxu2 %v4911_v29 }
  0xec   : > { %2894 = vmatpush.bf16.msra.mxu2 %v4910_v33 }
  0xef   : > { %4693 = vmatmul.msk.bf16.gmra.mxu0 %vm1711_vm0, %v4850_v23 }
  0xff   : > { %4694 = vmatmul.msk.bf16.gmra.mxu0 %vm1711_vm0, %v4851_v24  ;;  %v4921_v24 = vld [vmem:[%s8059_s7 + $0x70] sm:$0xff] }
 0x100   : > { %3140 = vmatpush.bf16.msra.mxu3 %v4921_v24 }
 0x104   : > { %3141 = vmatpush.bf16.msra.mxu3 %v4920_v28 }
 0x108   : > { %3142 = vmatpush.bf16.msra.mxu3 %v4919_v30 }
 0x10f   : > { %4695 = vmatmul.msk.bf16.gmra.mxu0 %vm1711_vm0, %v4852_v26 }
 0x11f   : > { %4696 = vmatmul.msk.bf16.gmra.mxu0 %vm1711_vm0, %v4853_v31 }
 0x12f   : > { %4697 = vmatmul.msk.bf16.gmra.mxu0 %vm1711_vm0, %v4854_v35  ;;  %v4918_v35 = vld [vmem:[%s8059_s7 + $0x58] sm:$0xff] }
 0x130   : > { %3143 = vmatpush.bf16.msra.mxu3 %v4918_v35 }
 0x13c   : > { %v1865_v37 = vpop.f32.mrf.mxu0 }
 0x13d   : > { %v1866_v39 = vadd.f32 %v5666_v38, %v1865_v37 }
 0x13f   : > { %4698 = vmatmul.msk.bf16.gmra.mxu0 %vm1711_vm0, %v4855_v36  ;;  %v2105_v42 = vmax.f32 %v1866_v39, 0.0  ;;  %v4909_v39 = vld [vmem:[%s8059_s7 + $0x10] sm:$0xff] }
 0x140   : > { %2895 = vmatpush.bf16.msra.mxu2 %v4909_v39 }
 0x144   : > { %v1867_v40 = vpop.f32.mrf.mxu0 }
 0x145   : > { %v1868_v41 = vadd.f32 %v5666_v38, %v1867_v40 }
 0x147   : > { %v2106_v43 = vmax.f32 %v1868_v41, 0.0  ;;  %v4917_v41 = vld [vmem:[%s8059_s7 + $0x50] sm:$0xff] }
 0x148   : > { %3144 = vmatpush.bf16.msra.mxu3 %v4917_v41 }
 0x149   : > { %v2201_v44 = vpack.c.bf16 %v2106_v43, %v2105_v42  ;;  %v4862_v42 = vld [vmem:[%s5620_s17 + $0x78] sm:$0xff] }
 0x14b   : > { %2325 = vmatmul.bf16.vlgmr.msra.gmra.mxu1 %v2201_v44  ;;  %v4908_v44 = vld [vmem:[%s8059_s7 + $0x8] sm:$0xff] }
 0x14c   : > { %v1870_v46 = vpop.f32.mrf.mxu0  ;;  %2896 = vmatpush.bf16.msra.mxu2 %v4908_v44 }
 0x14d   : > { %v1871_v47 = vadd.f32 %v5666_v38, %v1870_v46  ;;  %v4907_v46 = vld [vmem:[%s8059_s7] sm:$0xff] }
 0x14f   : > { %4699 = vmatmul.msk.bf16.gmra.mxu0 %vm1711_vm0, %v4856_v45  ;;  %v2107_v50 = vmax.f32 %v1871_v47, 0.0  ;;  %v4916_v45 = vld [vmem:[%s8059_s7 + $0x48] sm:$0xff]  ;;  %v4915_v47 = vld [vmem:[%s8059_s7 + $0x40] sm:$0xff] }
 0x150   : > { %3145 = vmatpush.bf16.msra.mxu3 %v4916_v45  ;;  %2897 = vmatpush.bf16.msra.mxu2 %v4907_v46 }
 0x154   : > { %v1872_v48 = vpop.f32.mrf.mxu0  ;;  %3146 = vmatpush.bf16.msra.mxu3 %v4915_v47 }
 0x155   : > { %v1873_v49 = vadd.f32 %v5666_v38, %v1872_v48 }
 0x157   : > { %v2108_v51 = vmax.f32 %v1873_v49, 0.0 }
 0x159   : > { %v2202_v52 = vpack.c.bf16 %v2108_v51, %v2107_v50 }
 0x15b   : > { %2330 = vmatmul.bf16.gmra.mxu1 %v2202_v52 }
 0x15c   : > { %v1875_v54 = vpop.f32.mrf.mxu0 }
 0x15d   : > { %v1876_v55 = vadd.f32 %v5666_v38, %v1875_v54  ;;  %v4863_v54 = vld [vmem:[%s5620_s17 + $0x80] sm:$0xff] }
 0x15f   : > { %4700 = vmatmul.msk.bf16.gmra.mxu0 %vm1711_vm0, %v4857_v53  ;;  %v2109_v58 = vmax.f32 %v1876_v55, 0.0 }
 0x164   : > { %v1877_v56 = vpop.f32.mrf.mxu0 }
 0x165   : > { %v1878_v57 = vadd.f32 %v5666_v38, %v1877_v56 }
 0x167   : > { %v2110_v59 = vmax.f32 %v1878_v57, 0.0 }
 0x169   : > { %v2203_v60 = vpack.c.bf16 %v2110_v59, %v2109_v58 }
 0x16b   : > { %2335 = vmatmul.bf16.gmra.mxu1 %v2203_v60 }
 0x16c   : > { %v1880_v62 = vpop.f32.mrf.mxu0 }
 0x16d   : > { %v1881_v63 = vadd.f32 %v5666_v38, %v1880_v62 }
 0x16f   : > { %4701 = vmatmul.msk.bf16.gmra.mxu0 %vm1711_vm0, %v4858_v61  ;;  %v2111_v2 = vmax.f32 %v1881_v63, 0.0  ;;  %v5756_v63 = vld [vmem:[%s8058_s6] ss:$0 sm:$0xff] }
 0x174   : > { %v1882_v0 = vpop.f32.mrf.mxu0 }
 0x175   : > { %v1883_v1 = vadd.f32 %v5666_v38, %v1882_v0  ;;  %v4864_v0 = vld [vmem:[%s5620_s17 + $0x88] sm:$0xff] }
 0x177   : > { %v2112_v3 = vmax.f32 %v1883_v1, 0.0 }
 0x179   : > { %v2204_v4 = vpack.c.bf16 %v2112_v3, %v2111_v2  ;;  %v1339_v3 = vld [vmem:[%s5761_s23] sm:$0xff] }
 0x17b   : > { %2340 = vmatmul.bf16.gmra.mxu1 %v2204_v4 }
 0x17c   : > { %v1885_v6 = vpop.f32.mrf.mxu0 }
 0x17d   : > { %v1886_v7 = vadd.f32 %v5666_v38, %v1885_v6 }
 0x17f   : > { %4702 = vmatmul.msk.bf16.gmra.mxu0 %vm1711_vm0, %v4859_v5  ;;  %v2113_v10 = vmax.f32 %v1886_v7, 0.0  ;;  %v1340_v5 = vld [vmem:[%s5761_s23 + $0x8] sm:$0xff] }
 0x184   : > { %v1887_v8 = vpop.f32.mrf.mxu0 }
 0x185   : > { %v1888_v9 = vadd.f32 %v5666_v38, %v1887_v8 }
 0x187   : > { %v2114_v11 = vmax.f32 %v1888_v9, 0.0 }
 0x189   : > { %v2205_v12 = vpack.c.bf16 %v2114_v11, %v2113_v10 }
 0x18b   : > { %2345 = vmatmul.bf16.gmra.mxu1 %v2205_v12 }
 0x18c   : > { %v1890_v14 = vpop.f32.mrf.mxu0 }
 0x18d   : > { %v1891_v15 = vadd.f32 %v5666_v38, %v1890_v14 }
 0x18f   : > { %4703 = vmatmul.msk.bf16.gmra.mxu0 %vm1711_vm0, %v4860_v13  ;;  %v2115_v20 = vmax.f32 %v1891_v15, 0.0 }
 0x194   : > { %v1892_v16 = vpop.f32.mrf.mxu0 }
 0x195   : > { %v1893_v18 = vadd.f32 %v5666_v38, %v1892_v16 }
 0x197   : > { %v2116_v21 = vmax.f32 %v1893_v18, 0.0  ;;  %v4865_v18 = vld [vmem:[%s5620_s17 + $0x90] sm:$0xff] }
 0x199   : > { %v2206_v23 = vpack.c.bf16 %v2116_v21, %v2115_v20  ;;  %v1341_v21 = vld [vmem:[%s5761_s23 + $0x10] sm:$0xff] }
 0x19b   : > { %2350 = vmatmul.bf16.gmra.mxu1 %v2206_v23  ;;  %v1342_v23 = vld [vmem:[%s5761_s23 + $0x18] sm:$0xff] }
 0x19c   : > { %v1895_v26 = vpop.f32.mrf.mxu0 }
 0x19d   : > { %v1896_v31 = vadd.f32 %v5666_v38, %v1895_v26 }
 0x19f   : > { %4704 = vmatmul.msk.bf16.gmra.mxu0 %vm1711_vm0, %v4861_v25  ;;  %v2117_v36 = vmax.f32 %v1896_v31, 0.0 }
 0x1a4   : > { %v1897_v32 = vpop.f32.mrf.mxu0 }
 0x1a5   : > { %v1898_v34 = vadd.f32 %v5666_v38, %v1897_v32 }
 0x1a7   : > { %v2118_v37 = vmax.f32 %v1898_v34, 0.0 }
 0x1a9   : > { %v2207_v40 = vpack.c.bf16 %v2118_v37, %v2117_v36  ;;  %v4866_v36 = vld [vmem:[%s5620_s17 + $0x98] sm:$0xff] }
 0x1ab   : > { %2355 = vmatmul.bf16.gmra.mxu1 %v2207_v40  ;;  %v1343_v40 = vld [vmem:[%s5761_s23 + $0x20] sm:$0xff] }
 0x1ac   : > { %v1900_v43 = vpop.f32.mrf.mxu0 }
 0x1ad   : > { %v1901_v48 = vadd.f32 %v5666_v38, %v1900_v43 }
 0x1af   : > { %4705 = vmatmul.msk.bf16.gmra.mxu0 %vm1711_vm0, %v4862_v42  ;;  %v2119_v51 = vmax.f32 %v1901_v48, 0.0  ;;  %v1344_v42 = vld [vmem:[%s5761_s23 + $0x28] sm:$0xff] }
 0x1b4   : > { %v1902_v49 = vpop.f32.mrf.mxu0 }
 0x1b5   : > { %v1903_v50 = vadd.f32 %v5666_v38, %v1902_v49 }
 0x1b7   : > { %v2120_v52 = vmax.f32 %v1903_v50, 0.0 }
 0x1b9   : > { %v2208_v53 = vpack.c.bf16 %v2120_v52, %v2119_v51 }
 0x1bb   : > { %2360 = vmatmul.bf16.gmra.mxu1 %v2208_v53 }
 0x1bc   : > { %v1905_v55 = vpop.f32.mrf.mxu0 }
 0x1bd   : > { %v1906_v56 = vadd.f32 %v5666_v38, %v1905_v55  ;;  %v4867_v55 = vld [vmem:[%s5620_s17 + $0xa0] sm:$0xff] }
 0x1bf   : > { %4706 = vmatmul.msk.bf16.gmra.mxu0 %vm1711_vm0, %v4863_v54  ;;  %v2121_v59 = vmax.f32 %v1906_v56, 0.0 }
 0x1c4   : > { %v1907_v57 = vpop.f32.mrf.mxu0 }
 0x1c5   : > { %v1908_v58 = vadd.f32 %v5666_v38, %v1907_v57 }
 0x1c7   : > { %v2122_v60 = vmax.f32 %v1908_v58, 0.0  ;;  %v1345_v58 = vld [vmem:[%s5761_s23 + $0x30] sm:$0xff] }
 0x1c8   : > { %v2326_v61 = vpop.f32.mrf.mxu1 }
 0x1c9   : > { %v2209_v62 = vpack.c.bf16 %v2122_v60, %v2121_v59  ;;  %v2327_v2 = vadd.f32 %v5756_v63, %v2326_v61  ;;  %v1346_v60 = vld [vmem:[%s5761_s23 + $0x38] sm:$0xff] }
 0x1cb   : > { %2365 = vmatmul.bf16.gmra.mxu1 %v2209_v62  ;;  %v5766_v7 = vadd.f32 %v2327_v2, %v1339_v3 }
 0x1cc   : > { %v1910_v1 = vpop.f32.mrf.mxu0 }
 0x1cd   : > { %8253 = vst [vmem:[#allocation6_spill] sm:$0xff] %v5766_v7  ;;  %v1911_v8 = vadd.f32 %v5666_v38, %v1910_v1 }
 0x1cf   : > { %4707 = vmatmul.msk.bf16.gmra.mxu0 %vm1711_vm0, %v4864_v0  ;;  %v2123_v14 = vmax.f32 %v1911_v8, 0.0 }
 0x1d0   : > { %v2328_v4 = vpop.f32.mrf.mxu1 }
 0x1d1   : > { %v2329_v6 = vadd.f32 %v5756_v63, %v2328_v4 }
 0x1d3   : > { %v2662_v9 = vpack.c.bf16 %v2329_v6, %v2327_v2  ;;  %v5769_v10 = vadd.f32 %v2329_v6, %v1340_v5 }
 0x1d4   : > { %v1912_v11 = vpop.f32.mrf.mxu0 }
 0x1d5   : > { %8254 = vst [vmem:[#allocation7_spill] sm:$0xff] %v5769_v10  ;;  %v1913_v12 = vadd.f32 %v5666_v38, %v1912_v11  ;;  %2898 = vmatmul.bf16.vlgmr.msra.gmra.mxu2 %v2662_v9  ;;  %v2663_v13 = vpack.c.bf16 %v5769_v10, %v5766_v7 }
 0x1d7   : > { %v2124_v15 = vmax.f32 %v1913_v12, 0.0  ;;  %3147 = vmatmul.bf16.vlgmr.msra.gmra.mxu3 %v2663_v13  ;;  %v4868_v12 = vld [vmem:[%s5620_s17 + $0xa8] sm:$0xff] }
 0x1d8   : > { %v2331_v16 = vpop.f32.mrf.mxu1 }
 0x1d9   : > { %v2210_v17 = vpack.c.bf16 %v2124_v15, %v2123_v14  ;;  %v2332_v20 = vadd.f32 %v5756_v63, %v2331_v16  ;;  %v1347_v15 = vld [vmem:[%s5761_s23 + $0x40] sm:$0xff] }
 0x1db   : > { %2370 = vmatmul.bf16.gmra.mxu1 %v2210_v17  ;;  %v5780_v25 = vadd.f32 %v2332_v20, %v1341_v21  ;;  %v1348_v17 = vld [vmem:[%s5761_s23 + $0x48] sm:$0xff] }
 0x1dc   : > { %v1915_v19 = vpop.f32.mrf.mxu0 }
 0x1dd   : > { %8255 = vst [vmem:[#allocation8_spill] sm:$0xff] %v5780_v25  ;;  %v1916_v26 = vadd.f32 %v5666_v38, %v1915_v19 }
 0x1df   : > { %4708 = vmatmul.msk.bf16.gmra.mxu0 %vm1711_vm0, %v4865_v18  ;;  %v2125_v32 = vmax.f32 %v1916_v26, 0.0 }
 0x1e0   : > { %v2333_v22 = vpop.f32.mrf.mxu1 }
 0x1e1   : > { %v2334_v24 = vadd.f32 %v5756_v63, %v2333_v22 }
 0x1e3   : > { %v2664_v27 = vpack.c.bf16 %v2334_v24, %v2332_v20  ;;  %v5783_v28 = vadd.f32 %v2334_v24, %v1342_v23 }
 0x1e4   : > { %v1917_v29 = vpop.f32.mrf.mxu0 }
 0x1e5   : > { %8256 = vst [vmem:[#allocation9_spill] sm:$0xff] %v5783_v28  ;;  %v1918_v30 = vadd.f32 %v5666_v38, %v1917_v29  ;;  %2903 = vmatmul.bf16.gmra.mxu2 %v2664_v27  ;;  %v2665_v31 = vpack.c.bf16 %v5783_v28, %v5780_v25 }
 0x1e7   : > { %v2126_v33 = vmax.f32 %v1918_v30, 0.0  ;;  %3152 = vmatmul.bf16.gmra.mxu3 %v2665_v31 }
 0x1e8   : > { %v2336_v34 = vpop.f32.mrf.mxu1 }
 0x1e9   : > { %v2211_v35 = vpack.c.bf16 %v2126_v33, %v2125_v32  ;;  %v2337_v39 = vadd.f32 %v5756_v63, %v2336_v34  ;;  %v4869_v32 = vld [vmem:[%s5620_s17 + $0xb0] sm:$0xff] }
 0x1eb   : > { %2375 = vmatmul.bf16.gmra.mxu1 %v2211_v35  ;;  %v5794_v44 = vadd.f32 %v2337_v39, %v1343_v40  ;;  %v1349_v35 = vld [vmem:[%s5761_s23 + $0x50] sm:$0xff] }
 0x1ec   : > { %v1920_v37 = vpop.f32.mrf.mxu0 }
 0x1ed   : > { %8257 = vst [vmem:[#allocation10_spill] sm:$0xff] %v5794_v44  ;;  %v1921_v45 = vadd.f32 %v5666_v38, %v1920_v37  ;;  %v1350_v37 = vld [vmem:[%s5761_s23 + $0x58] sm:$0xff] }
 0x1ef   : > { %4709 = vmatmul.msk.bf16.gmra.mxu0 %vm1711_vm0, %v4866_v36  ;;  %v2127_v51 = vmax.f32 %v1921_v45, 0.0 }
 0x1f0   : > { %v2338_v41 = vpop.f32.mrf.mxu1 }
 0x1f1   : > { %v2339_v43 = vadd.f32 %v5756_v63, %v2338_v41 }
 0x1f3   : > { %v2666_v46 = vpack.c.bf16 %v2339_v43, %v2337_v39  ;;  %v5797_v47 = vadd.f32 %v2339_v43, %v1344_v42 }
 0x1f4   : > { %v1922_v48 = vpop.f32.mrf.mxu0 }
 0x1f5   : > { %8258 = vst [vmem:[#allocation11_spill] sm:$0xff] %v5797_v47  ;;  %v1923_v49 = vadd.f32 %v5666_v38, %v1922_v48  ;;  %2908 = vmatmul.bf16.gmra.mxu2 %v2666_v46  ;;  %v2667_v50 = vpack.c.bf16 %v5797_v47, %v5794_v44 }
 0x1f7   : > { %v2128_v52 = vmax.f32 %v1923_v49, 0.0  ;;  %3157 = vmatmul.bf16.gmra.mxu3 %v2667_v50 }
 0x1f8   : > { %v2341_v53 = vpop.f32.mrf.mxu1 }
 0x1f9   : > { %v2212_v54 = vpack.c.bf16 %v2128_v52, %v2127_v51  ;;  %v2342_v57 = vadd.f32 %v5756_v63, %v2341_v53  ;;  %v4870_v53 = vld [vmem:[%s5620_s17 + $0xb8] sm:$0xff] }
 0x1fb   : > { %2380 = vmatmul.bf16.gmra.mxu1 %v2212_v54  ;;  %v5808_v62 = vadd.f32 %v2342_v57, %v1345_v58  ;;  %v1352_v58 = vld [vmem:[%s5761_s23 + $0x68] sm:$0xff] }
 0x1fc   : > { %v1925_v56 = vpop.f32.mrf.mxu0 }
 0x1fd   : > { %8259 = vst [vmem:[#allocation12_spill] sm:$0xff] %v5808_v62  ;;  %v1926_v0 = vadd.f32 %v5666_v38, %v1925_v56  ;;  %v1351_v56 = vld [vmem:[%s5761_s23 + $0x60] sm:$0xff] }
 0x1ff   : > { %4710 = vmatmul.msk.bf16.gmra.mxu0 %vm1711_vm0, %v4867_v55  ;;  %v2129_v6 = vmax.f32 %v1926_v0, 0.0 }
 0x200   : > { %v2343_v59 = vpop.f32.mrf.mxu1 }
 0x201   : > { %v2344_v61 = vadd.f32 %v5756_v63, %v2343_v59 }
 0x203   : > { %v2668_v1 = vpack.c.bf16 %v2344_v61, %v2342_v57  ;;  %v5811_v2 = vadd.f32 %v2344_v61, %v1346_v60 }
 0x204   : > { %v1927_v3 = vpop.f32.mrf.mxu0 }
 0x205   : > { %8260 = vst [vmem:[#allocation13_spill] sm:$0xff] %v5811_v2  ;;  %v1928_v4 = vadd.f32 %v5666_v38, %v1927_v3  ;;  %2913 = vmatmul.bf16.gmra.mxu2 %v2668_v1  ;;  %v2669_v5 = vpack.c.bf16 %v5811_v2, %v5808_v62 }
 0x207   : > { %v2130_v8 = vmax.f32 %v1928_v4, 0.0  ;;  %3162 = vmatmul.bf16.gmra.mxu3 %v2669_v5 }
 0x208   : > { %v2346_v9 = vpop.f32.mrf.mxu1 }
 0x209   : > { %v2213_v11 = vpack.c.bf16 %v2130_v8, %v2129_v6  ;;  %v2347_v14 = vadd.f32 %v5756_v63, %v2346_v9 }
 0x20b   : > { %2385 = vmatmul.bf16.gmra.mxu1 %v2213_v11  ;;  %v5822_v19 = vadd.f32 %v2347_v14, %v1347_v15  ;;  %v1353_v15 = vld [vmem:[%s5761_s23 + $0x70] sm:$0xff] }
 0x20c   : > { %v1930_v13 = vpop.f32.mrf.mxu0 }
 0x20d   : > { %8261 = vst [vmem:[#allocation14_spill] sm:$0xff] %v5822_v19  ;;  %v1931_v20 = vadd.f32 %v5666_v38, %v1930_v13 }
 0x20f   : > { %4711 = vmatmul.msk.bf16.gmra.mxu0 %vm1711_vm0, %v4868_v12  ;;  %v2131_v27 = vmax.f32 %v1931_v20, 0.0  ;;  %v4871_v12 = vld [vmem:[%s5620_s17 + $0xc0] sm:$0xff] }
 0x210   : > { %v2348_v16 = vpop.f32.mrf.mxu1 }
 0x211   : > { %v2349_v18 = vadd.f32 %v5756_v63, %v2348_v16 }
 0x213   : > { %v2670_v21 = vpack.c.bf16 %v2349_v18, %v2347_v14  ;;  %v5825_v22 = vadd.f32 %v2349_v18, %v1348_v17  ;;  %v1354_v17 = vld [vmem:[%s5761_s23 + $0x78] sm:$0xff] }
 0x214   : > { %v1932_v23 = vpop.f32.mrf.mxu0 }
 0x215   : > { %8262 = vst [vmem:[#allocation15_spill] sm:$0xff] %v5825_v22  ;;  %v1933_v24 = vadd.f32 %v5666_v38, %v1932_v23  ;;  %2918 = vmatmul.bf16.gmra.mxu2 %v2670_v21  ;;  %v2671_v26 = vpack.c.bf16 %v5825_v22, %v5822_v19 }
 0x217   : > { %v2132_v29 = vmax.f32 %v1933_v24, 0.0  ;;  %3167 = vmatmul.bf16.gmra.mxu3 %v2671_v26 }
 0x218   : > { %v2351_v30 = vpop.f32.mrf.mxu1 }
 0x219   : > { %v2214_v31 = vpack.c.bf16 %v2132_v29, %v2131_v27  ;;  %v2352_v34 = vadd.f32 %v5756_v63, %v2351_v30 }
 0x21b   : > { %2390 = vmatmul.bf16.gmra.mxu1 %v2214_v31  ;;  %v5836_v40 = vadd.f32 %v2352_v34, %v1349_v35 }
 0x21c   : > { %v1935_v33 = vpop.f32.mrf.mxu0 }
 0x21d   : > { %8263 = vst [vmem:[#allocation16_spill] sm:$0xff] %v5836_v40  ;;  %v1936_v41 = vadd.f32 %v5666_v38, %v1935_v33 }
 0x21f   : > { %4712 = vmatmul.msk.bf16.gmra.mxu0 %vm1711_vm0, %v4869_v32  ;;  %v2133_v49 = vmax.f32 %v1936_v41, 0.0  ;;  %v1356_v41 = vld [vmem:[%s5761_s23 + $0x88] sm:$0xff] }
 0x220   : > { %v2353_v36 = vpop.f32.mrf.mxu1 }
 0x221   : > { %v2354_v39 = vadd.f32 %v5756_v63, %v2353_v36 }
 0x223   : > { %v2672_v42 = vpack.c.bf16 %v2354_v39, %v2352_v34  ;;  %v5839_v43 = vadd.f32 %v2354_v39, %v1350_v37  ;;  %v4872_v34 = vld [vmem:[%s5620_s17 + $0xc8] sm:$0xff]  ;;  %v1355_v37 = vld [vmem:[%s5761_s23 + $0x80] sm:$0xff] }
 0x224   : > { %v1937_v45 = vpop.f32.mrf.mxu0 }
 0x225   : > { %8264 = vst [vmem:[#allocation17_spill] sm:$0xff] %v5839_v43  ;;  %v1938_v46 = vadd.f32 %v5666_v38, %v1937_v45  ;;  %2923 = vmatmul.bf16.gmra.mxu2 %v2672_v42  ;;  %v2673_v48 = vpack.c.bf16 %v5839_v43, %v5836_v40 }
 0x227   : > { %v2134_v50 = vmax.f32 %v1938_v46, 0.0  ;;  %3172 = vmatmul.bf16.gmra.mxu3 %v2673_v48 }
 0x228   : > { %v2356_v51 = vpop.f32.mrf.mxu1 }
 0x229   : > { %v2215_v52 = vpack.c.bf16 %v2134_v50, %v2133_v49  ;;  %v2357_v55 = vadd.f32 %v5756_v63, %v2356_v51 }
 0x22b   : > { %2395 = vmatmul.bf16.gmra.mxu1 %v2215_v52  ;;  %v5850_v60 = vadd.f32 %v2357_v55, %v1351_v56 }
 0x22c   : > { %v1940_v54 = vpop.f32.mrf.mxu0 }
 0x22d   : > { %8265 = vst [vmem:[#allocation18_spill] sm:$0xff] %v5850_v60  ;;  %v1941_v61 = vadd.f32 %v5666_v38, %v1940_v54 }
 0x22f   : > { %4713 = vmatmul.msk.bf16.gmra.mxu0 %vm1711_vm0, %v4870_v53  ;;  %v2135_v6 = vmax.f32 %v1941_v61, 0.0  ;;  %v5889_v53 = vld [vmem:[%s8060_s8] ss:$0 sm:$0xff] }
 0x230   : > { %v2358_v57 = vpop.f32.mrf.mxu1 }
 0x231   : > { %v2359_v59 = vadd.f32 %v5756_v63, %v2358_v57 }
 0x233   : > { %v2674_v0 = vpack.c.bf16 %v2359_v59, %v2357_v55  ;;  %v5853_v1 = vadd.f32 %v2359_v59, %v1352_v58 }
 0x234   : > { %v1942_v3 = vpop.f32.mrf.mxu0 }
 0x235   : > { %8266 = vst [vmem:[#allocation19_spill] sm:$0xff] %v5853_v1  ;;  %v1943_v4 = vadd.f32 %v5666_v38, %v1942_v3  ;;  %2928 = vmatmul.bf16.gmra.mxu2 %v2674_v0  ;;  %v2675_v5 = vpack.c.bf16 %v5853_v1, %v5850_v60  ;;  %v4873_v3 = vld [vmem:[%s5620_s17 + $0xd0] sm:$0xff] }
 0x237   : > { %v2136_v8 = vmax.f32 %v1943_v4, 0.0  ;;  %3177 = vmatmul.bf16.gmra.mxu3 %v2675_v5 }
 0x238   : > { %v2361_v9 = vpop.f32.mrf.mxu1 }
 0x239   : > { %v2216_v11 = vpack.c.bf16 %v2136_v8, %v2135_v6  ;;  %v2362_v14 = vadd.f32 %v5756_v63, %v2361_v9  ;;  %v1357_v6 = vld [vmem:[%s5761_s23 + $0x90] sm:$0xff] }
 0x23b   : > { %2400 = vmatmul.bf16.gmra.mxu1 %v2216_v11  ;;  %v5864_v20 = vadd.f32 %v2362_v14, %v1353_v15  ;;  %v1358_v11 = vld [vmem:[%s5761_s23 + $0x98] sm:$0xff] }
 0x23c   : > { %v1945_v13 = vpop.f32.mrf.mxu0 }
 0x23d   : > { %8267 = vst [vmem:[#allocation20_spill] sm:$0xff] %v5864_v20  ;;  %v1946_v21 = vadd.f32 %v5666_v38, %v1945_v13 }
 0x23f   : > { %4714 = vmatmul.msk.bf16.gmra.mxu0 %vm1711_vm0, %v4871_v12  ;;  %v2137_v30 = vmax.f32 %v1946_v21, 0.0 }
 0x240   : > { %v2363_v16 = vpop.f32.mrf.mxu1 }
 0x241   : > { %v2364_v18 = vadd.f32 %v5756_v63, %v2363_v16 }
 0x243   : > { %v2676_v23 = vpack.c.bf16 %v2364_v18, %v2362_v14  ;;  %v5867_v24 = vadd.f32 %v2364_v18, %v1354_v17 }
 0x244   : > { %v1947_v26 = vpop.f32.mrf.mxu0 }
 0x245   : > { %8268 = vst [vmem:[#allocation21_spill] sm:$0xff] %v5867_v24  ;;  %v1948_v27 = vadd.f32 %v5666_v38, %v1947_v26  ;;  %2933 = vmatmul.bf16.gmra.mxu2 %v2676_v23  ;;  %v2677_v29 = vpack.c.bf16 %v5867_v24, %v5864_v20 }
 0x247   : > { %v2138_v31 = vmax.f32 %v1948_v27, 0.0  ;;  %3182 = vmatmul.bf16.gmra.mxu3 %v2677_v29 }
 0x248   : > { %v2366_v32 = vpop.f32.mrf.mxu1 }
 0x249   : > { %v2217_v33 = vpack.c.bf16 %v2138_v31, %v2137_v30  ;;  %v2367_v36 = vadd.f32 %v5756_v63, %v2366_v32 }
 0x24b   : > { %2405 = vmatmul.bf16.gmra.mxu1 %v2217_v33  ;;  %v5878_v45 = vadd.f32 %v2367_v36, %v1355_v37  ;;  %v4874_v37 = vld [vmem:[%s5620_s17 + $0xd8] sm:$0xff] }
 0x24c   : > { %v1950_v35 = vpop.f32.mrf.mxu0 }
 0x24d   : > { %8269 = vst [vmem:[#allocation22_spill] sm:$0xff] %v5878_v45  ;;  %v1951_v46 = vadd.f32 %v5666_v38, %v1950_v35 }
 0x24f   : > { %4715 = vmatmul.msk.bf16.gmra.mxu0 %vm1711_vm0, %v4872_v34  ;;  %v2139_v54 = vmax.f32 %v1951_v46, 0.0 }
 0x250   : > { %v2368_v39 = vpop.f32.mrf.mxu1 }
 0x251   : > { %v2369_v42 = vadd.f32 %v5756_v63, %v2368_v39 }
 0x253   : > { %v2678_v48 = vpack.c.bf16 %v2369_v42, %v2367_v36  ;;  %v5881_v49 = vadd.f32 %v2369_v42, %v1356_v41  ;;  %v1359_v42 = vld [vmem:[%s5761_s23 + $0xa0] sm:$0xff] }
 0x254   : > { %v1952_v50 = vpop.f32.mrf.mxu0 }
 0x255   : > { %8270 = vst [vmem:[#allocation23_spill] sm:$0xff] %v5881_v49  ;;  %v1953_v51 = vadd.f32 %v5666_v38, %v1952_v50  ;;  %2938 = vmatmul.bf16.gmra.mxu2 %v2678_v48  ;;  %v2679_v52 = vpack.c.bf16 %v5881_v49, %v5878_v45  ;;  %v1360_v50 = vld [vmem:[%s5761_s23 + $0xa8] sm:$0xff]  ;;  %v1403_v49 = vld [vmem:[%s5761_s23 + $0x200] sm:$0xff] }
 0x257   : > { %v2140_v55 = vmax.f32 %v1953_v51, 0.0  ;;  %3187 = vmatmul.bf16.gmra.mxu3 %v2679_v52 }
 0x258   : > { %v2371_v56 = vpop.f32.mrf.mxu1  ;;  %v2899_v57 = vpop.f32.mrf.mxu2 }
 0x259   : > { %v2900_v58 = vadd.f32 %v5889_v53, %v2899_v57  ;;  %v2218_v59 = vpack.c.bf16 %v2140_v55, %v2139_v54  ;;  %v2372_v5 = vadd.f32 %v5756_v63, %v2371_v56 }
 0x25a   : > { %v3148_v61 = vpop.f32.mrf.mxu3 }
 0x25b   : > { %v5892_v0 = vadd.f32 %v3148_v61, %v2900_v58  ;;  %2410 = vmatmul.bf16.gmra.mxu1 %v2218_v59  ;;  %v5901_v14 = vadd.f32 %v2372_v5, %v1357_v6 }
 0x25c   : > { %v1955_v4 = vpop.f32.mrf.mxu0 }
 0x25d   : > { %8271 = vst [vmem:[#allocation24_spill] sm:$0xff] %v5901_v14  ;;  %v1956_v16 = vadd.f32 %v5666_v38, %v1955_v4 }
 0x25f   : > { %4716 = vmatmul.msk.bf16.gmra.mxu0 %vm1711_vm0, %v4873_v3  ;;  %v2141_v29 = vmax.f32 %v1956_v16, 0.0  ;;  %v4875_v16 = vld [vmem:[%s5620_s17 + $0xe0] sm:$0xff] }
 0x260   : > { %v2373_v8 = vpop.f32.mrf.mxu1  ;;  %v2901_v9 = vpop.f32.mrf.mxu2 }
 0x261   : > { %v2374_v12 = vadd.f32 %v5756_v63, %v2373_v8  ;;  %v2902_v13 = vadd.f32 %v5889_v53, %v2901_v9 }
 0x262   : > { %v3150_v15 = vpop.f32.mrf.mxu3 }
 0x263   : > { %v5904_v17 = vadd.f32 %v3150_v15, %v2902_v13  ;;  %v2680_v18 = vpack.c.bf16 %v2374_v12, %v2372_v5  ;;  %v5906_v21 = vadd.f32 %v2374_v12, %v1358_v11 }
 0x264   : > { %v1957_v23 = vpop.f32.mrf.mxu0 }
 0x265   : > { %8272 = vst [vmem:[#allocation25_spill] sm:$0xff] %v5906_v21  ;;  %v1958_v26 = vadd.f32 %v5666_v38, %v1957_v23  ;;  %2943 = vmatmul.bf16.gmra.mxu2 %v2680_v18  ;;  %v2681_v27 = vpack.c.bf16 %v5906_v21, %v5901_v14 }
 0x267   : > { %v2142_v30 = vmax.f32 %v1958_v26, 0.0  ;;  %3192 = vmatmul.bf16.gmra.mxu3 %v2681_v27  ;;  %v1361_v26 = vld [vmem:[%s5761_s23 + $0xb0] sm:$0xff] }
 0x268   : > { %v2376_v31 = vpop.f32.mrf.mxu1  ;;  %v2904_v32 = vpop.f32.mrf.mxu2 }
 0x269   : > { %v2905_v33 = vadd.f32 %v5889_v53, %v2904_v32  ;;  %v2219_v34 = vpack.c.bf16 %v2142_v30, %v2141_v29  ;;  %v2377_v41 = vadd.f32 %v5756_v63, %v2376_v31  ;;  %v1362_v30 = vld [vmem:[%s5761_s23 + $0xb8] sm:$0xff] }
 0x26a   : > { %v3153_v35 = vpop.f32.mrf.mxu3 }
 0x26b   : > { %v5912_v36 = vadd.f32 %v3153_v35, %v2905_v33  ;;  %2415 = vmatmul.bf16.gmra.mxu1 %v2219_v34  ;;  %v5921_v54 = vadd.f32 %v2377_v41, %v1359_v42 }
 0x26c   : > { %v1960_v39 = vpop.f32.mrf.mxu0 }
 0x26d   : > { %8273 = vst [vmem:[#allocation26_spill] sm:$0xff] %v5921_v54  ;;  %v1961_v56 = vadd.f32 %v5666_v38, %v1960_v39 }
 0x26f   : > { %4717 = vmatmul.msk.bf16.gmra.mxu0 %vm1711_vm0, %v4874_v37  ;;  %v2143_v5 = vmax.f32 %v1961_v56, 0.0 }
 0x270   : > { %v2378_v46 = vpop.f32.mrf.mxu1  ;;  %v2906_v48 = vpop.f32.mrf.mxu2 }
 0x271   : > { %v2379_v51 = vadd.f32 %v5756_v63, %v2378_v46  ;;  %v2907_v52 = vadd.f32 %v5889_v53, %v2906_v48 }
 0x272   : > { %v3155_v55 = vpop.f32.mrf.mxu3 }
 0x273   : > { %v5924_v57 = vadd.f32 %v3155_v55, %v2907_v52  ;;  %v2682_v58 = vpack.c.bf16 %v2379_v51, %v2377_v41  ;;  %v5926_v59 = vadd.f32 %v2379_v51, %v1360_v50 }
 0x274   : > { %v1962_v61 = vpop.f32.mrf.mxu0 }
 0x275   : > { %8274 = vst [vmem:[#allocation27_spill] sm:$0xff] %v5926_v59  ;;  %v1963_v3 = vadd.f32 %v5666_v38, %v1962_v61  ;;  %2948 = vmatmul.bf16.gmra.mxu2 %v2682_v58  ;;  %v2683_v4 = vpack.c.bf16 %v5926_v59, %v5921_v54 }
 0x277   : > { %v2144_v6 = vmax.f32 %v1963_v3, 0.0  ;;  %3197 = vmatmul.bf16.gmra.mxu3 %v2683_v4  ;;  %v4876_v4 = vld [vmem:[%s5620_s17 + $0xe8] sm:$0xff] }
 0x278   : > { %v2381_v8 = vpop.f32.mrf.mxu1  ;;  %v2909_v9 = vpop.f32.mrf.mxu2 }
 0x279   : > { %v2910_v11 = vadd.f32 %v5889_v53, %v2909_v9  ;;  %v2220_v12 = vpack.c.bf16 %v2144_v6, %v2143_v5  ;;  %v2382_v23 = vadd.f32 %v5756_v63, %v2381_v8  ;;  %v1363_v8 = vld [vmem:[%s5761_s23 + $0xc0] sm:$0xff]  ;;  %v1364_v9 = vld [vmem:[%s5761_s23 + $0xc8] sm:$0xff] }
 0x27a   : > { %v3158_v13 = vpop.f32.mrf.mxu3 }
 0x27b   : > { %v5932_v15 = vadd.f32 %v3158_v13, %v2910_v11  ;;  %2420 = vmatmul.bf16.gmra.mxu1 %v2220_v12  ;;  %v5941_v33 = vadd.f32 %v2382_v23, %v1361_v26 }
 0x27c   : > { %v1965_v18 = vpop.f32.mrf.mxu0 }
 0x27d   : > { %8275 = vst [vmem:[#allocation28_spill] sm:$0xff] %v5932_v15  ;;  %v1966_v35 = vadd.f32 %v5666_v38, %v1965_v18 }
 0x27e   : > { %8276 = vst [vmem:[#allocation29_spill] sm:$0xff] %v5941_v33 }
 0x27f   : > { %4718 = vmatmul.msk.bf16.gmra.mxu0 %vm1711_vm0, %v4875_v16  ;;  %v2145_v50 = vmax.f32 %v1966_v35, 0.0 }
 0x280   : > { %v2383_v27 = vpop.f32.mrf.mxu1  ;;  %v2911_v29 = vpop.f32.mrf.mxu2 }
 0x281   : > { %v2384_v31 = vadd.f32 %v5756_v63, %v2383_v27  ;;  %v2912_v32 = vadd.f32 %v5889_v53, %v2911_v29 }
 0x282   : > { %v3160_v34 = vpop.f32.mrf.mxu3 }
 0x283   : > { %v5944_v37 = vadd.f32 %v3160_v34, %v2912_v32  ;;  %v2684_v39 = vpack.c.bf16 %v2384_v31, %v2382_v23  ;;  %v5946_v41 = vadd.f32 %v2384_v31, %v1362_v30 }
 0x284   : > { %v1967_v42 = vpop.f32.mrf.mxu0 }
 0x285   : > { %8277 = vst [vmem:[#allocation30_spill] sm:$0xff] %v5944_v37  ;;  %v1968_v46 = vadd.f32 %v5666_v38, %v1967_v42  ;;  %2953 = vmatmul.bf16.gmra.mxu2 %v2684_v39  ;;  %v2685_v48 = vpack.c.bf16 %v5946_v41, %v5941_v33 }
 0x286   : > { %8278 = vst [vmem:[#allocation31_spill] sm:$0xff] %v5946_v41 }
 0x287   : > { %v2146_v51 = vmax.f32 %v1968_v46, 0.0  ;;  %3202 = vmatmul.bf16.gmra.mxu3 %v2685_v48 }
 0x288   : > { %v2386_v52 = vpop.f32.mrf.mxu1  ;;  %v2914_v55 = vpop.f32.mrf.mxu2 }
 0x289   : > { %v2915_v56 = vadd.f32 %v5889_v53, %v2914_v55  ;;  %v2221_v58 = vpack.c.bf16 %v2146_v51, %v2145_v50  ;;  %v2387_v6 = vadd.f32 %v5756_v63, %v2386_v52  ;;  %v4877_v55 = vld [vmem:[%s5620_s17 + $0xf0] sm:$0xff] }
 0x28a   : > { %v3163_v61 = vpop.f32.mrf.mxu3 }
 0x28b   : > { %v5952_v3 = vadd.f32 %v3163_v61, %v2915_v56  ;;  %2425 = vmatmul.bf16.gmra.mxu1 %v2221_v58  ;;  %v5961_v18 = vadd.f32 %v2387_v6, %v1363_v8 }
 0x28c   : > { %v1970_v5 = vpop.f32.mrf.mxu0 }
 0x28d   : > { %8279 = vst [vmem:[#allocation32_spill] sm:$0xff] %v5952_v3  ;;  %v1971_v26 = vadd.f32 %v5666_v38, %v1970_v5  ;;  %v1366_v5 = vld [vmem:[%s5761_s23 + $0xd8] sm:$0xff] }
 0x28e   : > { %8280 = vst [vmem:[#allocation33_spill] sm:$0xff] %v5961_v18 }
 0x28f   : > { %4719 = vmatmul.msk.bf16.gmra.mxu0 %vm1711_vm0, %v4876_v4  ;;  %v2147_v35 = vmax.f32 %v1971_v26, 0.0  ;;  %v1365_v4 = vld [vmem:[%s5761_s23 + $0xd0] sm:$0xff] }
 0x290   : > { %v2388_v11 = vpop.f32.mrf.mxu1  ;;  %v2916_v12 = vpop.f32.mrf.mxu2 }
 0x291   : > { %v2389_v13 = vadd.f32 %v5756_v63, %v2388_v11  ;;  %v2917_v16 = vadd.f32 %v5889_v53, %v2916_v12 }
 0x292   : > { %v3165_v23 = vpop.f32.mrf.mxu3 }
 0x293   : > { %v5964_v27 = vadd.f32 %v2389_v13, %v1364_v9  ;;  %v2686_v29 = vpack.c.bf16 %v2389_v13, %v2387_v6  ;;  %v5966_v30 = vadd.f32 %v3165_v23, %v2917_v16 }
 0x294   : > { %v1972_v31 = vpop.f32.mrf.mxu0 }
 0x295   : > { %8281 = vst [vmem:[#allocation34_spill] sm:$0xff] %v5964_v27  ;;  %v1973_v32 = vadd.f32 %v5666_v38, %v1972_v31  ;;  %2958 = vmatmul.bf16.gmra.mxu2 %v2686_v29  ;;  %v2687_v34 = vpack.c.bf16 %v5964_v27, %v5961_v18 }
 0x296   : > { %8282 = vst [vmem:[#allocation35_spill] sm:$0xff] %v5966_v30 }
 0x297   : > { %v2148_v39 = vmax.f32 %v1973_v32, 0.0  ;;  %3207 = vmatmul.bf16.gmra.mxu3 %v2687_v34 }
 0x298   : > { %v2391_v42 = vpop.f32.mrf.mxu1  ;;  %v2919_v46 = vpop.f32.mrf.mxu2 }
 0x299   : > { %v2920_v48 = vadd.f32 %v5889_v53, %v2919_v46  ;;  %v2222_v50 = vpack.c.bf16 %v2148_v39, %v2147_v35  ;;  %v2392_v61 = vadd.f32 %v5756_v63, %v2391_v42 }
 0x29a   : > { %v3168_v51 = vpop.f32.mrf.mxu3 }
 0x29b   : > { %v5972_v52 = vadd.f32 %v3168_v51, %v2920_v48  ;;  %2430 = vmatmul.bf16.gmra.mxu1 %v2222_v50  ;;  %v5983_v12 = vadd.f32 %v2392_v61, %v1365_v4 }
 0x29c   : > { %v1975_v56 = vpop.f32.mrf.mxu0 }
 0x29d   : > { %8283 = vst [vmem:[#allocation36_spill] sm:$0xff] %v5983_v12  ;;  %v1976_v16 = vadd.f32 %v5666_v38, %v1975_v56 }
 0x29f   : > { %4720 = vmatmul.msk.bf16.gmra.mxu0 %vm1711_vm0, %v4877_v55  ;;  %v2149_v39 = vmax.f32 %v1976_v16, 0.0 }
 0x2a0   : > { %v2393_v6 = vpop.f32.mrf.mxu1  ;;  %v2921_v8 = vpop.f32.mrf.mxu2 }
 0x2a1   : > { %v2394_v9 = vadd.f32 %v5756_v63, %v2393_v6  ;;  %v2922_v11 = vadd.f32 %v5889_v53, %v2921_v8  ;;  %v1367_v8 = vld [vmem:[%s5761_s23 + $0xe0] sm:$0xff] }
 0x2a2   : > { %v3170_v13 = vpop.f32.mrf.mxu3 }
 0x2a3   : > { %v5986_v23 = vadd.f32 %v2394_v9, %v1366_v5  ;;  %v2688_v26 = vpack.c.bf16 %v2394_v9, %v2392_v61  ;;  %v5988_v29 = vadd.f32 %v3170_v13, %v2922_v11  ;;  %v4878_v61 = vld [vmem:[%s5620_s17 + $0xf8] sm:$0xff]  ;;  %v1368_v9 = vld [vmem:[%s5761_s23 + $0xe8] sm:$0xff] }
 0x2a4   : > { %v1977_v31 = vpop.f32.mrf.mxu0 }
 0x2a5   : > { %8284 = vst [vmem:[#allocation37_spill] sm:$0xff] %v5986_v23  ;;  %v1978_v34 = vadd.f32 %v5666_v38, %v1977_v31  ;;  %2963 = vmatmul.bf16.gmra.mxu2 %v2688_v26  ;;  %v2689_v35 = vpack.c.bf16 %v5986_v23, %v5983_v12 }
 0x2a7   : > { %v2150_v42 = vmax.f32 %v1978_v34, 0.0  ;;  %3212 = vmatmul.bf16.gmra.mxu3 %v2689_v35 }
 0x2a8   : > { %v2396_v46 = vpop.f32.mrf.mxu1  ;;  %v2924_v48 = vpop.f32.mrf.mxu2 }
 0x2a9   : > { %v2925_v50 = vadd.f32 %v5889_v53, %v2924_v48  ;;  %v2223_v51 = vpack.c.bf16 %v2150_v42, %v2149_v39  ;;  %v2397_v6 = vadd.f32 %v5756_v63, %v2396_v46 }
 0x2aa   : > { %v3173_v55 = vpop.f32.mrf.mxu3 }
 0x2ab   : > { %v5996_v56 = vadd.f32 %v3173_v55, %v2925_v50  ;;  %2435 = vmatmul.bf16.gmra.mxu1 %v2223_v51  ;;  %v6007_v31 = vadd.f32 %v2397_v6, %v1367_v8 }
 0x2ac   : > { %v1980_v4 = vpop.f32.mrf.mxu0 }
 0x2ad   : > { %8285 = vst [vmem:[#allocation38_spill] sm:$0xff] %v6007_v31  ;;  %v1981_v35 = vadd.f32 %v5666_v38, %v1980_v4 }
 0x2af   : > { %4721 = vmatmul.msk.bf16.gmra.mxu0 %vm1711_vm0, %v4878_v61  ;;  %v2151_v61 = vmax.f32 %v1981_v35, 0.0  ;;  %v1369_v35 = vld [vmem:[%s5761_s23 + $0xf0] sm:$0xff] }
 0x2b0   : > { %v2398_v11 = vpop.f32.mrf.mxu1  ;;  %v2926_v13 = vpop.f32.mrf.mxu2 }
 0x2b1   : > { %v2399_v16 = vadd.f32 %v5756_v63, %v2398_v11  ;;  %v2927_v26 = vadd.f32 %v5889_v53, %v2926_v13 }
 0x2b2   : > { %v3175_v34 = vpop.f32.mrf.mxu3 }
 0x2b3   : > { %v6010_v39 = vadd.f32 %v2399_v16, %v1368_v9  ;;  %v2690_v42 = vpack.c.bf16 %v2399_v16, %v2397_v6  ;;  %v6012_v48 = vadd.f32 %v3175_v34, %v2927_v26  ;;  %v4879_v26 = vld [vmem:[%s5620_s17 + $0x100] sm:$0xff] }
 0x2b4   : > { %v1982_v46 = vpop.f32.mrf.mxu0 }
 0x2b5   : > { %8286 = vst [vmem:[#allocation39_spill] sm:$0xff] %v6010_v39  ;;  %v1983_v51 = vadd.f32 %v5666_v38, %v1982_v46  ;;  %2968 = vmatmul.bf16.gmra.mxu2 %v2690_v42  ;;  %v2691_v55 = vpack.c.bf16 %v6010_v39, %v6007_v31  ;;  %v1370_v46 = vld [vmem:[%s5761_s23 + $0xf8] sm:$0xff] }
 0x2b7   : > { %v2152_v4 = vmax.f32 %v1983_v51, 0.0  ;;  %3217 = vmatmul.bf16.gmra.mxu3 %v2691_v55 }
 0x2b8   : > { %v2401_v8 = vpop.f32.mrf.mxu1  ;;  %v2929_v6 = vpop.f32.mrf.mxu2 }
 0x2b9   : > { %v2930_v9 = vadd.f32 %v5889_v53, %v2929_v6  ;;  %v2224_v11 = vpack.c.bf16 %v2152_v4, %v2151_v61  ;;  %v2402_v42 = vadd.f32 %v5756_v63, %v2401_v8 }
 0x2ba   : > { %v3178_v13 = vpop.f32.mrf.mxu3 }
 0x2bb   : > { %v6020_v16 = vadd.f32 %v3178_v13, %v2930_v9  ;;  %2440 = vmatmul.bf16.gmra.mxu1 %v2224_v11  ;;  %v6031_v4 = vadd.f32 %v2402_v42, %v1369_v35  ;;  %v6036_v11 = vld [vmem:[%s8056_s4] ss:$0 sm:$0xff] }
 0x2bc   : > { %v1985_v38 = vpop.f32.mrf.mxu0 }
 0x2bd   : > { %8287 = vst [vmem:[#allocation40_spill] sm:$0xff] %v6020_v16  ;;  %v1986_v8 = vadd.f32 %v6036_v11, %v1985_v38 }
 0x2be   : > { %8288 = vst [vmem:[#allocation41_spill] sm:$0xff] %v6031_v4 }
 0x2bf   : > { %4722 = vmatmul.msk.bf16.gmra.mxu0 %vm1711_vm0, %v4879_v26  ;;  %v2153_v5 = vmax.f32 %v1986_v8, 0.0  ;;  %v1371_v8 = vld [vmem:[%s5761_s23 + $0x100] sm:$0xff] }
 0x2c0   : > { %v2403_v51 = vpop.f32.mrf.mxu1  ;;  %v2931_v55 = vpop.f32.mrf.mxu2 }
 0x2c1   : > { %v2404_v6 = vadd.f32 %v5756_v63, %v2403_v51  ;;  %v2932_v61 = vadd.f32 %v5889_v53, %v2931_v55  ;;  %v4880_v51 = vld [vmem:[%s5620_s17 + $0x108] sm:$0xff] }
 0x2c2   : > { %v3180_v9 = vpop.f32.mrf.mxu3 }
 0x2c3   : > { %v6039_v13 = vadd.f32 %v2404_v6, %v1370_v46  ;;  %v2692_v26 = vpack.c.bf16 %v2404_v6, %v2402_v42  ;;  %v6041_v34 = vadd.f32 %v3180_v9, %v2932_v61 }
 0x2c4   : > { %v1987_v50 = vpop.f32.mrf.mxu0 }
 0x2c5   : > { %8289 = vst [vmem:[#allocation42_spill] sm:$0xff] %v6039_v13  ;;  %v1988_v35 = vadd.f32 %v6036_v11, %v1987_v50  ;;  %2973 = vmatmul.bf16.gmra.mxu2 %v2692_v26  ;;  %v2693_v55 = vpack.c.bf16 %v6039_v13, %v6031_v4 }
 0x2c6   : > { %8290 = vst [vmem:[#allocation43_spill] sm:$0xff] %v6041_v34 }
 0x2c7   : > { %v2154_v38 = vmax.f32 %v1988_v35, 0.0  ;;  %3222 = vmatmul.bf16.gmra.mxu3 %v2693_v55  ;;  %v1372_v35 = vld [vmem:[%s5761_s23 + $0x108] sm:$0xff] }
 0x2c8   : > { %v2406_v46 = vpop.f32.mrf.mxu1  ;;  %v2934_v42 = vpop.f32.mrf.mxu2 }
 0x2c9   : > { %v2935_v6 = vadd.f32 %v5889_v53, %v2934_v42  ;;  %v2225_v61 = vpack.c.bf16 %v2154_v38, %v2153_v5  ;;  %v2407_v58 = vadd.f32 %v5756_v63, %v2406_v46 }
 0x2ca   : > { %v3183_v9 = vpop.f32.mrf.mxu3 }
 0x2cb   : > { %v6049_v32 = vadd.f32 %v3183_v9, %v2935_v6  ;;  %2445 = vmatmul.bf16.gmra.mxu1 %v2225_v61  ;;  %v6060_v38 = vadd.f32 %v2407_v58, %v1371_v8 }
 0x2cc   : > { %v1990_v50 = vpop.f32.mrf.mxu0 }
 0x2cd   : > { %8291 = vst [vmem:[#allocation44_spill] sm:$0xff] %v6049_v32  ;;  %v1991_v61 = vadd.f32 %v6036_v11, %v1990_v50 }
 0x2ce   : > { %8292 = vst [vmem:[#allocation45_spill] sm:$0xff] %v6060_v38 }
 0x2cf   : > { %4723 = vmatmul.msk.bf16.gmra.mxu0 %vm1711_vm0, %v4880_v51  ;;  %v2155_v8 = vmax.f32 %v1991_v61, 0.0  ;;  %v4881_v51 = vld [vmem:[%s5620_s17 + $0x110] sm:$0xff] }
 0x2d0   : > { %v2408_v55 = vpop.f32.mrf.mxu1  ;;  %v2936_v13 = vpop.f32.mrf.mxu2  ;;  %v1373_v61 = vld [vmem:[%s5761_s23 + $0x110] sm:$0xff] }
 0x2d1   : > { %v2409_v42 = vadd.f32 %v5756_v63, %v2408_v55  ;;  %v2937_v5 = vadd.f32 %v5889_v53, %v2936_v13 }
 0x2d2   : > { %v3185_v6 = vpop.f32.mrf.mxu3 }
 0x2d3   : > { %v6063_v9 = vadd.f32 %v2409_v42, %v1372_v35  ;;  %v2694_v26 = vpack.c.bf16 %v2409_v42, %v2407_v58  ;;  %v6065_v41 = vadd.f32 %v3185_v6, %v2937_v5 }
 0x2d4   : > { %v1992_v46 = vpop.f32.mrf.mxu0 }
 0x2d5   : > { %8293 = vst [vmem:[#allocation46_spill] sm:$0xff] %v6063_v9  ;;  %v1993_v24 = vadd.f32 %v6036_v11, %v1992_v46  ;;  %2978 = vmatmul.bf16.gmra.mxu2 %v2694_v26  ;;  %v2695_v13 = vpack.c.bf16 %v6063_v9, %v6060_v38  ;;  %v8295_v26 = vmax.f32 %v5892_v0, %v5972_v52  ;;  %v1401_v9 = vld [vmem:[%s5761_s23 + $0x1f0] sm:$0xff] }
 0x2d6   : > { %8294 = vst [vmem:[#allocation47_spill] sm:$0xff] %v6065_v41 }
 0x2d7   : > { %v2156_v50 = vmax.f32 %v1993_v24, 0.0  ;;  %3227 = vmatmul.bf16.gmra.mxu3 %v2695_v13  ;;  %v1374_v13 = vld [vmem:[%s5761_s23 + $0x118] sm:$0xff] }
 0x2d8   : > { %v2411_v35 = vpop.f32.mrf.mxu1  ;;  %v2939_v58 = vpop.f32.mrf.mxu2 }
 0x2d9   : > { %v2940_v55 = vadd.f32 %v5889_v53, %v2939_v58  ;;  %v2226_v42 = vpack.c.bf16 %v2156_v50, %v2155_v8  ;;  %v2412_v24 = vadd.f32 %v5756_v63, %v2411_v35 }
 0x2da   : > { %v3188_v5 = vpop.f32.mrf.mxu3 }
 0x2db   : > { %v6073_v6 = vadd.f32 %v3188_v5, %v2940_v55  ;;  %2450 = vmatmul.bf16.gmra.mxu1 %v2226_v42  ;;  %v6088_v42 = vadd.f32 %v2412_v24, %v1373_v61 }
 0x2dc   : > { %v1995_v46 = vpop.f32.mrf.mxu0 }
 0x2dd   : > { %v6080_v2 = vmax.f32 %v8295_v26, %v6073_v6  ;;  %8296 = vst [vmem:[#allocation48_spill] sm:$0xff] %v6088_v42  ;;  %v1996_v4 = vadd.f32 %v6036_v11, %v1995_v46 }
 0x2df   : > { %4724 = vmatmul.msk.bf16.gmra.mxu0 %vm1711_vm0, %v4881_v51  ;;  %v8298_v51 = vmax.f32 %v5904_v17, %v5988_v29  ;;  %v2157_v61 = vmax.f32 %v1996_v4, 0.0 }
 0x2e0   : > { %v2413_v58 = vpop.f32.mrf.mxu1  ;;  %v2941_v8 = vpop.f32.mrf.mxu2 }
 0x2e1   : > { %v2414_v50 = vadd.f32 %v5756_v63, %v2413_v58  ;;  %v2942_v55 = vadd.f32 %v5889_v53, %v2941_v8 }
 0x2e2   : > { %v3190_v5 = vpop.f32.mrf.mxu3 }
 0x2e3   : > { %v6091_v33 = vadd.f32 %v2414_v50, %v1374_v13  ;;  %v2696_v26 = vpack.c.bf16 %v2414_v50, %v2412_v24  ;;  %v6093_v20 = vadd.f32 %v3190_v5, %v2942_v55 }
 0x2e4   : > { %v1997_v35 = vpop.f32.mrf.mxu0 }
 0x2e5   : > { %8297 = vst [vmem:[#allocation49_spill] sm:$0xff] %v6091_v33  ;;  %v6099_v62 = vmax.f32 %v8298_v51, %v6093_v20  ;;  %v1998_v58 = vadd.f32 %v6036_v11, %v1997_v35  ;;  %2983 = vmatmul.bf16.gmra.mxu2 %v2696_v26  ;;  %v2697_v46 = vpack.c.bf16 %v6091_v33, %v6088_v42  ;;  %v4882_v51 = vld [vmem:[%s5620_s17 + $0x118] sm:$0xff] }
 0x2e6   : > { %v8299_v26 = vmax.f32 %v5912_v36, %v5996_v56 }
 0x2e7   : > { %v2158_v24 = vmax.f32 %v1998_v58, 0.0  ;;  %3232 = vmatmul.bf16.gmra.mxu3 %v2697_v46  ;;  %v1375_v58 = vld [vmem:[%s5761_s23 + $0x120] sm:$0xff]  ;;  %v1376_v46 = vld [vmem:[%s5761_s23 + $0x128] sm:$0xff] }
 0x2e8   : > { %v2416_v13 = vpop.f32.mrf.mxu1  ;;  %v2944_v8 = vpop.f32.mrf.mxu2 }
 0x2e9   : > { %v2945_v50 = vadd.f32 %v5889_v53, %v2944_v8  ;;  %v2227_v55 = vpack.c.bf16 %v2158_v24, %v2157_v61  ;;  %v2417_v4 = vadd.f32 %v5756_v63, %v2416_v13 }
 0x2ea   : > { %v3193_v5 = vpop.f32.mrf.mxu3 }
 0x2eb   : > { %v6105_v39 = vadd.f32 %v3193_v5, %v2945_v50  ;;  %2455 = vmatmul.bf16.gmra.mxu1 %v2227_v55  ;;  %v6120_v55 = vadd.f32 %v2417_v4, %v1375_v58 }
 0x2ec   : > { %v2000_v35 = vpop.f32.mrf.mxu0 }
 0x2ed   : > { %v6112_v59 = vmax.f32 %v8299_v26, %v6105_v39  ;;  %8300 = vst [vmem:[#allocation50_spill] sm:$0xff] %v6120_v55  ;;  %v2001_v1 = vadd.f32 %v6036_v11, %v2000_v35 }
 0x2ef   : > { %4725 = vmatmul.msk.bf16.gmra.mxu0 %vm1711_vm0, %v4882_v51  ;;  %v8302_v51 = vmax.f32 %v5924_v57, %v6012_v48  ;;  %v2159_v35 = vmax.f32 %v2001_v1, 0.0  ;;  %v6149_v1 = vld [vmem:[%s8058_s6] ss:$0 sm:$0xff] }
 0x2f0   : > { %v2418_v8 = vpop.f32.mrf.mxu1  ;;  %v2946_v61 = vpop.f32.mrf.mxu2 }
 0x2f1   : > { %v2419_v24 = vadd.f32 %v5756_v63, %v2418_v8  ;;  %v2947_v50 = vadd.f32 %v5889_v53, %v2946_v61 }
 0x2f2   : > { %v3195_v5 = vpop.f32.mrf.mxu3 }
 0x2f3   : > { %v6123_v47 = vadd.f32 %v2419_v24, %v1376_v46  ;;  %v2698_v26 = vpack.c.bf16 %v2419_v24, %v2417_v4  ;;  %v6125_v31 = vadd.f32 %v3195_v5, %v2947_v50 }
 0x2f4   : > { %v2002_v13 = vpop.f32.mrf.mxu0 }
 0x2f5   : > { %8301 = vst [vmem:[#allocation51_spill] sm:$0xff] %v6123_v47  ;;  %v6131_v54 = vmax.f32 %v8302_v51, %v6125_v31  ;;  %v2003_v63 = vadd.f32 %v6036_v11, %v2002_v13  ;;  %2988 = vmatmul.bf16.gmra.mxu2 %v2698_v26  ;;  %v2699_v58 = vpack.c.bf16 %v6123_v47, %v6120_v55  ;;  %v4883_v51 = vld [vmem:[%s5620_s17 + $0x120] sm:$0xff] }
 0x2f6   : > { %v8304_v26 = vmax.f32 %v5932_v15, %v6020_v16 }
 0x2f7   : > { %v2160_v46 = vmax.f32 %v2003_v63, 0.0  ;;  %3237 = vmatmul.bf16.gmra.mxu3 %v2699_v58  ;;  %v1377_v58 = vld [vmem:[%s5761_s23 + $0x130] sm:$0xff] }
 0x2f8   : > { %v2421_v4 = vpop.f32.mrf.mxu1  ;;  %v2949_v8 = vpop.f32.mrf.mxu2 }
 0x2f9   : > { %v2950_v61 = vadd.f32 %v5889_v53, %v2949_v8  ;;  %v2228_v24 = vpack.c.bf16 %v2160_v46, %v2159_v35  ;;  %v2422_v63 = vadd.f32 %v6149_v1, %v2421_v4  ;;  %v1378_v35 = vld [vmem:[%s5761_s23 + $0x138] sm:$0xff] }
 0x2fa   : > { %v3198_v50 = vpop.f32.mrf.mxu3 }
 0x2fb   : > { %v6137_v5 = vadd.f32 %v3198_v50, %v2950_v61  ;;  %2460 = vmatmul.bf16.gmra.mxu1 %v2228_v24  ;;  %v6157_v50 = vadd.f32 %v2422_v63, %v1377_v58 }
 0x2fc   : > { %v2005_v13 = vpop.f32.mrf.mxu0 }
 0x2fd   : > { %8303 = vst [vmem:[#allocation52_spill] sm:$0xff] %v6137_v5  ;;  %v6144_v47 = vmax.f32 %v8304_v26, %v6137_v5  ;;  %v2006_v55 = vadd.f32 %v6036_v11, %v2005_v13 }
 0x2fe   : > { %8305 = vst [vmem:[#allocation53_spill] sm:$0xff] %v6157_v50 }
 0x2ff   : > { %4726 = vmatmul.msk.bf16.gmra.mxu0 %vm1711_vm0, %v4883_v51  ;;  %v8308_v51 = vmax.f32 %v5944_v37, %v6041_v34  ;;  %v2161_v58 = vmax.f32 %v2006_v55, 0.0 }
 0x300   : > { %v2423_v46 = vpop.f32.mrf.mxu1  ;;  %v2951_v8 = vpop.f32.mrf.mxu2 }
 0x301   : > { %v2424_v61 = vadd.f32 %v6149_v1, %v2423_v46  ;;  %v2952_v24 = vadd.f32 %v5889_v53, %v2951_v8 }
 0x302   : > { %v3200_v26 = vpop.f32.mrf.mxu3 }
 0x303   : > { %v6160_v60 = vadd.f32 %v2424_v61, %v1378_v35  ;;  %v2700_v44 = vpack.c.bf16 %v2424_v61, %v2422_v63  ;;  %v6162_v33 = vadd.f32 %v3200_v26, %v2952_v24 }
 0x304   : > { %v2007_v4 = vpop.f32.mrf.mxu0 }
 0x305   : > { %8306 = vst [vmem:[#allocation54_spill] sm:$0xff] %v6160_v60  ;;  %v6168_v23 = vmax.f32 %v8308_v51, %v6162_v33  ;;  %v2008_v46 = vadd.f32 %v6036_v11, %v2007_v4  ;;  %2993 = vmatmul.bf16.gmra.mxu2 %v2700_v44  ;;  %v2701_v13 = vpack.c.bf16 %v6160_v60, %v6157_v50  ;;  %v4884_v51 = vld [vmem:[%s5620_s17 + $0x128] sm:$0xff] }
 0x306   : > { %8307 = vst [vmem:[#allocation55_spill] sm:$0xff] %v6162_v33  ;;  %v8310_v44 = vmax.f32 %v5952_v3, %v6049_v32 }
 0x307   : > { %v2162_v63 = vmax.f32 %v2008_v46, 0.0  ;;  %3242 = vmatmul.bf16.gmra.mxu3 %v2701_v13  ;;  %v1379_v46 = vld [vmem:[%s5761_s23 + $0x140] sm:$0xff]  ;;  %v1380_v13 = vld [vmem:[%s5761_s23 + $0x148] sm:$0xff] }
 0x308   : > { %v2426_v35 = vpop.f32.mrf.mxu1  ;;  %v2954_v8 = vpop.f32.mrf.mxu2 }
 0x309   : > { %v2955_v61 = vadd.f32 %v5889_v53, %v2954_v8  ;;  %v2229_v24 = vpack.c.bf16 %v2162_v63, %v2161_v58  ;;  %v2427_v55 = vadd.f32 %v6149_v1, %v2426_v35 }
 0x30a   : > { %v3203_v26 = vpop.f32.mrf.mxu3 }
 0x30b   : > { %v6174_v21 = vadd.f32 %v3203_v26, %v2955_v61  ;;  %2465 = vmatmul.bf16.gmra.mxu1 %v2229_v24  ;;  %v6189_v24 = vadd.f32 %v2427_v55, %v1379_v46 }
 0x30c   : > { %v2010_v4 = vpop.f32.mrf.mxu0 }
 0x30d   : > { %8309 = vst [vmem:[#allocation56_spill] sm:$0xff] %v6174_v21  ;;  %v6181_v60 = vmax.f32 %v8310_v44, %v6174_v21  ;;  %v2011_v50 = vadd.f32 %v6036_v11, %v2010_v4 }
 0x30e   : > { %8311 = vst [vmem:[#allocation57_spill] sm:$0xff] %v6189_v24 }
 0x30f   : > { %4727 = vmatmul.msk.bf16.gmra.mxu0 %vm1711_vm0, %v4884_v51  ;;  %v8314_v51 = vmax.f32 %v5966_v30, %v6065_v41  ;;  %v2163_v46 = vmax.f32 %v2011_v50, 0.0  ;;  %v1381_v50 = vld [vmem:[%s5761_s23 + $0x150] sm:$0xff] }
 0x310   : > { %v2428_v8 = vpop.f32.mrf.mxu1  ;;  %v2956_v58 = vpop.f32.mrf.mxu2 }
 0x311   : > { %v2429_v63 = vadd.f32 %v6149_v1, %v2428_v8  ;;  %v2957_v61 = vadd.f32 %v5889_v53, %v2956_v58 }
 0x312   : > { %v3205_v26 = vpop.f32.mrf.mxu3 }
 0x313   : > { %v6192_v32 = vadd.f32 %v2429_v63, %v1380_v13  ;;  %v2702_v44 = vpack.c.bf16 %v2429_v63, %v2427_v55  ;;  %v6194_v21 = vadd.f32 %v3205_v26, %v2957_v61 }
 0x314   : > { %v2012_v35 = vpop.f32.mrf.mxu0 }
 0x315   : > { %8312 = vst [vmem:[#allocation58_spill] sm:$0xff] %v6192_v32  ;;  %v6200_v3 = vmax.f32 %v8314_v51, %v6194_v21  ;;  %v2013_v8 = vadd.f32 %v6036_v11, %v2012_v35  ;;  %2998 = vmatmul.bf16.gmra.mxu2 %v2702_v44  ;;  %v2703_v4 = vpack.c.bf16 %v6192_v32, %v6189_v24  ;;  %v4885_v51 = vld [vmem:[%s5620_s17 + $0x130] sm:$0xff] }
 0x316   : > { %8313 = vst [vmem:[#allocation59_spill] sm:$0xff] %v6194_v21 }
 0x317   : > { %v2164_v55 = vmax.f32 %v2013_v8, 0.0  ;;  %3247 = vmatmul.bf16.gmra.mxu3 %v2703_v4  ;;  %v1382_v8 = vld [vmem:[%s5761_s23 + $0x158] sm:$0xff] }
 0x318   : > { %v2431_v13 = vpop.f32.mrf.mxu1  ;;  %v2959_v58 = vpop.f32.mrf.mxu2 }
 0x319   : > { %v2960_v63 = vadd.f32 %v5889_v53, %v2959_v58  ;;  %v2230_v61 = vpack.c.bf16 %v2164_v55, %v2163_v46  ;;  %v2432_v21 = vadd.f32 %v6149_v1, %v2431_v13 }
 0x31a   : > { %v3208_v26 = vpop.f32.mrf.mxu3 }
 0x31b   : > { %v6206_v41 = vadd.f32 %v3208_v26, %v2960_v63  ;;  %2470 = vmatmul.bf16.gmra.mxu1 %v2230_v61  ;;  %v6217_v55 = vadd.f32 %v2432_v21, %v1381_v50 }
 0x31c   : > { %v2015_v35 = vpop.f32.mrf.mxu0 }
 0x31d   : > { %8315 = vst [vmem:[#allocation60_spill] sm:$0xff] %v6217_v55  ;;  %v2016_v61 = vadd.f32 %v6036_v11, %v2015_v35 }
 0x31f   : > { %4728 = vmatmul.msk.bf16.gmra.mxu0 %vm1711_vm0, %v4885_v51  ;;  %v2165_v50 = vmax.f32 %v2016_v61, 0.0  ;;  %v4886_v51 = vld [vmem:[%s5620_s17 + $0x138] sm:$0xff]  ;;  %v1383_v61 = vld [vmem:[%s5761_s23 + $0x160] sm:$0xff] }
 0x320   : > { %v2433_v4 = vpop.f32.mrf.mxu1  ;;  %v2961_v30 = vpop.f32.mrf.mxu2 }
 0x321   : > { %v2434_v58 = vadd.f32 %v6149_v1, %v2433_v4  ;;  %v2962_v46 = vadd.f32 %v5889_v53, %v2961_v30 }
 0x322   : > { %v3210_v63 = vpop.f32.mrf.mxu3 }
 0x323   : > { %v6220_v26 = vadd.f32 %v2434_v58, %v1382_v8  ;;  %v2704_v44 = vpack.c.bf16 %v2434_v58, %v2432_v21  ;;  %v6222_v43 = vadd.f32 %v3210_v63, %v2962_v46 }
 0x324   : > { %v2017_v13 = vpop.f32.mrf.mxu0 }
 0x325   : > { %8316 = vst [vmem:[#allocation61_spill] sm:$0xff] %v6220_v26  ;;  %v2018_v28 = vadd.f32 %v6036_v11, %v2017_v13  ;;  %3003 = vmatmul.bf16.gmra.mxu2 %v2704_v44  ;;  %v2705_v30 = vpack.c.bf16 %v6220_v26, %v6217_v55 }
 0x327   : > { %v2166_v35 = vmax.f32 %v2018_v28, 0.0  ;;  %3252 = vmatmul.bf16.gmra.mxu3 %v2705_v30  ;;  %v1384_v28 = vld [vmem:[%s5761_s23 + $0x168] sm:$0xff] }
 0x328   : > { %v2436_v8 = vpop.f32.mrf.mxu1  ;;  %v2964_v21 = vpop.f32.mrf.mxu2 }
 0x329   : > { %v2965_v4 = vadd.f32 %v5889_v53, %v2964_v21  ;;  %v2231_v58 = vpack.c.bf16 %v2166_v35, %v2165_v50  ;;  %v2437_v26 = vadd.f32 %v6149_v1, %v2436_v8 }
 0x32a   : > { %v3213_v46 = vpop.f32.mrf.mxu3 }
 0x32b   : > { %v6230_v63 = vadd.f32 %v3213_v46, %v2965_v4  ;;  %2475 = vmatmul.bf16.gmra.mxu1 %v2231_v58  ;;  %v6241_v35 = vadd.f32 %v2437_v26, %v1383_v61 }
 0x32c   : > { %v2020_v13 = vpop.f32.mrf.mxu0 }
 0x32d   : > { %8317 = vst [vmem:[#allocation62_spill] sm:$0xff] %v6241_v35  ;;  %v2021_v58 = vadd.f32 %v6036_v11, %v2020_v13 }
 0x32f   : > { %4729 = vmatmul.msk.bf16.gmra.mxu0 %vm1711_vm0, %v4886_v51  ;;  %v2167_v61 = vmax.f32 %v2021_v58, 0.0  ;;  %v4887_v51 = vld [vmem:[%s5620_s17 + $0x140] sm:$0xff]  ;;  %v1385_v58 = vld [vmem:[%s5761_s23 + $0x170] sm:$0xff] }
 0x330   : > { %v2438_v30 = vpop.f32.mrf.mxu1  ;;  %v2966_v33 = vpop.f32.mrf.mxu2 }
 0x331   : > { %v2439_v21 = vadd.f32 %v6149_v1, %v2438_v30  ;;  %v2967_v50 = vadd.f32 %v5889_v53, %v2966_v33 }
 0x332   : > { %v3215_v4 = vpop.f32.mrf.mxu3 }
 0x333   : > { %v6244_v46 = vadd.f32 %v2439_v21, %v1384_v28  ;;  %v2706_v44 = vpack.c.bf16 %v2439_v21, %v2437_v26  ;;  %v6246_v34 = vadd.f32 %v3215_v4, %v2967_v50 }
 0x334   : > { %v2022_v8 = vpop.f32.mrf.mxu0 }
 0x335   : > { %8318 = vst [vmem:[#allocation63_spill] sm:$0xff] %v6244_v46  ;;  %v2023_v37 = vadd.f32 %v6036_v11, %v2022_v8  ;;  %3008 = vmatmul.bf16.gmra.mxu2 %v2706_v44  ;;  %v2707_v33 = vpack.c.bf16 %v6244_v46, %v6241_v35 }
 0x337   : > { %v2168_v13 = vmax.f32 %v2023_v37, 0.0  ;;  %3257 = vmatmul.bf16.gmra.mxu3 %v2707_v33  ;;  %v1386_v37 = vld [vmem:[%s5761_s23 + $0x178] sm:$0xff] }
 0x338   : > { %v2441_v28 = vpop.f32.mrf.mxu1  ;;  %v2969_v26 = vpop.f32.mrf.mxu2 }
 0x339   : > { %v2970_v30 = vadd.f32 %v5889_v53, %v2969_v26  ;;  %v2232_v21 = vpack.c.bf16 %v2168_v13, %v2167_v61  ;;  %v2442_v46 = vadd.f32 %v6149_v1, %v2441_v28 }
 0x33a   : > { %v3218_v50 = vpop.f32.mrf.mxu3 }
 0x33b   : > { %v6254_v4 = vadd.f32 %v3218_v50, %v2970_v30  ;;  %2480 = vmatmul.bf16.gmra.mxu1 %v2232_v21  ;;  %v6265_v13 = vadd.f32 %v2442_v46, %v1385_v58 }
 0x33c   : > { %v2025_v8 = vpop.f32.mrf.mxu0 }
 0x33d   : > { %8319 = vst [vmem:[#allocation64_spill] sm:$0xff] %v6254_v4  ;;  %v2026_v21 = vadd.f32 %v6036_v11, %v2025_v8 }
 0x33e   : > { %8320 = vst [vmem:[#allocation65_spill] sm:$0xff] %v6265_v13 }
 0x33f   : > { %4730 = vmatmul.msk.bf16.gmra.mxu0 %vm1711_vm0, %v4887_v51  ;;  %v2169_v58 = vmax.f32 %v2026_v21, 0.0  ;;  %v4888_v51 = vld [vmem:[%s5620_s17 + $0x148] sm:$0xff]  ;;  %v1387_v21 = vld [vmem:[%s5761_s23 + $0x180] sm:$0xff] }
 0x340   : > { %v2443_v33 = vpop.f32.mrf.mxu1  ;;  %v2971_v35 = vpop.f32.mrf.mxu2 }
 0x341   : > { %v2444_v26 = vadd.f32 %v6149_v1, %v2443_v33  ;;  %v2972_v61 = vadd.f32 %v5889_v53, %v2971_v35 }
 0x342   : > { %v3220_v30 = vpop.f32.mrf.mxu3 }
 0x343   : > { %v6268_v50 = vadd.f32 %v2444_v26, %v1386_v37  ;;  %v2708_v44 = vpack.c.bf16 %v2444_v26, %v2442_v46  ;;  %v6270_v55 = vadd.f32 %v3220_v30, %v2972_v61 }
 0x344   : > { %v2027_v28 = vpop.f32.mrf.mxu0 }
 0x345   : > { %8321 = vst [vmem:[#allocation66_spill] sm:$0xff] %v6268_v50  ;;  %v2028_v42 = vadd.f32 %v6036_v11, %v2027_v28  ;;  %3013 = vmatmul.bf16.gmra.mxu2 %v2708_v44  ;;  %v2709_v35 = vpack.c.bf16 %v6268_v50, %v6265_v13 }
 0x346   : > { %8322 = vst [vmem:[#allocation67_spill] sm:$0xff] %v6270_v55 }
 0x347   : > { %v2170_v8 = vmax.f32 %v2028_v42, 0.0  ;;  %3262 = vmatmul.bf16.gmra.mxu3 %v2709_v35  ;;  %v1388_v42 = vld [vmem:[%s5761_s23 + $0x188] sm:$0xff] }
 0x348   : > { %v2446_v37 = vpop.f32.mrf.mxu1  ;;  %v2974_v46 = vpop.f32.mrf.mxu2 }
 0x349   : > { %v2975_v33 = vadd.f32 %v5889_v53, %v2974_v46  ;;  %v2233_v26 = vpack.c.bf16 %v2170_v8, %v2169_v58  ;;  %v2447_v50 = vadd.f32 %v6149_v1, %v2446_v37 }
 0x34a   : > { %v3223_v61 = vpop.f32.mrf.mxu3 }
 0x34b   : > { %v6278_v30 = vadd.f32 %v3223_v61, %v2975_v33  ;;  %2485 = vmatmul.bf16.gmra.mxu1 %v2233_v26  ;;  %v6289_v8 = vadd.f32 %v2447_v50, %v1387_v21 }
 0x34c   : > { %v2030_v28 = vpop.f32.mrf.mxu0 }
 0x34d   : > { %8323 = vst [vmem:[#allocation68_spill] sm:$0xff] %v6278_v30  ;;  %v2031_v26 = vadd.f32 %v6036_v11, %v2030_v28 }
 0x34e   : > { %8324 = vst [vmem:[#allocation69_spill] sm:$0xff] %v6289_v8 }
 0x34f   : > { %4731 = vmatmul.msk.bf16.gmra.mxu0 %vm1711_vm0, %v4888_v51  ;;  %v2171_v21 = vmax.f32 %v2031_v26, 0.0  ;;  %v4889_v51 = vld [vmem:[%s5620_s17 + $0x150] sm:$0xff] }
 0x350   : > { %v2448_v35 = vpop.f32.mrf.mxu1  ;;  %v2976_v13 = vpop.f32.mrf.mxu2  ;;  %v1389_v26 = vld [vmem:[%s5761_s23 + $0x190] sm:$0xff] }
 0x351   : > { %v2449_v46 = vadd.f32 %v6149_v1, %v2448_v35  ;;  %v2977_v58 = vadd.f32 %v5889_v53, %v2976_v13 }
 0x352   : > { %v3225_v33 = vpop.f32.mrf.mxu3 }
 0x353   : > { %v6292_v61 = vadd.f32 %v2449_v46, %v1388_v42  ;;  %v2710_v44 = vpack.c.bf16 %v2449_v46, %v2447_v50  ;;  %v6294_v12 = vadd.f32 %v3225_v33, %v2977_v58 }
 0x354   : > { %v2032_v37 = vpop.f32.mrf.mxu0 }
 0x355   : > { %8325 = vst [vmem:[#allocation70_spill] sm:$0xff] %v6292_v61  ;;  %v2033_v14 = vadd.f32 %v6036_v11, %v2032_v37  ;;  %3018 = vmatmul.bf16.gmra.mxu2 %v2710_v44  ;;  %v2711_v13 = vpack.c.bf16 %v6292_v61, %v6289_v8  ;;  %v8327_v44 = vmax.f32 %v6080_v2, %v6206_v41 }
 0x356   : > { %8326 = vst [vmem:[#allocation71_spill] sm:$0xff] %v6294_v12 }
 0x357   : > { %v2172_v28 = vmax.f32 %v2033_v14, 0.0  ;;  %3267 = vmatmul.bf16.gmra.mxu3 %v2711_v13  ;;  %v1390_v13 = vld [vmem:[%s5761_s23 + $0x198] sm:$0xff] }
 0x358   : > { %v2451_v42 = vpop.f32.mrf.mxu1  ;;  %v2979_v50 = vpop.f32.mrf.mxu2 }
 0x359   : > { %v2980_v35 = vadd.f32 %v5889_v53, %v2979_v50  ;;  %v2234_v46 = vpack.c.bf16 %v2172_v28, %v2171_v21  ;;  %v2452_v14 = vadd.f32 %v6149_v1, %v2451_v42  ;;  %v6319_v50 = vld [vmem:[%s8060_s8] ss:$0 sm:$0xff] }
 0x35a   : > { %v3228_v58 = vpop.f32.mrf.mxu3 }
 0x35b   : > { %v6302_v33 = vadd.f32 %v3228_v58, %v2980_v35  ;;  %2490 = vmatmul.bf16.gmra.mxu1 %v2234_v46  ;;  %v6322_v2 = vadd.f32 %v2452_v14, %v1389_v26 }
 0x35c   : > { %v2035_v37 = vpop.f32.mrf.mxu0 }
 0x35d   : > { %v6309_v40 = vmax.f32 %v8327_v44, %v6302_v33  ;;  %8328 = vst [vmem:[#allocation72_spill] sm:$0xff] %v6322_v2  ;;  %v2036_v42 = vadd.f32 %v6036_v11, %v2035_v37 }
 0x35f   : > { %4732 = vmatmul.msk.bf16.gmra.mxu0 %vm1711_vm0, %v4889_v51  ;;  %v2173_v26 = vmax.f32 %v2036_v42, 0.0 }
 0x360   : > { %v2453_v53 = vpop.f32.mrf.mxu1  ;;  %v2981_v21 = vpop.f32.mrf.mxu2 }
 0x361   : > { %v2454_v28 = vadd.f32 %v6149_v1, %v2453_v53  ;;  %v2982_v35 = vadd.f32 %v6319_v50, %v2981_v21  ;;  %v8330_v53 = vmax.f32 %v6099_v62, %v6222_v43 }
 0x362   : > { %v3230_v46 = vpop.f32.mrf.mxu3 }
 0x363   : > { %v6325_v58 = vadd.f32 %v2454_v28, %v1390_v13  ;;  %v2712_v51 = vpack.c.bf16 %v2454_v28, %v2452_v14  ;;  %v6327_v44 = vadd.f32 %v3230_v46, %v2982_v35 }
 0x364   : > { %v2037_v25 = vpop.f32.mrf.mxu0 }
 0x365   : > { %8329 = vst [vmem:[#allocation73_spill] sm:$0xff] %v6325_v58  ;;  %v6333_v5 = vmax.f32 %v8330_v53, %v6327_v44  ;;  %v2038_v21 = vadd.f32 %v6036_v11, %v2037_v25  ;;  %3023 = vmatmul.bf16.gmra.mxu2 %v2712_v51  ;;  %v2713_v37 = vpack.c.bf16 %v6325_v58, %v6322_v2  ;;  %v4890_v53 = vld [vmem:[%s5620_s17 + $0x158] sm:$0xff] }
 0x366   : > { %v8331_v51 = vmax.f32 %v6112_v59, %v6230_v63 }
 0x367   : > { %v2174_v14 = vmax.f32 %v2038_v21, 0.0  ;;  %3272 = vmatmul.bf16.gmra.mxu3 %v2713_v37  ;;  %v1391_v21 = vld [vmem:[%s5761_s23 + $0x1a0] sm:$0xff]  ;;  %v1392_v37 = vld [vmem:[%s5761_s23 + $0x1a8] sm:$0xff] }
 0x368   : > { %v2456_v13 = vpop.f32.mrf.mxu1  ;;  %v2984_v28 = vpop.f32.mrf.mxu2 }
 0x369   : > { %v2985_v35 = vadd.f32 %v6319_v50, %v2984_v28  ;;  %v2235_v46 = vpack.c.bf16 %v2174_v14, %v2173_v26  ;;  %v2457_v42 = vadd.f32 %v6149_v1, %v2456_v13 }
 0x36a   : > { %v3233_v16 = vpop.f32.mrf.mxu3 }
 0x36b   : > { %v6339_v62 = vadd.f32 %v3233_v16, %v2985_v35  ;;  %2495 = vmatmul.bf16.gmra.mxu1 %v2235_v46  ;;  %v6354_v35 = vadd.f32 %v2457_v42, %v1391_v21 }
 0x36c   : > { %v2040_v25 = vpop.f32.mrf.mxu0 }
 0x36d   : > { %v6346_v58 = vmax.f32 %v8331_v51, %v6339_v62  ;;  %8332 = vst [vmem:[#allocation74_spill] sm:$0xff] %v6354_v35  ;;  %v2041_v2 = vadd.f32 %v6036_v11, %v2040_v25 }
 0x36f   : > { %4733 = vmatmul.msk.bf16.gmra.mxu0 %vm1711_vm0, %v4890_v53  ;;  %v8334_v53 = vmax.f32 %v6131_v54, %v6246_v34  ;;  %v2175_v21 = vmax.f32 %v2041_v2, 0.0 }
 0x370   : > { %v2458_v28 = vpop.f32.mrf.mxu1  ;;  %v2986_v26 = vpop.f32.mrf.mxu2 }
 0x371   : > { %v2459_v16 = vadd.f32 %v6149_v1, %v2458_v28  ;;  %v2987_v14 = vadd.f32 %v6319_v50, %v2986_v26 }
 0x372   : > { %v3235_v46 = vpop.f32.mrf.mxu3 }
 0x373   : > { %v6357_v59 = vadd.f32 %v2459_v16, %v1392_v37  ;;  %v2714_v51 = vpack.c.bf16 %v2459_v16, %v2457_v42  ;;  %v6359_v15 = vadd.f32 %v3235_v46, %v2987_v14 }
 0x374   : > { %v2042_v13 = vpop.f32.mrf.mxu0 }
 0x375   : > { %8333 = vst [vmem:[#allocation75_spill] sm:$0xff] %v6357_v59  ;;  %v6365_v61 = vmax.f32 %v8334_v53, %v6359_v15  ;;  %v2043_v28 = vadd.f32 %v6036_v11, %v2042_v13  ;;  %3028 = vmatmul.bf16.gmra.mxu2 %v2714_v51  ;;  %v2715_v25 = vpack.c.bf16 %v6357_v59, %v6354_v35  ;;  %v4891_v53 = vld [vmem:[%s5620_s17 + $0x160] sm:$0xff] }
 0x376   : > { %v8336_v51 = vmax.f32 %v6144_v47, %v6254_v4 }
 0x377   : > { %v2176_v42 = vmax.f32 %v2043_v28, 0.0  ;;  %3277 = vmatmul.bf16.gmra.mxu3 %v2715_v25  ;;  %v1393_v28 = vld [vmem:[%s5761_s23 + $0x1b0] sm:$0xff]  ;;  %v1394_v25 = vld [vmem:[%s5761_s23 + $0x1b8] sm:$0xff] }
 0x378   : > { %v2461_v37 = vpop.f32.mrf.mxu1  ;;  %v2989_v26 = vpop.f32.mrf.mxu2 }
 0x379   : > { %v2990_v16 = vadd.f32 %v6319_v50, %v2989_v26  ;;  %v2236_v14 = vpack.c.bf16 %v2176_v42, %v2175_v21  ;;  %v2462_v2 = vadd.f32 %v6149_v1, %v2461_v37 }
 0x37a   : > { %v3238_v46 = vpop.f32.mrf.mxu3 }
 0x37b   : > { %v6371_v54 = vadd.f32 %v3238_v46, %v2990_v16  ;;  %2500 = vmatmul.bf16.gmra.mxu1 %v2236_v14  ;;  %v6386_v14 = vadd.f32 %v2462_v2, %v1393_v28 }
 0x37c   : > { %v2045_v13 = vpop.f32.mrf.mxu0 }
 0x37d   : > { %8335 = vst [vmem:[#allocation76_spill] sm:$0xff] %v6371_v54  ;;  %v6378_v59 = vmax.f32 %v8336_v51, %v6371_v54  ;;  %v2046_v35 = vadd.f32 %v6036_v11, %v2045_v13 }
 0x37e   : > { %8337 = vst [vmem:[#allocation77_spill] sm:$0xff] %v6386_v14 }
 0x37f   : > { %4734 = vmatmul.msk.bf16.gmra.mxu0 %vm1711_vm0, %v4891_v53  ;;  %v8340_v53 = vmax.f32 %v6168_v23, %v6270_v55  ;;  %v2177_v28 = vmax.f32 %v2046_v35, 0.0 }
 0x380   : > { %v2463_v26 = vpop.f32.mrf.mxu1  ;;  %v2991_v21 = vpop.f32.mrf.mxu2 }
 0x381   : > { %v2464_v42 = vadd.f32 %v6149_v1, %v2463_v26  ;;  %v2992_v16 = vadd.f32 %v6319_v50, %v2991_v21 }
 0x382   : > { %v3240_v46 = vpop.f32.mrf.mxu3 }
 0x383   : > { %v6389_v47 = vadd.f32 %v2464_v42, %v1394_v25  ;;  %v2716_v51 = vpack.c.bf16 %v2464_v42, %v2462_v2  ;;  %v6391_v54 = vadd.f32 %v3240_v46, %v2992_v16 }
 0x384   : > { %v2047_v37 = vpop.f32.mrf.mxu0 }
 0x385   : > { %8338 = vst [vmem:[#allocation78_spill] sm:$0xff] %v6389_v47  ;;  %v6397_v4 = vmax.f32 %v8340_v53, %v6391_v54  ;;  %v2048_v26 = vadd.f32 %v6036_v11, %v2047_v37  ;;  %3033 = vmatmul.bf16.gmra.mxu2 %v2716_v51  ;;  %v2717_v13 = vpack.c.bf16 %v6389_v47, %v6386_v14  ;;  %v4892_v53 = vld [vmem:[%s5620_s17 + $0x168] sm:$0xff] }
 0x386   : > { %8339 = vst [vmem:[#allocation79_spill] sm:$0xff] %v6391_v54  ;;  %v8342_v51 = vmax.f32 %v6181_v60, %v6278_v30 }
 0x387   : > { %v2178_v2 = vmax.f32 %v2048_v26, 0.0  ;;  %3282 = vmatmul.bf16.gmra.mxu3 %v2717_v13  ;;  %v1395_v26 = vld [vmem:[%s5761_s23 + $0x1c0] sm:$0xff]  ;;  %v1396_v13 = vld [vmem:[%s5761_s23 + $0x1c8] sm:$0xff] }
 0x388   : > { %v2466_v25 = vpop.f32.mrf.mxu1  ;;  %v2994_v21 = vpop.f32.mrf.mxu2 }
 0x389   : > { %v2237_v42 = vpack.c.bf16 %v2178_v2, %v2177_v28  ;;  %v2995_v16 = vadd.f32 %v6319_v50, %v2994_v21  ;;  %v2467_v35 = vadd.f32 %v6149_v1, %v2466_v25 }
 0x38a   : > { %v3243_v46 = vpop.f32.mrf.mxu3 }
 0x38b   : > { %v6403_v23 = vadd.f32 %v3243_v46, %v2995_v16  ;;  %2505 = vmatmul.bf16.gmra.mxu1 %v2237_v42  ;;  %v6418_v16 = vadd.f32 %v2467_v35, %v1395_v26 }
 0x38c   : > { %v2050_v37 = vpop.f32.mrf.mxu0 }
 0x38d   : > { %8341 = vst [vmem:[#allocation80_spill] sm:$0xff] %v6403_v23  ;;  %v6410_v47 = vmax.f32 %v8342_v51, %v6403_v23  ;;  %v2051_v14 = vadd.f32 %v6036_v11, %v2050_v37 }
 0x38e   : > { %8343 = vst [vmem:[#allocation81_spill] sm:$0xff] %v6418_v16 }
 0x38f   : > { %4735 = vmatmul.msk.bf16.gmra.mxu0 %vm1711_vm0, %v4892_v53  ;;  %v8346_v53 = vmax.f32 %v6200_v3, %v6294_v12  ;;  %v2179_v26 = vmax.f32 %v2051_v14, 0.0  ;;  %v1397_v14 = vld [vmem:[%s5761_s23 + $0x1d0] sm:$0xff] }
 0x390   : > { %v2468_v28 = vpop.f32.mrf.mxu1  ;;  %v2996_v2 = vpop.f32.mrf.mxu2 }
 0x391   : > { %v2469_v21 = vadd.f32 %v6149_v1, %v2468_v28  ;;  %v2997_v42 = vadd.f32 %v6319_v50, %v2996_v2 }
 0x392   : > { %v3245_v46 = vpop.f32.mrf.mxu3 }
 0x393   : > { %v6421_v60 = vadd.f32 %v2469_v21, %v1396_v13  ;;  %v2718_v51 = vpack.c.bf16 %v2469_v21, %v2467_v35  ;;  %v6423_v23 = vadd.f32 %v3245_v46, %v2997_v42 }
 0x394   : > { %v2052_v25 = vpop.f32.mrf.mxu0 }
 0x395   : > { %8344 = vst [vmem:[#allocation82_spill] sm:$0xff] %v6421_v60  ;;  %v6429_v30 = vmax.f32 %v8346_v53, %v6423_v23  ;;  %v2053_v28 = vadd.f32 %v6036_v11, %v2052_v25  ;;  %3038 = vmatmul.bf16.gmra.mxu2 %v2718_v51  ;;  %v2719_v37 = vpack.c.bf16 %v6421_v60, %v6418_v16  ;;  %v4893_v53 = vld [vmem:[%s5620_s17 + $0x170] sm:$0xff] }
 0x396   : > { %8345 = vst [vmem:[#allocation83_spill] sm:$0xff] %v6423_v23 }
 0x397   : > { %v2180_v35 = vmax.f32 %v2053_v28, 0.0  ;;  %3287 = vmatmul.bf16.gmra.mxu3 %v2719_v37  ;;  %v1398_v28 = vld [vmem:[%s5761_s23 + $0x1d8] sm:$0xff] }
 0x398   : > { %v2471_v13 = vpop.f32.mrf.mxu1  ;;  %v2999_v2 = vpop.f32.mrf.mxu2 }
 0x399   : > { %v2238_v21 = vpack.c.bf16 %v2180_v35, %v2179_v26  ;;  %v3000_v42 = vadd.f32 %v6319_v50, %v2999_v2  ;;  %v2472_v23 = vadd.f32 %v6149_v1, %v2471_v13 }
 0x39a   : > { %v3248_v46 = vpop.f32.mrf.mxu3 }
 0x39b   : > { %v6435_v3 = vadd.f32 %v3248_v46, %v3000_v42  ;;  %2510 = vmatmul.bf16.gmra.mxu1 %v2238_v21  ;;  %v6446_v2 = vadd.f32 %v2472_v23, %v1397_v14 }
 0x39c   : > { %v2055_v25 = vpop.f32.mrf.mxu0 }
 0x39d   : > { %8347 = vst [vmem:[#allocation84_spill] sm:$0xff] %v6446_v2  ;;  %v2056_v42 = vadd.f32 %v6036_v11, %v2055_v25 }
 0x39f   : > { %4736 = vmatmul.msk.bf16.gmra.mxu0 %vm1711_vm0, %v4893_v53  ;;  %v2181_v14 = vmax.f32 %v2056_v42, 0.0  ;;  %v4894_v53 = vld [vmem:[%s5620_s17 + $0x178] sm:$0xff]  ;;  %v1399_v42 = vld [vmem:[%s5761_s23 + $0x1e0] sm:$0xff] }
 0x3a0   : > { %v2473_v37 = vpop.f32.mrf.mxu1  ;;  %v3001_v12 = vpop.f32.mrf.mxu2 }
 0x3a1   : > { %v2474_v26 = vadd.f32 %v6149_v1, %v2473_v37  ;;  %v3002_v35 = vadd.f32 %v6319_v50, %v3001_v12 }
 0x3a2   : > { %v3250_v21 = vpop.f32.mrf.mxu3 }
 0x3a3   : > { %v6449_v46 = vadd.f32 %v2474_v26, %v1398_v28  ;;  %v2720_v51 = vpack.c.bf16 %v2474_v26, %v2472_v23  ;;  %v6451_v54 = vadd.f32 %v3250_v21, %v3002_v35 }
 0x3a4   : > { %v2057_v13 = vpop.f32.mrf.mxu0 }
 0x3a5   : > { %8348 = vst [vmem:[#allocation85_spill] sm:$0xff] %v6449_v46  ;;  %v2058_v55 = vadd.f32 %v6036_v11, %v2057_v13  ;;  %3043 = vmatmul.bf16.gmra.mxu2 %v2720_v51  ;;  %v2721_v12 = vpack.c.bf16 %v6449_v46, %v6446_v2 }
 0x3a7   : > { %v2182_v25 = vmax.f32 %v2058_v55, 0.0  ;;  %3292 = vmatmul.bf16.gmra.mxu3 %v2721_v12  ;;  %v1400_v55 = vld [vmem:[%s5761_s23 + $0x1e8] sm:$0xff] }
 0x3a8   : > { %v2476_v28 = vpop.f32.mrf.mxu1  ;;  %v3004_v23 = vpop.f32.mrf.mxu2 }
 0x3a9   : > { %v2239_v37 = vpack.c.bf16 %v2182_v25, %v2181_v14  ;;  %v3005_v26 = vadd.f32 %v6319_v50, %v3004_v23  ;;  %v2477_v46 = vadd.f32 %v6149_v1, %v2476_v28 }
 0x3aa   : > { %v3253_v35 = vpop.f32.mrf.mxu3 }
 0x3ab   : > { %v6459_v21 = vadd.f32 %v3253_v35, %v3005_v26  ;;  %2515 = vmatmul.bf16.gmra.mxu1 %v2239_v37  ;;  %v6470_v23 = vadd.f32 %v2477_v46, %v1399_v42 }
 0x3ac   : > { %v2060_v13 = vpop.f32.mrf.mxu0 }
 0x3ad   : > { %8349 = vst [vmem:[#allocation86_spill] sm:$0xff] %v6470_v23  ;;  %v2061_v26 = vadd.f32 %v6036_v11, %v2060_v13 }
 0x3af   : > { %4737 = vmatmul.msk.bf16.gmra.mxu0 %vm1711_vm0, %v4894_v53  ;;  %v2183_v42 = vmax.f32 %v2061_v26, 0.0 }
 0x3b0   : > { %v2478_v12 = vpop.f32.mrf.mxu1  ;;  %v3006_v2 = vpop.f32.mrf.mxu2 }
 0x3b1   : > { %v2479_v14 = vadd.f32 %v6149_v1, %v2478_v12  ;;  %v3007_v25 = vadd.f32 %v6319_v50, %v3006_v2 }
 0x3b2   : > { %v3255_v37 = vpop.f32.mrf.mxu3 }
 0x3b3   : > { %v6473_v35 = vadd.f32 %v2479_v14, %v1400_v55  ;;  %v2722_v51 = vpack.c.bf16 %v2479_v14, %v2477_v46  ;;  %v6475_v60 = vadd.f32 %v3255_v37, %v3007_v25 }
 0x3b4   : > { %v2062_v28 = vpop.f32.mrf.mxu0 }
 0x3b5   : > { %8350 = vst [vmem:[#allocation87_spill] sm:$0xff] %v6473_v35  ;;  %v2063_v32 = vadd.f32 %v6036_v11, %v2062_v28  ;;  %3048 = vmatmul.bf16.gmra.mxu2 %v2722_v51  ;;  %v2723_v2 = vpack.c.bf16 %v6473_v35, %v6470_v23  ;;  %v1402_v35 = vld [vmem:[%s5761_s23 + $0x1f8] sm:$0xff] }
 0x3b7   : > { %v2184_v12 = vmax.f32 %v2063_v32, 0.0  ;;  %3297 = vmatmul.bf16.gmra.mxu3 %v2723_v2 }
 0x3b8   : > { %v2481_v13 = vpop.f32.mrf.mxu1  ;;  %v3009_v55 = vpop.f32.mrf.mxu2 }
 0x3b9   : > { %v2240_v46 = vpack.c.bf16 %v2184_v12, %v2183_v42  ;;  %v3010_v14 = vadd.f32 %v6319_v50, %v3009_v55  ;;  %v2482_v28 = vadd.f32 %v6149_v1, %v2481_v13 }
 0x3ba   : > { %v3258_v25 = vpop.f32.mrf.mxu3 }
 0x3bb   : > { %v6483_v37 = vadd.f32 %v3258_v25, %v3010_v14  ;;  %2520 = vmatmul.bf16.gmra.mxu1 %v2240_v46  ;;  %v6492_v12 = vadd.f32 %v2482_v28, %v1401_v9 }
 0x3bc   : > { %v2065_v53 = vpop.f32.mrf.mxu0 }
 0x3bd   : > { %8351 = vst [vmem:[#allocation88_spill] sm:$0xff] %v6483_v37  ;;  %v2066_v14 = vadd.f32 %v6036_v11, %v2065_v53 }
 0x3be   : > { %8352 = vst [vmem:[#allocation89_spill] sm:$0xff] %v6492_v12 }
 0x3c0   : > { %v2483_v26 = vpop.f32.mrf.mxu1  ;;  %v3011_v32 = vpop.f32.mrf.mxu2 }
 0x3c1   : > { %v2484_v2 = vadd.f32 %v6149_v1, %v2483_v26  ;;  %v3012_v42 = vadd.f32 %v6319_v50, %v3011_v32  ;;  %v6504_v26 = vld [vmem:[%s8056_s4] ss:$0 sm:$0xff] }
 0x3c2   : > { %v3260_v55 = vpop.f32.mrf.mxu3 }
 0x3c3   : > { %v6495_v46 = vadd.f32 %v2484_v2, %v1402_v35  ;;  %v2724_v25 = vpack.c.bf16 %v2484_v2, %v2482_v28  ;;  %v6497_v23 = vadd.f32 %v3260_v55, %v3012_v42  ;;  %v2185_v35 = vmax.f32 %v2066_v14, 0.0 }
 0x3c4   : > { %v2067_v51 = vpop.f32.mrf.mxu0 }
 0x3c5   : > { %8353 = vst [vmem:[#allocation90_spill] sm:$0xff] %v6495_v46  ;;  %v2068_v9 = vadd.f32 %v6504_v26, %v2067_v51  ;;  %3053 = vmatmul.bf16.gmra.mxu2 %v2724_v25  ;;  %v2725_v11 = vpack.c.bf16 %v6495_v46, %v6492_v12  ;;  %v1404_v46 = vld [vmem:[%s5761_s23 + $0x208] sm:$0xff] }
 0x3c6   : > { %8354 = vst [vmem:[#allocation91_spill] sm:$0xff] %v6497_v23 }
 0x3c7   : > { %v2186_v53 = vmax.f32 %v2068_v9, 0.0  ;;  %3302 = vmatmul.bf16.gmra.mxu3 %v2725_v11 }
 0x3c8   : > { %v2486_v28 = vpop.f32.mrf.mxu1  ;;  %v3014_v32 = vpop.f32.mrf.mxu2 }
 0x3c9   : > { %v2241_v2 = vpack.c.bf16 %v2186_v53, %v2185_v35  ;;  %v3015_v42 = vadd.f32 %v6319_v50, %v3014_v32  ;;  %v2487_v25 = vadd.f32 %v6149_v1, %v2486_v28 }
 0x3ca   : > { %v3263_v55 = vpop.f32.mrf.mxu3 }
 0x3cb   : > { %v6510_v13 = vadd.f32 %v3263_v55, %v3015_v42  ;;  %2525 = vmatmul.bf16.gmra.mxu1 %v2241_v2  ;;  %v6519_v53 = vadd.f32 %v2487_v25, %v1403_v49 }
 0x3cc   : > { %v2070_v27 = vpop.f32.mrf.mxu0 }
 0x3cd   : > { %8355 = vst [vmem:[#allocation92_spill] sm:$0xff] %v6510_v13  ;;  %v2071_v42 = vadd.f32 %v6504_v26, %v2070_v27 }
 0x3ce   : > { %8356 = vst [vmem:[#allocation93_spill] sm:$0xff] %v6519_v53 }
 0x3d0   : > { %v2488_v14 = vpop.f32.mrf.mxu1  ;;  %v3016_v9 = vpop.f32.mrf.mxu2 }
 0x3d1   : > { %v2489_v11 = vadd.f32 %v6149_v1, %v2488_v14  ;;  %v3017_v35 = vadd.f32 %v6319_v50, %v3016_v9  ;;  %v2187_v14 = vmax.f32 %v2071_v42, 0.0 }
 0x3d2   : > { %v3265_v32 = vpop.f32.mrf.mxu3 }
 0x3d3   : > { %v6522_v2 = vadd.f32 %v2489_v11, %v1404_v46  ;;  %v2726_v55 = vpack.c.bf16 %v2489_v11, %v2487_v25  ;;  %v6524_v12 = vadd.f32 %v3265_v32, %v3017_v35 }
 0x3d4   : > { %v2072_v51 = vpop.f32.mrf.mxu0 }
 0x3d5   : > { %8357 = vst [vmem:[#allocation94_spill] sm:$0xff] %v6522_v2  ;;  %v2073_v22 = vadd.f32 %v6504_v26, %v2072_v51  ;;  %3058 = vmatmul.bf16.gmra.mxu2 %v2726_v55  ;;  %v2727_v49 = vpack.c.bf16 %v6522_v2, %v6519_v53  ;;  %v8359_v51 = vmax.f32 %v6309_v40, %v6435_v3 }
 0x3d6   : > { %8358 = vst [vmem:[#allocation95_spill] sm:$0xff] %v6524_v12 }
 0x3d7   : > { %v2188_v9 = vmax.f32 %v2073_v22, 0.0  ;;  %3307 = vmatmul.bf16.gmra.mxu3 %v2727_v49  ;;  %v1405_v22 = vld [vmem:[%s5761_s23 + $0x210] sm:$0xff]  ;;  %v1406_v49 = vld [vmem:[%s5761_s23 + $0x218] sm:$0xff] }
 0x3d8   : > { %v2491_v27 = vpop.f32.mrf.mxu1  ;;  %v3019_v46 = vpop.f32.mrf.mxu2 }
 0x3d9   : > { %v2242_v25 = vpack.c.bf16 %v2188_v9, %v2187_v14  ;;  %v3020_v11 = vadd.f32 %v6319_v50, %v3019_v46  ;;  %v2492_v42 = vadd.f32 %v6149_v1, %v2491_v27  ;;  %v8362_v27 = vmax.f32 %v6333_v5, %v6451_v54 }
 0x3da   : > { %v3268_v35 = vpop.f32.mrf.mxu3 }
 0x3db   : > { %v6532_v32 = vadd.f32 %v3268_v35, %v3020_v11  ;;  %2530 = vmatmul.bf16.gmra.mxu1 %v2242_v25  ;;  %v6545_v46 = vadd.f32 %v2492_v42, %v1405_v22 }
 0x3dc   : > { %v2075_v28 = vpop.f32.mrf.mxu0 }
 0x3dd   : > { %v6538_v55 = vmax.f32 %v8359_v51, %v6532_v32  ;;  %8360 = vst [vmem:[#allocation96_spill] sm:$0xff] %v6545_v46  ;;  %v2076_v11 = vadd.f32 %v6504_v26, %v2075_v28 }
 0x3df   : > { %v2189_v28 = vmax.f32 %v2076_v11, 0.0 }
 0x3e0   : > { %v2493_v2 = vpop.f32.mrf.mxu1  ;;  %v3021_v10 = vpop.f32.mrf.mxu2 }
 0x3e1   : > { %v2494_v14 = vadd.f32 %v6149_v1, %v2493_v2  ;;  %v3022_v9 = vadd.f32 %v6319_v50, %v3021_v10 }
 0x3e2   : > { %v3270_v25 = vpop.f32.mrf.mxu3 }
 0x3e3   : > { %v6548_v35 = vadd.f32 %v2494_v14, %v1406_v49  ;;  %v2728_v40 = vpack.c.bf16 %v2494_v14, %v2492_v42  ;;  %v6550_v51 = vadd.f32 %v3270_v25, %v3022_v9 }
 0x3e4   : > { %v2077_v53 = vpop.f32.mrf.mxu0 }
 0x3e5   : > { %8361 = vst [vmem:[#allocation97_spill] sm:$0xff] %v6548_v35  ;;  %v6556_v16 = vmax.f32 %v8362_v27, %v6550_v51  ;;  %v2078_v2 = vadd.f32 %v6504_v26, %v2077_v53  ;;  %3063 = vmatmul.bf16.gmra.mxu2 %v2728_v40  ;;  %v2729_v10 = vpack.c.bf16 %v6548_v35, %v6545_v46 }
 0x3e6   : > { %v8363_v53 = vmax.f32 %v6346_v58, %v6459_v21 }
 0x3e7   : > { %v2190_v22 = vmax.f32 %v2078_v2, 0.0  ;;  %3312 = vmatmul.bf16.gmra.mxu3 %v2729_v10  ;;  %v1407_v2 = vld [vmem:[%s5761_s23 + $0x220] sm:$0xff]  ;;  %v1408_v10 = vld [vmem:[%s5761_s23 + $0x228] sm:$0xff] }
 0x3e8   : > { %v2496_v42 = vpop.f32.mrf.mxu1  ;;  %v3024_v49 = vpop.f32.mrf.mxu2 }
 0x3e9   : > { %v2243_v14 = vpack.c.bf16 %v2190_v22, %v2189_v28  ;;  %v3025_v9 = vadd.f32 %v6319_v50, %v3024_v49  ;;  %v2497_v11 = vadd.f32 %v6149_v1, %v2496_v42  ;;  %v8367_v42 = vmax.f32 %v6365_v61, %v6475_v60 }
 0x3ea   : > { %v3273_v25 = vpop.f32.mrf.mxu3 }
 0x3eb   : > { %v6562_v5 = vadd.f32 %v3273_v25, %v3025_v9  ;;  %2535 = vmatmul.bf16.gmra.mxu1 %v2243_v14  ;;  %v6575_v49 = vadd.f32 %v2497_v11, %v1407_v2 }
 0x3ec   : > { %v2080_v27 = vpop.f32.mrf.mxu0 }
 0x3ed   : > { %v6568_v40 = vmax.f32 %v8363_v53, %v6562_v5  ;;  %8364 = vst [vmem:[#allocation98_spill] sm:$0xff] %v6575_v49  ;;  %v2081_v9 = vadd.f32 %v6504_v26, %v2080_v27 }
 0x3ef   : > { %v2191_v27 = vmax.f32 %v2081_v9, 0.0 }
 0x3f0   : > { %v2498_v35 = vpop.f32.mrf.mxu1  ;;  %v3026_v46 = vpop.f32.mrf.mxu2 }
 0x3f1   : > { %v2499_v28 = vadd.f32 %v6149_v1, %v2498_v35  ;;  %v3027_v22 = vadd.f32 %v6319_v50, %v3026_v46 }
 0x3f2   : > { %v3275_v14 = vpop.f32.mrf.mxu3 }
 0x3f3   : > { %v6578_v25 = vadd.f32 %v2499_v28, %v1408_v10  ;;  %v2730_v58 = vpack.c.bf16 %v2499_v28, %v2497_v11  ;;  %v6580_v53 = vadd.f32 %v3275_v14, %v3027_v22 }
 0x3f4   : > { %v2082_v8 = vpop.f32.mrf.mxu0 }
 0x3f5   : > { %8365 = vst [vmem:[#allocation99_spill] sm:$0xff] %v6578_v25  ;;  %v6586_v24 = vmax.f32 %v8367_v42, %v6580_v53  ;;  %v2083_v35 = vadd.f32 %v6504_v26, %v2082_v8  ;;  %3068 = vmatmul.bf16.gmra.mxu2 %v2730_v58  ;;  %v2731_v46 = vpack.c.bf16 %v6578_v25, %v6575_v49 }
 0x3f6   : > { %8366 = vst [vmem:[#allocation100_spill] sm:$0xff] %v6580_v53  ;;  %v8369_v8 = vmax.f32 %v6378_v59, %v6483_v37 }
 0x3f7   : > { %v2192_v2 = vmax.f32 %v2083_v35, 0.0  ;;  %3317 = vmatmul.bf16.gmra.mxu3 %v2731_v46  ;;  %v1409_v35 = vld [vmem:[%s5761_s23 + $0x230] sm:$0xff]  ;;  %v1410_v46 = vld [vmem:[%s5761_s23 + $0x238] sm:$0xff] }
 0x3f8   : > { %v2501_v11 = vpop.f32.mrf.mxu1  ;;  %v3029_v10 = vpop.f32.mrf.mxu2 }
 0x3f9   : > { %v2244_v28 = vpack.c.bf16 %v2192_v2, %v2191_v27  ;;  %v3030_v22 = vadd.f32 %v6319_v50, %v3029_v10  ;;  %v2502_v9 = vadd.f32 %v6149_v1, %v2501_v11  ;;  %v8373_v11 = vmax.f32 %v6397_v4, %v6497_v23 }
 0x3fa   : > { %v3278_v14 = vpop.f32.mrf.mxu3 }
 0x3fb   : > { %v6592_v61 = vadd.f32 %v3278_v14, %v3030_v22  ;;  %2540 = vmatmul.bf16.gmra.mxu1 %v2244_v28  ;;  %v6605_v10 = vadd.f32 %v2502_v9, %v1409_v35 }
 0x3fc   : > { %v2085_v42 = vpop.f32.mrf.mxu0 }
 0x3fd   : > { %8368 = vst [vmem:[#allocation101_spill] sm:$0xff] %v6592_v61  ;;  %v6598_v58 = vmax.f32 %v8369_v8, %v6592_v61  ;;  %v2086_v22 = vadd.f32 %v6504_v26, %v2085_v42 }
 0x3fe   : > { %8370 = vst [vmem:[#allocation102_spill] sm:$0xff] %v6605_v10 }
 0x400   : > { %v2503_v25 = vpop.f32.mrf.mxu1  ;;  %v3031_v49 = vpop.f32.mrf.mxu2 }
 0x401   : > { %v2504_v27 = vadd.f32 %v6149_v1, %v2503_v25  ;;  %v3032_v2 = vadd.f32 %v6319_v50, %v3031_v49  ;;  %v2193_v25 = vmax.f32 %v2086_v22, 0.0  ;;  %v6633_v22 = vld [vmem:[%s8058_s6] ss:$0 sm:$0xff] }
 0x402   : > { %v3280_v28 = vpop.f32.mrf.mxu3 }
 0x403   : > { %v6608_v14 = vadd.f32 %v2504_v27, %v1410_v46  ;;  %v2732_v59 = vpack.c.bf16 %v2504_v27, %v2502_v9  ;;  %v6610_v8 = vadd.f32 %v3280_v28, %v3032_v2 }
 0x404   : > { %v2087_v61 = vpop.f32.mrf.mxu0 }
 0x405   : > { %8371 = vst [vmem:[#allocation103_spill] sm:$0xff] %v6608_v14  ;;  %v6616_v37 = vmax.f32 %v8373_v11, %v6610_v8  ;;  %v2088_v1 = vadd.f32 %v6504_v26, %v2087_v61  ;;  %3073 = vmatmul.bf16.gmra.mxu2 %v2732_v59  ;;  %v2733_v49 = vpack.c.bf16 %v6608_v14, %v6605_v10 }
 0x406   : > { %8372 = vst [vmem:[#allocation104_spill] sm:$0xff] %v6610_v8  ;;  %v8375_v61 = vmax.f32 %v6410_v47, %v6510_v13 }
 0x407   : > { %v2194_v42 = vmax.f32 %v2088_v1, 0.0  ;;  %3322 = vmatmul.bf16.gmra.mxu3 %v2733_v49  ;;  %v1411_v1 = vld [vmem:[%s5761_s23 + $0x240] sm:$0xff]  ;;  %v1412_v49 = vld [vmem:[%s5761_s23 + $0x248] sm:$0xff] }
 0x408   : > { %v2506_v9 = vpop.f32.mrf.mxu1  ;;  %v3034_v35 = vpop.f32.mrf.mxu2 }
 0x409   : > { %v2245_v46 = vpack.c.bf16 %v2194_v42, %v2193_v25  ;;  %v3035_v27 = vadd.f32 %v6319_v50, %v3034_v35  ;;  %v2507_v11 = vadd.f32 %v6633_v22, %v2506_v9  ;;  %v8379_v9 = vmax.f32 %v6429_v30, %v6524_v12  ;;  %v1414_v12 = vld [vmem:[%s5761_s23 + $0x258] sm:$0xff] }
 0x40a   : > { %v3283_v2 = vpop.f32.mrf.mxu3 }
 0x40b   : > { %v6622_v4 = vadd.f32 %v3283_v2, %v3035_v27  ;;  %2545 = vmatmul.bf16.gmra.mxu1 %v2245_v46  ;;  %v6640_v27 = vadd.f32 %v2507_v11, %v1411_v1 }
 0x40c   : > { %v2090_v28 = vpop.f32.mrf.mxu0 }
 0x40d   : > { %8374 = vst [vmem:[#allocation105_spill] sm:$0xff] %v6622_v4  ;;  %v6628_v59 = vmax.f32 %v8375_v61, %v6622_v4  ;;  %v2091_v2 = vadd.f32 %v6504_v26, %v2090_v28 }
 0x40e   : > { %8376 = vst [vmem:[#allocation106_spill] sm:$0xff] %v6640_v27 }
 0x40f   : > { %v2195_v1 = vmax.f32 %v2091_v2, 0.0 }
 0x410   : > { %v2508_v25 = vpop.f32.mrf.mxu1  ;;  %v3036_v42 = vpop.f32.mrf.mxu2 }
 0x411   : > { %v2509_v35 = vadd.f32 %v6633_v22, %v2508_v25  ;;  %v3037_v46 = vadd.f32 %v6319_v50, %v3036_v42 }
 0x412   : > { %v3285_v47 = vpop.f32.mrf.mxu3 }
 0x413   : > { %v6643_v61 = vadd.f32 %v2509_v35, %v1412_v49  ;;  %v2734_v14 = vpack.c.bf16 %v2509_v35, %v2507_v11  ;;  %v6645_v10 = vadd.f32 %v3285_v47, %v3037_v46 }
 0x414   : > { %v2092_v4 = vpop.f32.mrf.mxu0 }
 0x415   : > { %8377 = vst [vmem:[#allocation107_spill] sm:$0xff] %v6643_v61  ;;  %v6651_v13 = vmax.f32 %v8379_v9, %v6645_v10  ;;  %v2093_v25 = vadd.f32 %v6504_v26, %v2092_v4  ;;  %3078 = vmatmul.bf16.gmra.mxu2 %v2734_v14  ;;  %v2735_v28 = vpack.c.bf16 %v6643_v61, %v6640_v27  ;;  %v1415_v61 = vld [vmem:[%s5761_s23 + $0x260] sm:$0xff] }
 0x416   : > { %8378 = vst [vmem:[#allocation108_spill] sm:$0xff] %v6645_v10  ;;  %v1413_v10 = vld [vmem:[%s5761_s23 + $0x250] sm:$0xff] }
 0x417   : > { %v2196_v49 = vmax.f32 %v2093_v25, 0.0  ;;  %3327 = vmatmul.bf16.gmra.mxu3 %v2735_v28 }
 0x418   : > { %v2511_v11 = vpop.f32.mrf.mxu1  ;;  %v3039_v42 = vpop.f32.mrf.mxu2 }
 0x419   : > { %v2246_v35 = vpack.c.bf16 %v2196_v49, %v2195_v1  ;;  %v3040_v46 = vadd.f32 %v6319_v50, %v3039_v42  ;;  %v2512_v4 = vadd.f32 %v6633_v22, %v2511_v11 }
 0x41a   : > { %v3288_v47 = vpop.f32.mrf.mxu3 }
 0x41b   : > { %v6657_v30 = vadd.f32 %v3288_v47, %v3040_v46  ;;  %2550 = vmatmul.bf16.gmra.mxu1 %v2246_v35  ;;  %v6666_v49 = vadd.f32 %v2512_v4, %v1413_v10 }
 0x41c   : > { %v2095_v9 = vpop.f32.mrf.mxu0 }
 0x41d   : > { %8380 = vst [vmem:[#allocation109_spill] sm:$0xff] %v6666_v49  ;;  %v2096_v46 = vadd.f32 %v6504_v26, %v2095_v9 }
 0x420   : > { %v2513_v2 = vpop.f32.mrf.mxu1  ;;  %v3041_v25 = vpop.f32.mrf.mxu2 }
 0x421   : > { %v2514_v28 = vadd.f32 %v6633_v22, %v2513_v2  ;;  %v3042_v1 = vadd.f32 %v6319_v50, %v3041_v25  ;;  %v2197_v2 = vmax.f32 %v2096_v46, 0.0 }
 0x422   : > { %v3290_v42 = vpop.f32.mrf.mxu3 }
 0x423   : > { %v6669_v35 = vadd.f32 %v2514_v28, %v1414_v12  ;;  %v2736_v47 = vpack.c.bf16 %v2514_v28, %v2512_v4  ;;  %v6671_v8 = vadd.f32 %v3290_v42, %v3042_v1 }
 0x424   : > { %v2097_v14 = vpop.f32.mrf.mxu0 }
 0x425   : > { %8381 = vst [vmem:[#allocation110_spill] sm:$0xff] %v6669_v35  ;;  %v2098_v23 = vadd.f32 %v6504_v26, %v2097_v14  ;;  %3083 = vmatmul.bf16.gmra.mxu2 %v2736_v47  ;;  %v2737_v10 = vpack.c.bf16 %v6669_v35, %v6666_v49  ;;  %v1416_v35 = vld [vmem:[%s5761_s23 + $0x268] sm:$0xff] }
 0x427   : > { %v2198_v25 = vmax.f32 %v2098_v23, 0.0  ;;  %3332 = vmatmul.bf16.gmra.mxu3 %v2737_v10 }
 0x428   : > { %v2516_v12 = vpop.f32.mrf.mxu1  ;;  %v3044_v9 = vpop.f32.mrf.mxu2 }
 0x429   : > { %v2247_v4 = vpack.c.bf16 %v2198_v25, %v2197_v2  ;;  %v3045_v28 = vadd.f32 %v6319_v50, %v3044_v9  ;;  %v2517_v47 = vadd.f32 %v6633_v22, %v2516_v12  ;;  %v1418_v12 = vld [vmem:[%s5761_s23 + $0x278] sm:$0xff] }
 0x42a   : > { %v3293_v1 = vpop.f32.mrf.mxu3 }
 0x42b   : > { %v6679_v42 = vadd.f32 %v3293_v1, %v3045_v28  ;;  %2555 = vmatmul.bf16.gmra.mxu1 %v2247_v4  ;;  %v6688_v25 = vadd.f32 %v2517_v47, %v1415_v61 }
 0x42c   : > { %v2100_v11 = vpop.f32.mrf.mxu0 }
 0x42d   : > { %8382 = vst [vmem:[#allocation111_spill] sm:$0xff] %v6688_v25  ;;  %v2101_v28 = vadd.f32 %v6504_v26, %v2100_v11 }
 0x430   : > { %v2518_v46 = vpop.f32.mrf.mxu1  ;;  %v3046_v23 = vpop.f32.mrf.mxu2 }
 0x431   : > { %v2519_v10 = vadd.f32 %v6633_v22, %v2518_v46  ;;  %v3047_v2 = vadd.f32 %v6319_v50, %v3046_v23  ;;  %v2199_v46 = vmax.f32 %v2101_v28, 0.0 }
 0x432   : > { %v3295_v9 = vpop.f32.mrf.mxu3 }
 0x433   : > { %v6691_v4 = vadd.f32 %v2519_v10, %v1416_v35  ;;  %v2738_v1 = vpack.c.bf16 %v2519_v10, %v2517_v47  ;;  %v6693_v49 = vadd.f32 %v3295_v9, %v3047_v2 }
 0x434   : > { %v2102_v14 = vpop.f32.mrf.mxu0 }
 0x435   : > { %8383 = vst [vmem:[#allocation112_spill] sm:$0xff] %v6691_v4  ;;  %v2103_v27 = vadd.f32 %v6504_v26, %v2102_v14  ;;  %3088 = vmatmul.bf16.gmra.mxu2 %v2738_v1  ;;  %v2739_v61 = vpack.c.bf16 %v6691_v4, %v6688_v25  ;;  %v1417_v1 = vld [vmem:[%s5761_s23 + $0x270] sm:$0xff] }
 0x437   : > { %v2200_v23 = vmax.f32 %v2103_v27, 0.0  ;;  %3337 = vmatmul.bf16.gmra.mxu3 %v2739_v61 }
 0x438   : > { %v2521_v35 = vpop.f32.mrf.mxu1  ;;  %v3049_v11 = vpop.f32.mrf.mxu2 }
 0x439   : > { %v2248_v47 = vpack.c.bf16 %v2200_v23, %v2199_v46  ;;  %v3050_v10 = vadd.f32 %v6319_v50, %v3049_v11  ;;  %v2522_v14 = vadd.f32 %v6633_v22, %v2521_v35 }
 0x43a   : > { %v3298_v2 = vpop.f32.mrf.mxu3 }
 0x43b   : > { %v6701_v9 = vadd.f32 %v3298_v2, %v3050_v10  ;;  %2560 = vmatmul.bf16.gmra.mxu1 %v2248_v47  ;;  %v6710_v23 = vadd.f32 %v2522_v14, %v1417_v1 }
 0x43d   : > { %8384 = vst [vmem:[#allocation113_spill] sm:$0xff] %v6701_v9 }
 0x43e   : > { %8385 = vst [vmem:[#allocation114_spill] sm:$0xff] %v6710_v23 }
 0x440   : > { %v2523_v4 = vpop.f32.mrf.mxu1  ;;  %v3051_v28 = vpop.f32.mrf.mxu2 }
 0x441   : > { %v2524_v27 = vadd.f32 %v6633_v22, %v2523_v4  ;;  %v3052_v61 = vadd.f32 %v6319_v50, %v3051_v28 }
 0x442   : > { %v3300_v46 = vpop.f32.mrf.mxu3 }
 0x443   : > { %v6712_v11 = vadd.f32 %v2524_v27, %v1418_v12  ;;  %v2740_v47 = vpack.c.bf16 %v2524_v27, %v2522_v14  ;;  %v6714_v10 = vadd.f32 %v3300_v46, %v3052_v61  ;;  %v1419_v27 = vld [vmem:[%s5761_s23 + $0x280] sm:$0xff]  ;;  %v1420_v61 = vld [vmem:[%s5761_s23 + $0x288] sm:$0xff] }
 0x445   : > { %8386 = vst [vmem:[#allocation115_spill] sm:$0xff] %v6712_v11  ;;  %3093 = vmatmul.bf16.gmra.mxu2 %v2740_v47  ;;  %v2741_v2 = vpack.c.bf16 %v6712_v11, %v6710_v23 }
 0x446   : > { %8387 = vst [vmem:[#allocation116_spill] sm:$0xff] %v6714_v10 }
 0x447   : > { %3342 = vmatmul.bf16.gmra.mxu3 %v2741_v2 }
 0x448   : > { %v2526_v4 = vpop.f32.mrf.mxu1  ;;  %v3054_v28 = vpop.f32.mrf.mxu2 }
 0x449   : > { %v3055_v26 = vadd.f32 %v6319_v50, %v3054_v28  ;;  %v2527_v14 = vadd.f32 %v6633_v22, %v2526_v4 }
 0x44a   : > { %v3303_v1 = vpop.f32.mrf.mxu3 }
 0x44b   : > { %v6721_v25 = vadd.f32 %v3303_v1, %v3055_v26  ;;  %v6730_v23 = vadd.f32 %v2527_v14, %v1419_v27 }
 0x44d   : > { %8388 = vst [vmem:[#allocation117_spill] sm:$0xff] %v6721_v25 }
 0x44e   : > { %8389 = vst [vmem:[#allocation118_spill] sm:$0xff] %v6730_v23 }
 0x450   : > { %v2528_v46 = vpop.f32.mrf.mxu1  ;;  %v3056_v47 = vpop.f32.mrf.mxu2 }
 0x451   : > { %v2529_v35 = vadd.f32 %v6633_v22, %v2528_v46  ;;  %v3057_v2 = vadd.f32 %v6319_v50, %v3056_v47 }
 0x452   : > { %v3305_v11 = vpop.f32.mrf.mxu3 }
 0x453   : > { %v6732_v26 = vadd.f32 %v2529_v35, %v1420_v61  ;;  %v2742_v28 = vpack.c.bf16 %v2529_v35, %v2527_v14  ;;  %v6734_v1 = vadd.f32 %v3305_v11, %v3057_v2  ;;  %v8392_v11 = vmax.f32 %v6538_v55, %v6657_v30  ;;  %v1421_v61 = vld [vmem:[%s5761_s23 + $0x290] sm:$0xff]  ;;  %v1422_v2 = vld [vmem:[%s5761_s23 + $0x298] sm:$0xff] }
 0x455   : > { %8390 = vst [vmem:[#allocation119_spill] sm:$0xff] %v6732_v26  ;;  %3098 = vmatmul.bf16.gmra.mxu2 %v2742_v28  ;;  %v2743_v12 = vpack.c.bf16 %v6732_v26, %v6730_v23 }
 0x456   : > { %8391 = vst [vmem:[#allocation120_spill] sm:$0xff] %v6734_v1 }
 0x457   : > { %3347 = vmatmul.bf16.gmra.mxu3 %v2743_v12 }
 0x458   : > { %v2531_v46 = vpop.f32.mrf.mxu1  ;;  %v3059_v47 = vpop.f32.mrf.mxu2 }
 0x459   : > { %v3060_v38 = vadd.f32 %v6319_v50, %v3059_v47  ;;  %v2532_v14 = vadd.f32 %v6633_v22, %v2531_v46  ;;  %v8395_v46 = vmax.f32 %v6556_v16, %v6671_v8 }
 0x45a   : > { %v3308_v27 = vpop.f32.mrf.mxu3 }
 0x45b   : > { %v6741_v18 = vadd.f32 %v3308_v27, %v3060_v38  ;;  %v6754_v38 = vadd.f32 %v2532_v14, %v1421_v61 }
 0x45d   : > { %v6747_v35 = vmax.f32 %v8392_v11, %v6741_v18  ;;  %8393 = vst [vmem:[#allocation121_spill] sm:$0xff] %v6754_v38 }
 0x460   : > { %v2533_v28 = vpop.f32.mrf.mxu1  ;;  %v3061_v4 = vpop.f32.mrf.mxu2 }
 0x461   : > { %v2534_v12 = vadd.f32 %v6633_v22, %v2533_v28  ;;  %v3062_v26 = vadd.f32 %v6319_v50, %v3061_v4 }
 0x462   : > { %v3310_v47 = vpop.f32.mrf.mxu3 }
 0x463   : > { %v6756_v27 = vadd.f32 %v2534_v12, %v1422_v2  ;;  %v2744_v55 = vpack.c.bf16 %v2534_v12, %v2532_v14  ;;  %v6758_v11 = vadd.f32 %v3310_v47, %v3062_v26  ;;  %v8396_v26 = vmax.f32 %v6568_v40, %v6679_v42  ;;  %v1423_v12 = vld [vmem:[%s5761_s23 + $0x2a0] sm:$0xff]  ;;  %v1424_v47 = vld [vmem:[%s5761_s23 + $0x2a8] sm:$0xff] }
 0x465   : > { %8394 = vst [vmem:[#allocation122_spill] sm:$0xff] %v6756_v27  ;;  %v6764_v23 = vmax.f32 %v8395_v46, %v6758_v11  ;;  %3103 = vmatmul.bf16.gmra.mxu2 %v2744_v55  ;;  %v2745_v4 = vpack.c.bf16 %v6756_v27, %v6754_v38 }
 0x467   : > { %3352 = vmatmul.bf16.gmra.mxu3 %v2745_v4 }
 0x468   : > { %v2536_v28 = vpop.f32.mrf.mxu1  ;;  %v3064_v61 = vpop.f32.mrf.mxu2 }
 0x469   : > { %v3065_v45 = vadd.f32 %v6319_v50, %v3064_v61  ;;  %v2537_v16 = vadd.f32 %v6633_v22, %v2536_v28  ;;  %v8399_v28 = vmax.f32 %v6586_v24, %v6693_v49 }
 0x46a   : > { %v3313_v2 = vpop.f32.mrf.mxu3 }
 0x46b   : > { %v6769_v19 = vadd.f32 %v3313_v2, %v3065_v45  ;;  %v6782_v45 = vadd.f32 %v2537_v16, %v1423_v12 }
 0x46d   : > { %v6775_v14 = vmax.f32 %v8396_v26, %v6769_v19  ;;  %8397 = vst [vmem:[#allocation123_spill] sm:$0xff] %v6782_v45 }
 0x470   : > { %v2538_v55 = vpop.f32.mrf.mxu1  ;;  %v3066_v46 = vpop.f32.mrf.mxu2 }
 0x471   : > { %v2539_v4 = vadd.f32 %v6633_v22, %v2538_v55  ;;  %v3067_v27 = vadd.f32 %v6319_v50, %v3066_v46 }
 0x472   : > { %v3315_v61 = vpop.f32.mrf.mxu3 }
 0x473   : > { %v6784_v2 = vadd.f32 %v2539_v4, %v1424_v47  ;;  %v2746_v40 = vpack.c.bf16 %v2539_v4, %v2537_v16  ;;  %v6786_v26 = vadd.f32 %v3315_v61, %v3067_v27  ;;  %v8401_v27 = vmax.f32 %v6598_v58, %v6701_v9  ;;  %v1425_v4 = vld [vmem:[%s5761_s23 + $0x2b0] sm:$0xff]  ;;  %v1426_v61 = vld [vmem:[%s5761_s23 + $0x2b8] sm:$0xff] }
 0x475   : > { %8398 = vst [vmem:[#allocation124_spill] sm:$0xff] %v6784_v2  ;;  %v6792_v38 = vmax.f32 %v8399_v28, %v6786_v26  ;;  %3108 = vmatmul.bf16.gmra.mxu2 %v2746_v40  ;;  %v2747_v55 = vpack.c.bf16 %v6784_v2, %v6782_v45 }
 0x477   : > { %3357 = vmatmul.bf16.gmra.mxu3 %v2747_v55 }
 0x478   : > { %v2541_v46 = vpop.f32.mrf.mxu1  ;;  %v3069_v12 = vpop.f32.mrf.mxu2 }
 0x479   : > { %v3070_v7 = vadd.f32 %v6319_v50, %v3069_v12  ;;  %v2542_v24 = vadd.f32 %v6633_v22, %v2541_v46  ;;  %v6812_v50 = vld [vmem:[%s8060_s8] ss:$0 sm:$0xff] }
 0x47a   : > { %v3318_v47 = vpop.f32.mrf.mxu3 }
 0x47b   : > { %v6797_v53 = vadd.f32 %v3318_v47, %v3070_v7  ;;  %v6815_v58 = vadd.f32 %v2542_v24, %v1425_v4 }
 0x47d   : > { %8400 = vst [vmem:[#allocation125_spill] sm:$0xff] %v6797_v53  ;;  %v6803_v16 = vmax.f32 %v8401_v27, %v6797_v53 }
 0x47e   : > { %8402 = vst [vmem:[#allocation126_spill] sm:$0xff] %v6815_v58 }
 0x480   : > { %v2543_v40 = vpop.f32.mrf.mxu1  ;;  %v3071_v28 = vpop.f32.mrf.mxu2 }
 0x481   : > { %v2544_v55 = vadd.f32 %v6633_v22, %v2543_v40  ;;  %v3072_v7 = vadd.f32 %v6812_v50, %v3071_v28  ;;  %v8405_v40 = vmax.f32 %v6616_v37, %v6714_v10 }
 0x482   : > { %v3320_v12 = vpop.f32.mrf.mxu3 }
 0x483   : > { %v6817_v47 = vadd.f32 %v2544_v55, %v1426_v61  ;;  %v2748_v46 = vpack.c.bf16 %v2544_v55, %v2542_v24  ;;  %v6819_v27 = vadd.f32 %v3320_v12, %v3072_v7  ;;  %v8407_v24 = vmax.f32 %v6628_v59, %v6721_v25  ;;  %v1427_v7 = vld [vmem:[%s5761_s23 + $0x2c0] sm:$0xff]  ;;  %v1428_v12 = vld [vmem:[%s5761_s23 + $0x2c8] sm:$0xff] }
 0x485   : > { %8403 = vst [vmem:[#allocation127_spill] sm:$0xff] %v6817_v47  ;;  %v6825_v2 = vmax.f32 %v8405_v40, %v6819_v27  ;;  %3113 = vmatmul.bf16.gmra.mxu2 %v2748_v46  ;;  %v2749_v28 = vpack.c.bf16 %v6817_v47, %v6815_v58 }
 0x486   : > { %8404 = vst [vmem:[#allocation128_spill] sm:$0xff] %v6819_v27 }
 0x487   : > { %3362 = vmatmul.bf16.gmra.mxu3 %v2749_v28 }
 0x488   : > { %v2546_v45 = vpop.f32.mrf.mxu1  ;;  %v3074_v4 = vpop.f32.mrf.mxu2 }
 0x489   : > { %v3075_v53 = vadd.f32 %v6812_v50, %v3074_v4  ;;  %v2547_v37 = vadd.f32 %v6633_v22, %v2546_v45  ;;  %v8411_v45 = vmax.f32 %v6651_v13, %v6734_v1  ;;  %v1429_v13 = vld [vmem:[%s5761_s23 + $0x2d0] sm:$0xff] }
 0x48a   : > { %v3323_v61 = vpop.f32.mrf.mxu3 }
 0x48b   : > { %v6830_v9 = vadd.f32 %v3323_v61, %v3075_v53  ;;  %v6843_v53 = vadd.f32 %v2547_v37, %v1427_v7 }
 0x48d   : > { %8406 = vst [vmem:[#allocation129_spill] sm:$0xff] %v6830_v9  ;;  %v6836_v55 = vmax.f32 %v8407_v24, %v6830_v9 }
 0x48e   : > { %8408 = vst [vmem:[#allocation130_spill] sm:$0xff] %v6843_v53 }
 0x490   : > { %v2548_v46 = vpop.f32.mrf.mxu1  ;;  %v3076_v40 = vpop.f32.mrf.mxu2 }
 0x491   : > { %v2549_v28 = vadd.f32 %v6633_v22, %v2548_v46  ;;  %v3077_v47 = vadd.f32 %v6812_v50, %v3076_v40 }
 0x492   : > { %v3325_v4 = vpop.f32.mrf.mxu3 }
 0x493   : > { %v6845_v61 = vadd.f32 %v2549_v28, %v1428_v12  ;;  %v2750_v59 = vpack.c.bf16 %v2549_v28, %v2547_v37  ;;  %v6847_v24 = vadd.f32 %v3325_v4, %v3077_v47  ;;  %v1430_v28 = vld [vmem:[%s5761_s23 + $0x2d8] sm:$0xff] }
 0x495   : > { %8409 = vst [vmem:[#allocation131_spill] sm:$0xff] %v6845_v61  ;;  %v6853_v58 = vmax.f32 %v8411_v45, %v6847_v24  ;;  %3118 = vmatmul.bf16.gmra.mxu2 %v2750_v59  ;;  %v2751_v46 = vpack.c.bf16 %v6845_v61, %v6843_v53 }
 0x496   : > { %8410 = vst [vmem:[#allocation132_spill] sm:$0xff] %v6847_v24 }
 0x497   : > { %3367 = vmatmul.bf16.gmra.mxu3 %v2751_v46 }
 0x498   : > { %v2551_v40 = vpop.f32.mrf.mxu1  ;;  %v3079_v7 = vpop.f32.mrf.mxu2 }
 0x499   : > { %v3080_v9 = vadd.f32 %v6812_v50, %v3079_v7  ;;  %v2552_v37 = vadd.f32 %v6633_v22, %v2551_v40 }
 0x49a   : > { %v3328_v12 = vpop.f32.mrf.mxu3 }
 0x49b   : > { %v6858_v25 = vadd.f32 %v3328_v12, %v3080_v9  ;;  %v6867_v1 = vadd.f32 %v2552_v37, %v1429_v13 }
 0x49d   : > { %8412 = vst [vmem:[#allocation133_spill] sm:$0xff] %v6867_v1 }
 0x4a0   : > { %v2553_v4 = vpop.f32.mrf.mxu1  ;;  %v3081_v59 = vpop.f32.mrf.mxu2 }
 0x4a1   : > { %v2554_v45 = vadd.f32 %v6633_v22, %v2553_v4  ;;  %v3082_v46 = vadd.f32 %v6812_v50, %v3081_v59 }
 0x4a2   : > { %v3330_v24 = vpop.f32.mrf.mxu3 }
 0x4a3   : > { %v6869_v9 = vadd.f32 %v2554_v45, %v1430_v28  ;;  %v2752_v7 = vpack.c.bf16 %v2554_v45, %v2552_v37  ;;  %v6871_v12 = vadd.f32 %v3330_v24, %v3082_v46  ;;  %v1431_v28 = vld [vmem:[%s5761_s23 + $0x2e0] sm:$0xff]  ;;  %v1432_v45 = vld [vmem:[%s5761_s23 + $0x2e8] sm:$0xff] }
 0x4a5   : > { %8413 = vst [vmem:[#allocation134_spill] sm:$0xff] %v6869_v9  ;;  %3123 = vmatmul.bf16.gmra.mxu2 %v2752_v7  ;;  %v2753_v47 = vpack.c.bf16 %v6869_v9, %v6867_v1 }
 0x4a7   : > { %3372 = vmatmul.bf16.gmra.mxu3 %v2753_v47 }
 0x4a8   : > { %v2556_v4 = vpop.f32.mrf.mxu1  ;;  %v3084_v59 = vpop.f32.mrf.mxu2 }
 0x4a9   : > { %v3085_v27 = vadd.f32 %v6812_v50, %v3084_v59  ;;  %v2557_v24 = vadd.f32 %v6633_v22, %v2556_v4 }
 0x4aa   : > { %v3333_v13 = vpop.f32.mrf.mxu3 }
 0x4ab   : > { %v6878_v10 = vadd.f32 %v3333_v13, %v3085_v27  ;;  %v6887_v1 = vadd.f32 %v2557_v24, %v1431_v28 }
 0x4ad   : > { %v3418_v37 = vmax.f32 %v6775_v14, %v6878_v10  ;;  %8414 = vst [vmem:[#allocation135_spill] sm:$0xff] %v6887_v1 }
 0x4b0   : > { %v2558_v46 = vpop.f32.mrf.mxu1  ;;  %v3086_v7 = vpop.f32.mrf.mxu2 }
 0x4b1   : > { %v2559_v40 = vadd.f32 %v6633_v22, %v2558_v46  ;;  %v3087_v47 = vadd.f32 %v6812_v50, %v3086_v7 }
 0x4b2   : > { %v3335_v9 = vpop.f32.mrf.mxu3 }
 0x4b3   : > { %v6889_v27 = vadd.f32 %v2559_v40, %v1432_v45  ;;  %v2754_v59 = vpack.c.bf16 %v2559_v40, %v2557_v24  ;;  %v6891_v13 = vadd.f32 %v3335_v9, %v3087_v47  ;;  %v1433_v24 = vld [vmem:[%s5761_s23 + $0x2f0] sm:$0xff]  ;;  %v1434_v45 = vld [vmem:[%s5761_s23 + $0x2f8] sm:$0xff]  ;;  %s4834_s23 = sshll.u32 %s5274_s0, 6  ;;  %s8654_s0 = smov (!%p1236_p9, %s5274_s0), 1 }
 0x4b4   : > { %s1238_s14 = scalar_lea.vmem %s8062_s10, %s8654_s0  ;;  %s1241_s16 = scalar_lea.vmem %s8063_s11, %s8654_s0 }
 0x4b5   : > { %8415 = vst [vmem:[#allocation136_spill] sm:$0xff] %v6889_v27  ;;  %v3429_v14 = vmax.f32 %v6792_v38, %v6891_v13  ;;  %3128 = vmatmul.bf16.gmra.mxu2 %v2754_v59  ;;  %v2755_v4 = vpack.c.bf16 %v6889_v27, %v6887_v1 }
 0x4b6   : > { %8416 = vst [vmem:[#allocation137_spill] sm:$0xff] %v6891_v13 }
 0x4b7   : > { %3377 = vmatmul.bf16.gmra.mxu3 %v2755_v4 }
 0x4b8   : > { %v2561_v46 = vpop.f32.mrf.mxu1  ;;  %v3089_v7 = vpop.f32.mrf.mxu2 }
 0x4b9   : > { %v3090_v61 = vadd.f32 %v6812_v50, %v3089_v7  ;;  %v2562_v9 = vadd.f32 %v6633_v22, %v2561_v46 }
 0x4ba   : > { %v3338_v28 = vpop.f32.mrf.mxu3 }
 0x4bb   : > { %v6898_v53 = vadd.f32 %v3338_v28, %v3090_v61  ;;  %v6907_v1 = vadd.f32 %v2562_v9, %v1433_v24 }
 0x4bd   : > { %8417 = vst [vmem:[#allocation138_spill] sm:$0xff] %v6898_v53  ;;  %v3440_v40 = vmax.f32 %v6803_v16, %v6898_v53 }
 0x4be   : > { %8418 = vst [vmem:[#allocation139_spill] sm:$0xff] %v6907_v1 }
 0x4c0   : > { %v2563_v38 = vpop.f32.mrf.mxu1  ;;  %v3091_v47 = vpop.f32.mrf.mxu2 }
 0x4c1   : > { %v2564_v59 = vadd.f32 %v6633_v22, %v2563_v38  ;;  %v3092_v4 = vadd.f32 %v6812_v50, %v3091_v47 }
 0x4c2   : > { %v3340_v27 = vpop.f32.mrf.mxu3 }
 0x4c3   : > { %v6909_v7 = vadd.f32 %v2564_v59, %v1434_v45  ;;  %v2756_v61 = vpack.c.bf16 %v2564_v59, %v2562_v9  ;;  %v6911_v28 = vadd.f32 %v3340_v27, %v3092_v4 }
 0x4c5   : > { %8419 = vst [vmem:[#allocation140_spill] sm:$0xff] %v6909_v7  ;;  %v3451_v16 = vmax.f32 %v6825_v2, %v6911_v28  ;;  %3133 = vmatmul.bf16.gmra.mxu2 %v2756_v61  ;;  %v2757_v46 = vpack.c.bf16 %v6909_v7, %v6907_v1 }
 0x4c6   : > { %8420 = vst [vmem:[#allocation141_spill] sm:$0xff] %v6911_v28 }
 0x4c7   : > { %3382 = vmatmul.bf16.gmra.mxu3 %v2757_v46 }
 0x4c8   : > { %v3094_v53 = vpop.f32.mrf.mxu2 }
 0x4c9   : > { %v3095_v22 = vadd.f32 %v6812_v50, %v3094_v53 }
 0x4ca   : > { %v3343_v38 = vpop.f32.mrf.mxu3 }
 0x4cb   : > { %v6918_v47 = vadd.f32 %v3343_v38, %v3095_v22 }
 0x4cd   : > { %8421 = vst [vmem:[#allocation142_spill] sm:$0xff] %v6918_v47  ;;  %v3462_v24 = vmax.f32 %v6836_v55, %v6918_v47  ;;  %v8423_v55 = vmax.f32 %v6764_v23, %v6871_v12 }
 0x4d0   : > { %v3096_v9 = vpop.f32.mrf.mxu2 }
 0x4d1   : > { %v3097_v27 = vadd.f32 %v6812_v50, %v3096_v9 }
 0x4d2   : > { %v3345_v45 = vpop.f32.mrf.mxu3 }
 0x4d3   : > { %v6923_v59 = vadd.f32 %v3345_v45, %v3097_v27 }
 0x4d5   : > { %8422 = vst [vmem:[#allocation143_spill] sm:$0xff] %v6923_v59  ;;  %v3473_v2 = vmax.f32 %v6853_v58, %v6923_v59 }
 0x4d8   : > { %v3099_v4 = vpop.f32.mrf.mxu2 }
 0x4da   : > { %v3348_v61 = vpop.f32.mrf.mxu3 }
 0x4e0   : > { %v3101_v46 = vpop.f32.mrf.mxu2 }
 0x4e1   : > { %v3102_v53 = vadd.f32 %v6812_v50, %v3101_v46 }
 0x4e2   : > { %v3350_v7 = vpop.f32.mrf.mxu3 }
 0x4e3   : > { %v6928_v22 = vadd.f32 %v3350_v7, %v3102_v53 }
 0x4e5   : > { %v6934_v38 = vmax.f32 %v8423_v55, %v6928_v22 }
 0x4e8   : > { %v3104_v9 = vpop.f32.mrf.mxu2 }
 0x4e9   : > { %v3105_v27 = vadd.f32 %v6812_v50, %v3104_v9 }
 0x4ea   : > { %v3353_v45 = vpop.f32.mrf.mxu3 }
 0x4eb   : > { %v6937_v1 = vadd.f32 %v3353_v45, %v3105_v27 }
 0x4ed   : > { %v6940_v58 = vmax.f32 %v3418_v37, %v6937_v1 }
 0x4f0   : > { %v3106_v59 = vpop.f32.mrf.mxu2 }
 0x4f1   : > { %v3107_v46 = vadd.f32 %v6812_v50, %v3106_v59 }
 0x4f2   : > { %v3355_v7 = vpop.f32.mrf.mxu3 }
 0x4f3   : > { %v6943_v53 = vadd.f32 %v3355_v7, %v3107_v46 }
 0x4f5   : > { %8424 = vst [vmem:[#allocation144_spill] sm:$0xff] %v6943_v53  ;;  %v6946_v47 = vmax.f32 %v3429_v14, %v6943_v53 }
 0x4f8   : > { %v3109_v23 = vpop.f32.mrf.mxu2 }
 0x4f9   : > { %v3110_v55 = vadd.f32 %v6812_v50, %v3109_v23 }
 0x4fa   : > { %v3358_v28 = vpop.f32.mrf.mxu3 }
 0x4fb   : > { %v6949_v9 = vadd.f32 %v3358_v28, %v3110_v55 }
 0x4fd   : > { %8425 = vst [vmem:[#allocation145_spill] sm:$0xff] %v6949_v9  ;;  %v6952_v27 = vmax.f32 %v3440_v40, %v6949_v9 }
 0x4ff   : > { %8426 = vst [vmem:[#allocation146_spill] sm:$0xff] %v6952_v27 }
 0x500   : > { %v3111_v37 = vpop.f32.mrf.mxu2 }
 0x501   : > { %v3112_v45 = vadd.f32 %v6812_v50, %v3111_v37  ;;  %v3100_v37 = vadd.f32 %v6812_v50, %v3099_v4 }
 0x502   : > { %v3360_v13 = vpop.f32.mrf.mxu3 }
 0x503   : > { %v6955_v59 = vadd.f32 %v3360_v13, %v3112_v45  ;;  %v3349_v45 = vadd.f32 %v3348_v61, %v3100_v37 }
 0x505   : > { %8427 = vst [vmem:[#allocation147_spill] sm:$0xff] %v6955_v59  ;;  %v6958_v46 = vmax.f32 %v3451_v16, %v6955_v59 }
 0x507   : > { %8428 = vst [vmem:[#allocation148_spill] sm:$0xff] %v6958_v46 }
 0x508   : > { %v3114_v14 = vpop.f32.mrf.mxu2 }
 0x509   : > { %v3115_v7 = vadd.f32 %v6812_v50, %v3114_v14 }
 0x50a   : > { %v3363_v53 = vpop.f32.mrf.mxu3 }
 0x50b   : > { %v6961_v23 = vadd.f32 %v3363_v53, %v3115_v7 }
 0x50d   : > { %8429 = vst [vmem:[#allocation149_spill] sm:$0xff] %v6961_v23  ;;  %v6964_v28 = vmax.f32 %v3462_v24, %v6961_v23  ;;  %v8433_v24 = vmax.f32 %v6747_v35, %v6858_v25 }
 0x50f   : > { %8430 = vst [vmem:[#allocation150_spill] sm:$0xff] %v6964_v28  ;;  %v3397_v7 = vmax.f32 %v8433_v24, %v3349_v45 }
 0x510   : > { %v3116_v40 = vpop.f32.mrf.mxu2 }
 0x511   : > { %v3117_v55 = vadd.f32 %v6812_v50, %v3116_v40 }
 0x512   : > { %v3365_v9 = vpop.f32.mrf.mxu3 }
 0x513   : > { %v6968_v13 = vadd.f32 %v3365_v9, %v3117_v55 }
 0x515   : > { %8431 = vst [vmem:[#allocation151_spill] sm:$0xff] %v6968_v13  ;;  %v6971_v16 = vmax.f32 %v3473_v2, %v6968_v13 }
 0x517   : > { %8432 = vst [vmem:[#allocation152_spill] sm:$0xff] %v6971_v16 }
 0x518   : > { %v3119_v59 = vpop.f32.mrf.mxu2 }
 0x519   : > { %v3120_v14 = vadd.f32 %v6812_v50, %v3119_v59 }
 0x51a   : > { %v3368_v53 = vpop.f32.mrf.mxu3 }
 0x51b   : > { %v3369_v23 = vadd.f32 %v3368_v53, %v3120_v14 }
 0x51d   : > { %v3398_v28 = vmax.f32 %v3397_v7, %v3369_v23 }
 0x51f   : > { %v3476_v40 = vsub.f32 %v5892_v0, %v3398_v28  ;;  %v3484_v4 = vsub.f32 %v5972_v52, %v3398_v28  ;;  %v3492_v9 = vsub.f32 %v6073_v6, %v3398_v28  ;;  %v3500_v2 = vsub.f32 %v6206_v41, %v3398_v28 }
 0x520   : > { %v3508_v61 = vsub.f32 %v6302_v33, %v3398_v28  ;;  %v3516_v55 = vsub.f32 %v6435_v3, %v3398_v28  ;;  %v3524_v59 = vsub.f32 %v6532_v32, %v3398_v28  ;;  %v3532_v37 = vsub.f32 %v6657_v30, %v3398_v28  ;;  %v3121_v35 = vpop.f32.mrf.mxu2 }
 0x521   : > { %v3540_v14 = vsub.f32 %v6741_v18, %v3398_v28  ;;  %v3548_v53 = vsub.f32 %v6858_v25, %v3398_v28  ;;  %v3572_v0 = vmul.f32 1.442695, %v3476_v40  ;;  %v3588_v24 = vmul.f32 1.442695, %v3484_v4 }
 0x522   : > { %v3122_v52 = vadd.f32 %v6812_v50, %v3121_v35  ;;  %v3370_v6 = vpop.f32.mrf.mxu3  ;;  %v3604_v7 = vmul.f32 1.442695, %v3492_v9  ;;  %v3620_v41 = vmul.f32 1.442695, %v3500_v2  ;;  %v3556_v33 = vsub.f32 %v3349_v45, %v3398_v28 }
 0x523   : > { %4955 = vpow2.f32 %v3572_v0  ;;  %v3636_v3 = vmul.f32 1.442695, %v3508_v61  ;;  %v3652_v13 = vmul.f32 1.442695, %v3516_v55  ;;  %v3668_v30 = vmul.f32 1.442695, %v3524_v59 }
 0x524   : > { %4957 = vpow2.f32 %v3588_v24  ;;  %v6988_v32 = vadd.f32 %v3370_v6, %v3122_v52  ;;  %v3564_v16 = vsub.f32 %v3369_v23, %v3398_v28  ;;  %v3684_v18 = vmul.f32 1.442695, %v3532_v37 }
 0x525   : > { %4959 = vpow2.f32 %v3604_v7  ;;  %v3700_v4 = vmul.f32 1.442695, %v3540_v14  ;;  %v3716_v9 = vmul.f32 1.442695, %v3548_v53  ;;  %v3732_v2 = vmul.f32 1.442695, %v3556_v33 }
 0x526   : > { %4961 = vpow2.f32 %v3620_v41  ;;  %v6992_v25 = vmax.f32 %v6934_v38, %v6988_v32  ;;  %v3748_v53 = vmul.f32 1.442695, %v3564_v16 }
 0x527   : > { %4963 = vpow2.f32 %v3636_v3 }
 0x528   : > { %v3124_v40 = vpop.f32.mrf.mxu2  ;;  %4965 = vpow2.f32 %v3652_v13  ;;  %v3477_v61 = vsub.f32 %v5904_v17, %v6992_v25  ;;  %v3485_v23 = vsub.f32 %v5988_v29, %v6992_v25  ;;  %v3493_v28 = vsub.f32 %v6093_v20, %v6992_v25 }
 0x529   : > { %v6994_v45 = vpop.eup %4955  ;;  %4967 = vpow2.f32 %v3668_v30  ;;  %v3501_v38 = vsub.f32 %v6222_v43, %v6992_v25  ;;  %v3509_v59 = vsub.f32 %v6327_v44, %v6992_v25  ;;  %v3517_v13 = vsub.f32 %v6451_v54, %v6992_v25 }
 0x52a   : > { %v7002_v55 = vpop.eup %4957  ;;  %v3373_v37 = vpop.f32.mrf.mxu3  ;;  %4969 = vpow2.f32 %v3684_v18  ;;  %v3525_v20 = vsub.f32 %v6550_v51, %v6992_v25  ;;  %v3533_v29 = vsub.f32 %v6671_v8, %v6992_v25  ;;  %v3541_v43 = vsub.f32 %v6758_v11, %v6992_v25 }
 0x52b   : > { %v3764_v17 = vadd.f32 %v7002_v55, %v6994_v45  ;;  %v7016_v35 = vpop.eup %4959  ;;  %4971 = vpow2.f32 %v3700_v4  ;;  %v3549_v44 = vsub.f32 %v6871_v12, %v6992_v25  ;;  %v3557_v54 = vsub.f32 %v6928_v22, %v6992_v25 }
 0x52c   : > { %v7024_v14 = vpop.eup %4961  ;;  %4973 = vpow2.f32 %v3716_v9  ;;  %v3574_v0 = vmul.f32 1.442695, %v3477_v61  ;;  %v3590_v24 = vmul.f32 1.442695, %v3485_v23  ;;  %v3606_v52 = vmul.f32 1.442695, %v3493_v28 }
 0x52d   : > { %v3765_v51 = vadd.f32 %v7016_v35, %v3764_v17  ;;  %v7027_v8 = vpop.eup %4963  ;;  %4975 = vpow2.f32 %v3732_v2  ;;  %v3125_v11 = vadd.f32 %v6812_v50, %v3124_v40  ;;  %v3622_v7 = vmul.f32 1.442695, %v3501_v38 }
 0x52e   : > { %v7030_v6 = vpop.eup %4965  ;;  %4977 = vpow2.f32 %v3574_v0  ;;  %v3565_v3 = vsub.f32 %v6988_v32, %v6992_v25  ;;  %v3638_v30 = vmul.f32 1.442695, %v3509_v59  ;;  %v3654_v40 = vmul.f32 1.442695, %v3517_v13 }
 0x52f   : > { %v3766_v12 = vadd.f32 %v7024_v14, %v3765_v51  ;;  %v7033_v22 = vpop.eup %4967  ;;  %4979 = vpow2.f32 %v3590_v24  ;;  %v7042_v4 = vadd.f32 %v3373_v37, %v3125_v11  ;;  %v3670_v61 = vmul.f32 1.442695, %v3525_v20 }
 0x530   : > { %v3126_v16 = vpop.f32.mrf.mxu2  ;;  %v7035_v41 = vpop.eup %4969  ;;  %4981 = vpow2.f32 %v3748_v53  ;;  %v3686_v23 = vmul.f32 1.442695, %v3533_v29  ;;  %v3702_v17 = vmul.f32 1.442695, %v3541_v43  ;;  %v3718_v32 = vmul.f32 1.442695, %v3549_v44 }
 0x531   : > { %v3767_v33 = vadd.f32 %v7027_v8, %v3766_v12  ;;  %v7040_v18 = vpop.eup %4971  ;;  %4983 = vpow2.f32 %v3606_v52  ;;  %v3127_v28 = vadd.f32 %v6812_v50, %v3126_v16  ;;  %v7052_v25 = vmax.f32 %v6940_v58, %v7042_v4 }
 0x532   : > { %v7044_v9 = vpop.eup %4973  ;;  %4985 = vpow2.f32 %v3622_v7  ;;  %v3375_v59 = vpop.f32.mrf.mxu3  ;;  %v3734_v53 = vmul.f32 1.442695, %v3557_v54  ;;  %v3750_v20 = vmul.f32 1.442695, %v3565_v3 }
 0x533   : > { %v3768_v2 = vadd.f32 %v7030_v6, %v3767_v33  ;;  %v7048_v38 = vpop.eup %4975  ;;  %4987 = vpow2.f32 %v3638_v30  ;;  %v3478_v51 = vsub.f32 %v5912_v36, %v7052_v25  ;;  %v3486_v43 = vsub.f32 %v5996_v56, %v7052_v25 }
 0x534   : > { %v7054_v13 = vpop.eup %4977  ;;  %4989 = vpow2.f32 %v3654_v40  ;;  %v3494_v58 = vsub.f32 %v6105_v39, %v7052_v25  ;;  %v3502_v24 = vsub.f32 %v6230_v63, %v7052_v25  ;;  %v7072_v52 = vadd.f32 %v3375_v59, %v3127_v28 }
 0x535   : > { %v3769_v37 = vadd.f32 %v7033_v22, %v3768_v2  ;;  %v7057_v29 = vpop.eup %4979  ;;  %4991 = vpow2.f32 %v3670_v61  ;;  %v3510_v36 = vsub.f32 %v6339_v62, %v7052_v25  ;;  %v3518_v56 = vsub.f32 %v6459_v21, %v7052_v25 }
 0x536   : > { %v7065_v44 = vpop.eup %4981  ;;  %v3775_v54 = vadd.f32 %v7057_v29, %v7054_v13  ;;  %v3526_v39 = vsub.f32 %v6562_v5, %v7052_v25  ;;  %4993 = vpow2.f32 %v3686_v23  ;;  %v3534_v63 = vsub.f32 %v6679_v42, %v7052_v25 }
 0x537   : > { %v3770_v0 = vadd.f32 %v7035_v41, %v3769_v37  ;;  %v7074_v11 = vpop.eup %4983  ;;  %4995 = vpow2.f32 %v3702_v17  ;;  %v3542_v62 = vsub.f32 %v6769_v19, %v7052_v25  ;;  %v3550_v21 = vsub.f32 %v6878_v10, %v7052_v25 }
 0x538   : > { %v3776_v7 = vadd.f32 %v7074_v11, %v3775_v54  ;;  %v7086_v16 = vpop.eup %4985  ;;  %v3558_v5 = vsub.f32 %v6937_v1, %v7052_v25  ;;  %4997 = vpow2.f32 %v3718_v32  ;;  %v3576_v42 = vmul.f32 1.442695, %v3478_v51 }
 0x539   : > { %v3771_v12 = vadd.f32 %v7040_v18, %v3770_v0  ;;  %v7094_v33 = vpop.eup %4987  ;;  %4999 = vpow2.f32 %v3734_v53  ;;  %v3592_v2 = vmul.f32 1.442695, %v3486_v43  ;;  %v3608_v61 = vmul.f32 1.442695, %v3494_v58 }
 0x53a   : > { %v3777_v30 = vadd.f32 %v7086_v16, %v3776_v7  ;;  %v7098_v40 = vpop.eup %4989  ;;  %5001 = vpow2.f32 %v3576_v42  ;;  %v3624_v1 = vmul.f32 1.442695, %v3502_v24  ;;  %v7106_v28 = vmax.f32 %v6946_v47, %v7072_v52 }
 0x53b   : > { %v3772_v3 = vadd.f32 %v7044_v9, %v3771_v12  ;;  %v7102_v23 = vpop.eup %4991  ;;  %5003 = vpow2.f32 %v3592_v2  ;;  %v3640_v53 = vmul.f32 1.442695, %v3510_v36  ;;  %v3656_v43 = vmul.f32 1.442695, %v3518_v56 }
 0x53c   : > { %v3778_v10 = vadd.f32 %v7094_v33, %v3777_v30  ;;  %v7108_v17 = vpop.eup %4993  ;;  %5005 = vpow2.f32 %v3750_v20  ;;  %v3479_v0 = vsub.f32 %v5924_v57, %v7106_v28  ;;  %v3487_v20 = vsub.f32 %v6012_v48, %v7106_v28 }
 0x53d   : > { %v3773_v19 = vadd.f32 %v7048_v38, %v3772_v3  ;;  %v7114_v37 = vpop.eup %4995  ;;  %5007 = vpow2.f32 %v3608_v61  ;;  %v3566_v24 = vsub.f32 %v7042_v4, %v7052_v25  ;;  %v3672_v36 = vmul.f32 1.442695, %v3526_v39  ;;  %v8436_v25 = vld [vmem:[#allocation100_spill] sm:$0xff] }
 0x53e   : > { %v3779_v59 = vadd.f32 %v7098_v40, %v3778_v10  ;;  %v7116_v51 = vpop.eup %4997  ;;  %v3688_v12 = vmul.f32 1.442695, %v3534_v63  ;;  %v3495_v56 = vsub.f32 %v6125_v31, %v7106_v28  ;;  %v3503_v57 = vsub.f32 %v6246_v34, %v7106_v28  ;;  %v8438_v10 = vld [vmem:[#allocation137_spill] sm:$0xff] }
 0x53f   : > { %v7111_v32 = vadd.f32 %v7065_v44, %v3773_v19  ;;  %v7119_v58 = vpop.eup %4999  ;;  %v3511_v48 = vsub.f32 %v6359_v15, %v7106_v28  ;;  %v3704_v42 = vmul.f32 1.442695, %v3542_v62  ;;  %v3720_v61 = vmul.f32 1.442695, %v3550_v21 }
 0x540   : > { %v3780_v47 = vadd.f32 %v7102_v23, %v3779_v59  ;;  %v7126_v54 = vpop.eup %5001  ;;  %v8439_v59 = vld [vmem:[#allocation144_spill] sm:$0xff]  ;;  %v3736_v15 = vmul.f32 1.442695, %v3558_v5  ;;  %v3752_v21 = vmul.f32 1.442695, %v3566_v24 }
 0x541   : > { %5009 = vrcp.f32 %v7111_v32  ;;  %8434 = vst [vmem:[#allocation153_spill] sm:$0xff] %v7126_v54  ;;  %v7132_v7 = vpop.eup %5003  ;;  %v3861_v34 = vand.u32 2147483647, %v7111_v32  ;;  %v3863_v46 = vand.u32 2147483648, %v7111_v32  ;;  %vm3857_vm2 = vweird.f32 %v7111_v32 }
 0x542   : > { %5011 = vpow2.f32 %v3624_v1  ;;  %8435 = vst [vmem:[#allocation154_spill] sm:$0xff] %v7132_v7  ;;  %v3781_v3 = vadd.f32 %v7108_v17, %v3780_v47  ;;  %v7139_v30 = vpop.eup %5005  ;;  %v3786_v4 = vadd.f32 %v7132_v7, %v7126_v54  ;;  %v8458_v54 = vld [vmem:[#allocation69_spill] sm:$0xff] }
 0x543   : > { %5013 = vpow2.f32 %v3640_v53  ;;  %v7147_v63 = vpop.eup %5007  ;;  %v3578_v53 = vmul.f32 1.442695, %v3479_v0  ;;  %vm3862_vm3 = vcmp.eq.f32.partialorder %v3861_v34, 8.507059e+37  ;;  %v7189_v34 = vmul.f32 1.442695, %v3511_v48 }
 0x544   : > { %8437 = vst [vmem:[#allocation100_spill] sm:$0xff] %v7147_v63  ;;  %v3782_v2 = vadd.f32 %v7114_v37, %v3781_v3  ;;  %5015 = vpow2.f32 %v3656_v43  ;;  %v3787_v19 = vadd.f32 %v7147_v63, %v3786_v4  ;;  %v8456_v63 = vld [vmem:[#allocation45_spill] sm:$0xff] }
 0x545   : > { %5017 = vpow2.f32 %v3672_v36 }
 0x546   : > { %v3783_v3 = vadd.f32 %v7116_v51, %v3782_v2  ;;  %5019 = vpow2.f32 %v3688_v12 }
 0x547   : > { %v5010_v62 = vpop.eup %5009  ;;  %5021 = vpow2.f32 %v3704_v42 }
 0x548   : > { %v7159_v47 = vpop.eup %5011  ;;  %v3853_v43 = vmul.f32 %v5010_v62, %v7111_v32  ;;  %v3784_v31 = vadd.f32 %v7119_v58, %v3783_v3  ;;  %5023 = vpow2.f32 %v3720_v61  ;;  %vm3858_vm1 = vweird.f32 %v5010_v62 }
 0x549   : > { %8440 = vst [vmem:[#allocation137_spill] sm:$0xff] %v7159_v47  ;;  %v3788_v4 = vadd.f32 %v7159_v47, %v3787_v19  ;;  %v7165_v39 = vpop.eup %5013  ;;  %5025 = vpow2.f32 %v3736_v15  ;;  %v3594_v19 = vmul.f32 1.442695, %v3487_v20  ;;  %vm3859_vm4 = vmor %vm3857_vm2, %vm3858_vm1  ;;  %v3864_v61 = vor.u32 1.1754944e-38, %v3863_v46 }
 0x54a   : > { %8441 = vst [vmem:[#allocation144_spill] sm:$0xff] %v7165_v39  ;;  %v3854_v1 = vsub.f32 1.0, %v3853_v43  ;;  %v7170_v36 = vpop.eup %5015  ;;  %v7173_v24 = vadd.f32 %v7139_v30, %v3784_v31  ;;  %5027 = vpow2.f32 %v3752_v21  ;;  %v3610_v15 = vmul.f32 1.442695, %v3495_v56  ;;  %v8446_v31 = vld [vmem:[#allocation6_spill] sm:$0xff] }
 0x54b   : > { %v3789_v2 = vadd.f32 %v7165_v39, %v3788_v4  ;;  %8442 = vst [vmem:[#allocation155_spill] sm:$0xff] %v7170_v36  ;;  %v7176_v43 = vpop.eup %5017  ;;  %5029 = vpow2.f32 %v3578_v53  ;;  %v3626_v32 = vmul.f32 1.442695, %v3503_v57  ;;  %v4253_v4 = vlaneseq }
 0x54c   : > { %v3855_v5 = vmul.f32 %v5010_v62, %v3854_v1  ;;  %8443 = vst [vmem:[#allocation156_spill] sm:$0xff] %v7176_v43  ;;  %v7181_v42 = vpop.eup %5019  ;;  %5031 = vrcp.f32 %v7173_v24  ;;  %v3876_v46 = vand.u32 2147483647, %v7173_v24  ;;  %v7222_v39 = vstv %s4834_s23 }
 0x54d   : > { %v3790_v12 = vadd.f32 %v7170_v36, %v3789_v2  ;;  %8444 = vst [vmem:[#allocation157_spill] sm:$0xff] %v7181_v42  ;;  %v7186_v20 = vpop.eup %5021  ;;  %5033 = vpow2.f32 %v3594_v19  ;;  %vm3872_vm5 = vweird.f32 %v7173_v24 }
 0x54e   : > { %v3856_v0 = vadd.f32 %v5010_v62, %v3855_v5  ;;  %v7191_v53 = vpop.eup %5023  ;;  %5035 = vpow2.f32 %v3610_v15  ;;  %v8451_v15 = vld [vmem:[#allocation22_spill] sm:$0xff]  ;;  %vm7243_vm6 = vcmp.eq.f32.partialorder %v3876_v46, 8.507059e+37 }
 0x54f   : > { %v3791_v3 = vadd.f32 %v7176_v43, %v3790_v12  ;;  %v7194_v2 = vpop.eup %5025  ;;  %v8447_v43 = vld [vmem:[#allocation14_spill] sm:$0xff]  ;;  %5037 = vpow2.f32 %v3626_v32 }
 0x550   : > { %v3860_v1 = vsel %vm3859_vm4, %v5010_v62, %v3856_v0  ;;  %v7200_v48 = vpop.eup %5027  ;;  %5039 = vpow2.f32 %v7189_v34 }
 0x551   : > { %v3865_v21 = vsel %vm3862_vm3, %v3864_v61, %v3860_v1  ;;  %v7207_v1 = vpop.eup %5029 }
 0x552   : > { %v3866_v56 = vmul.f32 %v6994_v45, %v3865_v21  ;;  %v3972_v5 = vmul.f32 %v7002_v55, %v3865_v21  ;;  %v3980_v62 = vmul.f32 %v7016_v35, %v3865_v21  ;;  %v3988_v57 = vmul.f32 %v7024_v14, %v3865_v21 }
 0x553   : > { %v3996_v12 = vmul.f32 %v7027_v8, %v3865_v21  ;;  %v4004_v0 = vmul.f32 %v7030_v6, %v3865_v21  ;;  %v4012_v61 = vmul.f32 %v7033_v22, %v3865_v21  ;;  %v4020_v19 = vmul.f32 %v7035_v41, %v3865_v21  ;;  %v5032_v8 = vpop.eup %5031 }
 0x554   : > { %v4028_v45 = vmul.f32 %v7040_v18, %v3865_v21  ;;  %v4036_v55 = vmul.f32 %v7044_v9, %v3865_v21  ;;  %v7212_v35 = vmul.f32 %v7048_v38, %v3865_v21  ;;  %v7215_v14 = vmul.f32 %v7065_v44, %v3865_v21 }
 0x555   : > { %v4060_v6 = vmul.f32 %v3866_v56, %v8446_v31  ;;  %v4068_v22 = vmul.f32 %v3972_v5, %v8447_v43  ;;  %v8448_v41 = vsub.f32 %v6475_v60, %v7106_v28  ;;  %v7225_v18 = vstv %s7179_s18  ;;  %v7235_v31 = vpop.eup %5033 }
 0x556   : > { %8445 = vst [vmem:[#allocation158_spill] sm:$0xff] %v7215_v14  ;;  %v8449_v9 = vsub.f32 %v8436_v25, %v7106_v28  ;;  %v8450_v44 = vsub.f32 %v6693_v49, %v7106_v28  ;;  %v7237_v43 = vshrl.u32 %v4253_v4, 7  ;;  %v3878_v60 = vand.u32 2147483648, %v7173_v24  ;;  %v8454_v49 = vld [vmem:[#allocation33_spill] sm:$0xff]  ;;  %v7256_v7 = vpop.eup %5035 }
 0x557   : > { %v3658_v36 = vmul.f32 1.442695, %v8448_v41  ;;  %v4076_v56 = vmul.f32 %v3980_v62, %v8451_v15  ;;  %v4156_v5 = vadd.f32 %v4068_v22, %v4060_v6  ;;  %v3868_v41 = vmul.f32 %v5032_v8, %v7173_v24  ;;  %v8457_v6 = vld [vmem:[#allocation57_spill] sm:$0xff] }
 0x558   : > { %v3674_v38 = vmul.f32 1.442695, %v8449_v9  ;;  %v7233_v21 = vmul.f32 1.442695, %v8450_v44  ;;  %v4084_v9 = vmul.f32 %v3988_v57, %v8454_v49  ;;  %v3792_v44 = vadd.f32 %v7181_v42, %v3791_v3  ;;  %v8459_v57 = vld [vmem:[#allocation81_spill] sm:$0xff] }
 0x559   : > { %v8455_v4 = vsub.f32 %v6786_v26, %v7106_v28  ;;  %v4092_v62 = vmul.f32 %v3996_v12, %v8456_v63  ;;  %v4100_v22 = vmul.f32 %v4004_v0, %v8457_v6  ;;  %v4157_v15 = vadd.f32 %v4156_v5, %v4076_v56  ;;  %v8460_v3 = vld [vmem:[#allocation93_spill] sm:$0xff]  ;;  %v8461_v12 = vld [vmem:[#allocation106_spill] sm:$0xff] }
 0x55a   : > { %v3869_v46 = vsub.f32 1.0, %v3868_v41  ;;  %v4108_v27 = vmul.f32 %v4012_v61, %v8458_v54  ;;  %v4116_v49 = vmul.f32 %v4020_v19, %v8459_v57  ;;  %v4124_v42 = vmul.f32 %v4028_v45, %v8460_v3  ;;  %v7273_v41 = vpop.eup %5037  ;;  %v3129_v57 = vpop.f32.mrf.mxu2 }
 0x55b   : > { %v7252_v47 = vmul.f32 1.442695, %v8455_v4  ;;  %v3793_v32 = vadd.f32 %v7186_v20, %v3792_v44  ;;  %v4158_v14 = vadd.f32 %v4157_v15, %v4084_v9  ;;  %v7264_v26 = vadd.s32 %v7222_v39, %v7237_v43  ;;  %v7304_v3 = vpop.eup %5039 }
 0x55c   : > { %v3870_v63 = vmul.f32 %v5032_v8, %v3869_v46  ;;  %vm3873_vm7 = vweird.f32 %v5032_v8  ;;  %v4132_v0 = vmul.f32 %v4036_v55, %v8461_v12  ;;  %v4255_v56 = vadd.s32 8, %v7237_v43 }
 0x55d   : > { %v3794_v54 = vadd.f32 %v7191_v53, %v3793_v32  ;;  %v3797_v61 = vadd.f32 %v7235_v31, %v7207_v1  ;;  %v4159_v19 = vadd.f32 %v4158_v14, %v4092_v62  ;;  %v3879_v5 = vor.u32 1.1754944e-38, %v3878_v60  ;;  %vm3874_vm8 = vmor %vm3872_vm5, %vm3873_vm7 }
 0x55e   : > { %v3871_v45 = vadd.f32 %v5032_v8, %v3870_v63  ;;  %5041 = vpow2.f32 %v3658_v36  ;;  %v8462_v55 = vsub.f32 %v8438_v10, %v7106_v28  ;;  %vm4273_vm9 = vcmp.lt.s32.totalorder %v7264_v26, %v7225_v18  ;;  %v8465_v63 = vld [vmem:[#allocation15_spill] sm:$0xff] }
 0x55f   : > { %v3795_v9 = vadd.f32 %v7194_v2, %v3794_v54  ;;  %v3798_v4 = vadd.f32 %v7256_v7, %v3797_v61  ;;  %v4160_v34 = vadd.f32 %v4159_v19, %v4100_v22  ;;  %5043 = vpow2.f32 %v3674_v38  ;;  %v3378_v19 = vpop.f32.mrf.mxu3 }
 0x560   : > { %v3722_v44 = vmul.f32 1.442695, %v8462_v55  ;;  %v3875_v24 = vsel %vm3874_vm8, %v5032_v8, %v3871_v45  ;;  %v4264_v10 = vadd.s32 %v7222_v39, %v4255_v56  ;;  %5045 = vpow2.f32 %v7233_v21  ;;  %v8470_v45 = vld [vmem:[#allocation158_spill] sm:$0xff] }
 0x561   : > { %v3880_v36 = vsel %vm7243_vm6, %v3879_v5, %v3875_v24  ;;  %v7294_v14 = vadd.f32 %v7200_v48, %v3795_v9  ;;  %v3799_v60 = vadd.f32 %v7273_v41, %v3798_v4  ;;  %v4161_v62 = vadd.f32 %v4160_v34, %v4108_v27  ;;  %v8472_v55 = vld [vmem:[#allocation34_spill] sm:$0xff] }
 0x562   : > { %v3881_v6 = vmul.f32 %v7054_v13, %v3880_v36  ;;  %v3973_v22 = vmul.f32 %v7057_v29, %v3880_v36  ;;  %v3981_v8 = vmul.f32 %v7074_v11, %v3880_v36  ;;  %v3989_v15 = vmul.f32 %v7086_v16, %v3880_v36 }
 0x563   : > { %v3997_v38 = vmul.f32 %v7094_v33, %v3880_v36  ;;  %v4005_v25 = vmul.f32 %v7098_v40, %v3880_v36  ;;  %v4013_v46 = vmul.f32 %v7102_v23, %v3880_v36  ;;  %v4162_v27 = vadd.f32 %v4161_v62, %v4116_v49  ;;  %v8464_v23 = vld [vmem:[#allocation7_spill] sm:$0xff]  ;;  %v8474_v62 = vld [vmem:[#allocation146_spill] sm:$0xff] }
 0x564   : > { %v4021_v13 = vmul.f32 %v7108_v17, %v3880_v36  ;;  %v4029_v29 = vmul.f32 %v7114_v37, %v3880_v36  ;;  %v4037_v11 = vmul.f32 %v7116_v51, %v3880_v36  ;;  %v7315_v16 = vpop.eup %5041  ;;  %v7318_v33 = vmul.f32 %v7119_v58, %v3880_v36  ;;  %v8467_v58 = vld [vmem:[#allocation118_spill] sm:$0xff] }
 0x565   : > { %v7321_v40 = vmul.f32 %v7139_v30, %v3880_v36  ;;  %v4061_v32 = vmul.f32 %v3881_v6, %v8464_v23  ;;  %v4069_v12 = vmul.f32 %v3973_v22, %v8465_v63  ;;  %v7325_v49 = vpop.eup %5043  ;;  %v4163_v17 = vadd.f32 %v4162_v27, %v4124_v42  ;;  %v8469_v42 = vld [vmem:[#allocation130_spill] sm:$0xff] }
 0x566   : > { %v8466_v37 = vsub.f32 %v8439_v59, %v7106_v28  ;;  %v3130_v56 = vadd.f32 %v6812_v50, %v3129_v57  ;;  %v4140_v54 = vmul.f32 %v7212_v35, %v8467_v58  ;;  %5047 = vpow2.f32 %v7252_v47  ;;  %v8471_v47 = vld [vmem:[#allocation23_spill] sm:$0xff]  ;;  %v7362_v34 = vpop.eup %5045  ;;  %v8473_v36 = vld [vmem:[#allocation46_spill] sm:$0xff]  ;;  %v8480_v58 = vld [vmem:[#allocation40_spill] sm:$0xff] }
 0x567   : > { %v8468_v30 = vsub.f32 %v7072_v52, %v7106_v28  ;;  %v4148_v21 = vmul.f32 %v8470_v45, %v8469_v42  ;;  %v4164_v5 = vadd.f32 %v4163_v17, %v4132_v0  ;;  %vm4274_vm10 = vcmp.lt.s32.totalorder %v4264_v10, %v7225_v18  ;;  %v8476_v57 = vld [vmem:[#allocation70_spill] sm:$0xff]  ;;  %v8483_v42 = vld [vmem:[#allocation76_spill] sm:$0xff] }
 0x568   : > { %v3738_v51 = vmul.f32 1.442695, %v8466_v37  ;;  %5049 = vpow2.f32 %v3722_v44  ;;  %v8243_v59 = vmov 0.0   ;;  %v4077_v35 = vmul.f32 %v3981_v8, %v8471_v47  ;;  %v8475_v8 = vld [vmem:[#allocation58_spill] sm:$0xff] }
 0x569   : > { %v3754_v61 = vmul.f32 1.442695, %v8468_v30  ;;  %v7346_v50 = vsel %vm4273_vm9, 1.0, %v8243_v59  ;;  %v4167_v52 = vadd.f32 %v4069_v12, %v4061_v32  ;;  %5051 = vrcp.f32 %v7294_v14  ;;  %v8477_v23 = vld [vmem:[#allocation82_spill] sm:$0xff] }
 0x56a   : > { %v4165_v28 = vadd.f32 %v4164_v5, %v4140_v54  ;;  %5053 = vpow2.f32 %v3738_v51  ;;  %v3800_v9 = vadd.f32 %v7304_v3, %v3799_v60  ;;  %v7351_v0 = vadd.f32 %v3378_v19, %v3130_v56  ;;  %v8479_v51 = vld [vmem:[#allocation28_spill] sm:$0xff] }
 0x56b   : > { %v4085_v26 = vmul.f32 %v3989_v15, %v8472_v55  ;;  %v4168_v44 = vadd.f32 %v4167_v52, %v4077_v35  ;;  %v7360_v4 = vsel %vm4274_vm10, 1.0, %v8243_v59  ;;  %5055 = vpow2.f32 %v3754_v61  ;;  %v8482_v61 = vld [vmem:[#allocation64_spill] sm:$0xff] }
 0x56c   : > { %v7364_v24 = vadd.f32 %v4165_v28, %v4148_v21  ;;  %v4093_v10 = vmul.f32 %v3997_v38, %v8473_v36  ;;  %v3801_v60 = vadd.f32 %v7315_v16, %v3800_v9  ;;  %v7370_v6 = vmax.f32 %v8474_v62, %v7351_v0  ;;  %v7372_v22 = vpop.eup %5047  ;;  %v8478_v38 = vld [vmem:[#allocation94_spill] sm:$0xff]  ;;  %v8484_v21 = vld [vmem:[#allocation107_spill] sm:$0xff]  ;;  %v8485_v55 = vld [vmem:[#allocation88_spill] sm:$0xff] }
 0x56d   : > { %v4101_v15 = vmul.f32 %v4005_v25, %v8475_v8  ;;  %v4109_v27 = vmul.f32 %v4013_v46, %v8476_v57  ;;  %v4117_v32 = vmul.f32 %v4021_v13, %v8477_v23  ;;  %v4169_v63 = vadd.f32 %v4168_v44, %v4085_v26  ;;  %v8481_v46 = vld [vmem:[#allocation52_spill] sm:$0xff]  ;;  %v8486_v44 = vld [vmem:[#allocation101_spill] sm:$0xff]  ;;  %v8491_v36 = vld [vmem:[#allocation119_spill] sm:$0xff] }
 0x56e   : > { %v7377_v12 = vpop.eup %5049  ;;  %4244 = vst [vmem:[%s7356_s28] sm:$0xff] %v7364_v24  ;;  %v4125_v17 = vmul.f32 %v4029_v29, %v8478_v38  ;;  %v3802_v37 = vadd.f32 %v7325_v49, %v3801_v60  ;;  %v3480_v56 = vsub.f32 %v8479_v51, %v7370_v6  ;;  %v3488_v54 = vsub.f32 %v8480_v58, %v7370_v6  ;;  %v8488_v57 = vld [vmem:[#allocation125_spill] sm:$0xff]  ;;  %v8489_v38 = vld [vmem:[#allocation138_spill] sm:$0xff]  ;;  %v3131_v60 = vpop.f32.mrf.mxu2  ;;  %v8492_v23 = vld [vmem:[#allocation131_spill] sm:$0xff] }
 0x56f   : > { %v5052_v25 = vpop.eup %5051  ;;  %v4170_v30 = vadd.f32 %v4169_v63, %v4093_v10  ;;  %v3496_v13 = vsub.f32 %v8481_v46, %v7370_v6  ;;  %v3504_v19 = vsub.f32 %v8482_v61, %v7370_v6  ;;  %v4133_v5 = vmul.f32 %v4037_v11, %v8484_v21  ;;  %v8487_v10 = vld [vmem:[#allocation113_spill] sm:$0xff] }
 0x570   : > { %v7393_v29 = vpop.eup %5053  ;;  %v3883_v47 = vmul.f32 %v5052_v25, %v7294_v14  ;;  %v3891_v35 = vand.u32 2147483647, %v7294_v14  ;;  %v3803_v52 = vadd.f32 %v7362_v34, %v3802_v37  ;;  %v4256_v11 = vadd.s32 16, %v7237_v43  ;;  %v8490_v51 = vld [vmem:[#allocation145_spill] sm:$0xff] }
 0x571   : > { %v7399_v28 = vpop.eup %5055  ;;  %v4171_v9 = vadd.f32 %v4170_v30, %v4101_v15  ;;  %v3893_v15 = vand.u32 2147483648, %v7294_v14  ;;  %vm3888_vm11 = vweird.f32 %v5052_v25  ;;  %v4149_v45 = vmul.f32 %v7321_v40, %v8492_v23  ;;  %v8495_v23 = vld [vmem:[#allocation100_spill] sm:$0xff] }
 0x572   : > { %v3884_v62 = vsub.f32 1.0, %v3883_v47  ;;  %v3804_v8 = vadd.f32 %v7372_v22, %v3803_v52  ;;  %v3580_v47 = vmul.f32 1.442695, %v3480_v56  ;;  %v4141_v52 = vmul.f32 %v7318_v33, %v8491_v36  ;;  %v7427_v33 = vld [vmem:[%s8060_s8] ss:$0 sm:$0xff] }
 0x573   : > { %v4172_v63 = vadd.f32 %v4171_v9, %v4109_v27  ;;  %v4265_v27 = vadd.s32 %v7222_v39, %v4256_v11  ;;  %v3596_v9 = vmul.f32 1.442695, %v3488_v54  ;;  %vm3887_vm12 = vweird.f32 %v7294_v14  ;;  %v8494_v11 = vld [vmem:[#allocation154_spill] sm:$0xff] }
 0x574   : > { %v3885_v30 = vmul.f32 %v5052_v25, %v3884_v62  ;;  %v3805_v21 = vadd.f32 %v7377_v12, %v3804_v8  ;;  %vm3889_vm13 = vmor %vm3887_vm12, %vm3888_vm11  ;;  %vm3892_vm14 = vcmp.eq.f32.partialorder %v3891_v35, 8.507059e+37  ;;  %v3894_v56 = vor.u32 1.1754944e-38, %v3893_v15  ;;  %v8493_v35 = vld [vmem:[#allocation153_spill] sm:$0xff] }
 0x575   : > { %v4173_v26 = vadd.f32 %v4172_v63, %v4117_v32  ;;  %v3132_v32 = vadd.f32 %v7427_v33, %v3131_v60  ;;  %v4297_v54 = vmul.f32 %v7346_v50, %v7364_v24  ;;  %5057 = vpow2.f32 %v3580_v47  ;;  %v8496_v60 = vld [vmem:[#allocation137_spill] sm:$0xff]  ;;  %v8497_v50 = vld [vmem:[#allocation144_spill] sm:$0xff] }
 0x576   : > { %v3886_v37 = vadd.f32 %v5052_v25, %v3885_v30  ;;  %v3806_v62 = vadd.f32 %v7393_v29, %v3805_v21  ;;  %vm4275_vm15 = vcmp.lt.s32.totalorder %v4265_v27, %v7225_v18  ;;  %5059 = vpow2.f32 %v3596_v9  ;;  %v8499_v47 = vld [vmem:[#allocation156_spill] sm:$0xff] }
 0x577   : > { %v4174_v58 = vadd.f32 %v4173_v26, %v4125_v17  ;;  %v8505_v61 = vsub.f32 %v8483_v42, %v7370_v6  ;;  %v8507_v27 = vsub.f32 %v8485_v55, %v7370_v6  ;;  %v8514_v55 = vld [vmem:[#allocation109_spill] sm:$0xff] }
 0x578   : > { %v3890_v40 = vsel %vm3889_vm13, %v5052_v25, %v3886_v37  ;;  %v7433_v36 = vadd.f32 %v7399_v28, %v3806_v62  ;;  %v8498_v37 = vld [vmem:[#allocation155_spill] sm:$0xff] }
 0x579   : > { %v4175_v14 = vadd.f32 %v4174_v58, %v4133_v5  ;;  %v3895_v17 = vsel %vm3892_vm14, %v3894_v56, %v3890_v40  ;;  %v8500_v58 = vld [vmem:[#allocation157_spill] sm:$0xff] }
 0x57a   : > { %v3896_v26 = vmul.f32 %v8493_v35, %v3895_v17  ;;  %v3974_v8 = vmul.f32 %v8494_v11, %v3895_v17  ;;  %v3982_v63 = vmul.f32 %v8495_v23, %v3895_v17  ;;  %v3990_v15 = vmul.f32 %v8496_v60, %v3895_v17  ;;  %v3380_v35 = vpop.f32.mrf.mxu3  ;;  %v8502_v60 = vld [vmem:[#allocation16_spill] sm:$0xff] }
 0x57b   : > { %v4176_v30 = vadd.f32 %v4175_v14, %v4141_v52  ;;  %v3998_v25 = vmul.f32 %v8497_v50, %v3895_v17  ;;  %v4006_v21 = vmul.f32 %v8498_v37, %v3895_v17  ;;  %v4014_v5 = vmul.f32 %v8499_v47, %v3895_v17  ;;  %v8501_v52 = vld [vmem:[#allocation8_spill] sm:$0xff]  ;;  %v7450_v59 = vpop.eup %5057 }
 0x57c   : > { %v4022_v62 = vmul.f32 %v8500_v58, %v3895_v17  ;;  %v4030_v9 = vmul.f32 %v7186_v20, %v3895_v17  ;;  %v4038_v56 = vmul.f32 %v7191_v53, %v3895_v17  ;;  %v4046_v40 = vmul.f32 %v7194_v2, %v3895_v17  ;;  %v7455_v47 = vpop.eup %5059 }
 0x57d   : > { %v4177_v11 = vadd.f32 %v4176_v30, %v4149_v45  ;;  %v4054_v23 = vmul.f32 %v7200_v48, %v3895_v17  ;;  %v4062_v14 = vmul.f32 %v3896_v26, %v8501_v52  ;;  %v4070_v50 = vmul.f32 %v3974_v8, %v8502_v60  ;;  %v8503_v45 = vld [vmem:[#allocation24_spill] sm:$0xff] }
 0x57e   : > { %v3612_v37 = vmul.f32 1.442695, %v3496_v13  ;;  %v4319_v20 = vmul.f32 %v4297_v54, %v7364_v24  ;;  %v3628_v2 = vmul.f32 1.442695, %v3504_v19  ;;  %v7463_v48 = vadd.f32 %v3380_v35, %v3132_v32  ;;  %v8506_v32 = vld [vmem:[#allocation36_spill] sm:$0xff] }
 0x57f   : > { %4245 = vst [vmem:[%s7356_s28 + $0x8] sm:$0xff] %v4177_v11  ;;  %v4298_v53 = vmul.f32 %v7360_v4, %v4177_v11  ;;  %v4078_v17 = vmul.f32 %v3982_v63, %v8503_v45  ;;  %v4178_v26 = vadd.f32 %v4070_v50, %v4062_v14  ;;  %v8504_v8 = vmov 0.0   ;;  %v8508_v52 = vld [vmem:[#allocation48_spill] sm:$0xff] }
 0x580   : > { %v7469_v46 = vsel %vm4275_vm15, 1.0, %v8504_v8  ;;  %5061 = vrcp.f32 %v7433_v36  ;;  %v3644_v19 = vmul.f32 1.442695, %v8505_v61  ;;  %v4086_v63 = vmul.f32 %v3990_v15, %v8506_v32  ;;  %v8510_v60 = vld [vmem:[#allocation60_spill] sm:$0xff]  ;;  %v8516_v32 = vld [vmem:[#allocation133_spill] sm:$0xff] }
 0x581   : > { %v7473_v13 = vadd.f32 %v4298_v53, %v4297_v54  ;;  %v4320_v4 = vmul.f32 %v4298_v53, %v4177_v11  ;;  %v4179_v30 = vadd.f32 %v4178_v26, %v4078_v17  ;;  %5063 = vpow2.f32 %v3612_v37  ;;  %v8511_v50 = vld [vmem:[#allocation72_spill] sm:$0xff] }
 0x582   : > { %v3660_v58 = vmul.f32 1.442695, %v8507_v27  ;;  %v4094_v54 = vmul.f32 %v3998_v25, %v8508_v52  ;;  %5065 = vpow2.f32 %v3628_v2  ;;  %v8509_v11 = vsub.f32 %v8486_v44, %v7370_v6  ;;  %v8512_v15 = vld [vmem:[#allocation84_spill] sm:$0xff] }
 0x583   : > { %v7483_v35 = vadd.f32 %v4320_v4, %v4319_v20  ;;  %v4102_v42 = vmul.f32 %v4006_v21, %v8510_v60  ;;  %v4110_v53 = vmul.f32 %v4014_v5, %v8511_v50  ;;  %v4118_v45 = vmul.f32 %v4022_v62, %v8512_v15  ;;  %v8513_v17 = vld [vmem:[#allocation96_spill] sm:$0xff]  ;;  %v8515_v20 = vld [vmem:[#allocation121_spill] sm:$0xff] }
 0x584   : > { %v3676_v14 = vmul.f32 1.442695, %v8509_v11  ;;  %v4180_v37 = vadd.f32 %v4179_v30, %v4086_v63  ;;  %v4126_v26 = vmul.f32 %v4030_v9, %v8513_v17  ;;  %v4134_v61 = vmul.f32 %v4038_v56, %v8514_v55  ;;  %v8517_v21 = vld [vmem:[#allocation148_spill] sm:$0xff]  ;;  %v8524_v17 = vld [vmem:[#allocation55_spill] sm:$0xff] }
 0x585   : > { %v4142_v4 = vmul.f32 %v4046_v40, %v8515_v20  ;;  %v7496_v25 = vmul.f32 %v4054_v23, %v8516_v32  ;;  %vm3902_vm0 = vweird.f32 %v7433_v36  ;;  %5067 = vpow2.f32 %v3644_v19  ;;  %v8525_v55 = vld [vmem:[#allocation67_spill] sm:$0xff] }
 0x586   : > { %v4181_v2 = vadd.f32 %v4180_v37, %v4094_v54  ;;  %v3808_v44 = vadd.f32 %v7455_v47, %v7450_v59  ;;  %v7503_v5 = vmax.f32 %v8517_v21, %v7463_v48  ;;  %v5062_v62 = vpop.eup %5061  ;;  %v3906_v9 = vand.u32 2147483647, %v7433_v36  ;;  %v8526_v32 = vld [vmem:[#allocation79_spill] sm:$0xff] }
 0x587   : > { %v3908_v56 = vand.u32 2147483648, %v7433_v36  ;;  %5069 = vpow2.f32 %v3660_v58  ;;  %v8518_v40 = vsub.f32 %v8487_v10, %v7370_v6  ;;  %v7510_v63 = vpop.eup %5063  ;;  %v3898_v30 = vmul.f32 %v5062_v62, %v7433_v36  ;;  %v8522_v10 = vld [vmem:[#allocation30_spill] sm:$0xff] }
 0x588   : > { %v4182_v19 = vadd.f32 %v4181_v2, %v4102_v42  ;;  %5071 = vpow2.f32 %v3676_v14  ;;  %v8519_v27 = vsub.f32 %v8488_v57, %v7370_v6  ;;  %v7516_v54 = vpop.eup %5065  ;;  %v8521_v11 = vsub.f32 %v8489_v38, %v7370_v6  ;;  %v8523_v42 = vld [vmem:[#allocation43_spill] sm:$0xff] }
 0x589   : > { %v3692_v23 = vmul.f32 1.442695, %v8518_v40  ;;  %8520 = vst [vmem:[#allocation6_spill] sm:$0xff] %v7516_v54  ;;  %v3809_v60 = vadd.f32 %v7510_v63, %v3808_v44  ;;  %v3481_v50 = vsub.f32 %v8522_v10, %v7503_v5  ;;  %v3489_v15 = vsub.f32 %v8523_v42, %v7503_v5  ;;  %v8527_v44 = vld [vmem:[#allocation91_spill] sm:$0xff] }
 0x58a   : > { %v3708_v52 = vmul.f32 1.442695, %v8519_v27  ;;  %v3724_v58 = vmul.f32 1.442695, %v8521_v11  ;;  %v4183_v37 = vadd.f32 %v4182_v19, %v4110_v53  ;;  %v3899_v14 = vsub.f32 1.0, %v3898_v30  ;;  %v8529_v19 = vld [vmem:[#allocation104_spill] sm:$0xff] }
 0x58b   : > { %v3497_v57 = vsub.f32 %v8524_v17, %v7503_v5  ;;  %v3505_v20 = vsub.f32 %v8525_v55, %v7503_v5  ;;  %vm3903_vm1 = vweird.f32 %v5062_v62  ;;  %v3810_v38 = vadd.f32 %v7516_v54, %v3809_v60  ;;  %v7535_v40 = vpop.eup %5067  ;;  %v8530_v11 = vld [vmem:[#allocation116_spill] sm:$0xff]  ;;  %v8535_v10 = vld [vmem:[#allocation147_spill] sm:$0xff] }
 0x58c   : > { %8528 = vst [vmem:[#allocation14_spill] sm:$0xff] %v7535_v40  ;;  %v4184_v27 = vadd.f32 %v4183_v37, %v4118_v45  ;;  %v3900_v53 = vmul.f32 %v5062_v62, %v3899_v14  ;;  %vm7543_vm2 = vcmp.eq.f32.partialorder %v3906_v9, 8.507059e+37  ;;  %v8533_v55 = vld [vmem:[#allocation128_spill] sm:$0xff]  ;;  %v8534_v45 = vld [vmem:[#allocation141_spill] sm:$0xff]  ;;  %5073 = vpow2.f32 %v3692_v23  ;;  %vm3904_vm3 = vmor %vm3902_vm0, %vm3903_vm1 }
 0x58d   : > { %v7541_v42 = vpop.eup %5069  ;;  %v3811_v17 = vadd.f32 %v7535_v40, %v3810_v38  ;;  %v3561_v24 = vsub.f32 %v8535_v10, %v7503_v5  ;;  %v3909_v9 = vor.u32 1.1754944e-38, %v3908_v56  ;;  %5075 = vpow2.f32 %v3708_v52 }
 0x58e   : > { %v7552_v14 = vpop.eup %5071  ;;  %v4185_v30 = vadd.f32 %v4184_v27, %v4126_v26  ;;  %v3901_v2 = vadd.f32 %v5062_v62, %v3900_v53  ;;  %v8536_v38 = vsub.f32 %v8490_v51, %v7370_v6  ;;  %v4257_v26 = vadd.s32 24, %v7237_v43 }
 0x58f   : > { %v3812_v37 = vadd.f32 %v7541_v42, %v3811_v17  ;;  %5077 = vpow2.f32 %v3724_v58  ;;  %v3582_v36 = vmul.f32 1.442695, %v3481_v50  ;;  %v3598_v53 = vmul.f32 1.442695, %v3489_v15  ;;  %v8538_v15 = vld [vmem:[#allocation17_spill] sm:$0xff] }
 0x590   : > { %v3740_v21 = vmul.f32 1.442695, %v8536_v38  ;;  %v4186_v40 = vadd.f32 %v4185_v30, %v4134_v61  ;;  %v3905_v54 = vsel %vm3904_vm3, %v5062_v62, %v3901_v2  ;;  %v3134_v30 = vpop.f32.mrf.mxu2  ;;  %v7603_v17 = vadd.s32 %v7222_v39, %v4257_v26 }
 0x591   : > { %v3910_v23 = vsel %vm7543_vm2, %v3909_v9, %v3905_v54  ;;  %v3813_v27 = vadd.f32 %v7552_v14, %v3812_v37  ;;  %v3630_v37 = vmul.f32 1.442695, %v3505_v20  ;;  %v8540_v9 = vld [vmem:[#allocation25_spill] sm:$0xff]  ;;  %v8542_v20 = vsub.f32 %v8526_v32, %v7503_v5 }
 0x592   : > { %v4187_v56 = vadd.f32 %v4186_v40, %v4142_v4  ;;  %v3911_v52 = vmul.f32 %v7207_v1, %v3910_v23  ;;  %v3975_v51 = vmul.f32 %v7235_v31, %v3910_v23  ;;  %v3983_v38 = vmul.f32 %v7256_v7, %v3910_v23  ;;  %v7574_v2 = vpop.eup %5073 }
 0x593   : > { %v3991_v61 = vmul.f32 %v7273_v41, %v3910_v23  ;;  %v3999_v62 = vmul.f32 %v7304_v3, %v3910_v23  ;;  %v4007_v58 = vmul.f32 %v7315_v16, %v3910_v23  ;;  %v4015_v54 = vmul.f32 %v7325_v49, %v3910_v23  ;;  %v7582_v7 = vpop.eup %5075  ;;  %v8537_v16 = vld [vmem:[#allocation9_spill] sm:$0xff] }
 0x594   : > { %v4188_v50 = vadd.f32 %v4187_v56, %v7496_v25  ;;  %v4023_v4 = vmul.f32 %v7362_v34, %v3910_v23  ;;  %v4031_v1 = vmul.f32 %v7372_v22, %v3910_v23  ;;  %v7580_v31 = vmul.f32 %v7377_v12, %v3910_v23 }
 0x595   : > { %v7585_v41 = vmul.f32 %v7393_v29, %v3910_v23  ;;  %v7588_v3 = vmul.f32 %v7399_v28, %v3910_v23  ;;  %v4063_v49 = vmul.f32 %v3911_v52, %v8537_v16  ;;  %v4071_v40 = vmul.f32 %v3975_v51, %v8538_v15  ;;  %v7592_v25 = vpop.eup %5077  ;;  %v3383_v52 = vpop.f32.mrf.mxu3 }
 0x596   : > { %4246 = vst [vmem:[%s7356_s28 + $0x10] sm:$0xff] %v4188_v50  ;;  %v4299_v34 = vmul.f32 %v7469_v46, %v4188_v50  ;;  %5079 = vpow2.f32 %v3740_v21  ;;  %v8539_v22 = vsub.f32 %v7351_v0, %v7370_v6  ;;  %v3614_v29 = vmul.f32 1.442695, %v3497_v57  ;;  %v8541_v6 = vld [vmem:[#allocation37_spill] sm:$0xff] }
 0x597   : > { %5081 = vpow2.f32 %v3582_v36  ;;  %v4079_v23 = vmul.f32 %v3983_v38, %v8540_v9  ;;  %v4189_v56 = vadd.f32 %v4071_v40, %v4063_v49  ;;  %v3814_v46 = vadd.f32 %v7574_v2, %v3813_v27  ;;  %v8543_v27 = vld [vmem:[#allocation49_spill] sm:$0xff] }
 0x598   : > { %v3756_v12 = vmul.f32 1.442695, %v8539_v22  ;;  %v7600_v28 = vadd.f32 %v7473_v13, %v4299_v34  ;;  %v4321_v60 = vmul.f32 %v4299_v34, %v4188_v50  ;;  %5083 = vpow2.f32 %v3598_v53  ;;  %v8545_v49 = vld [vmem:[#allocation61_spill] sm:$0xff] }
 0x599   : > { %v4087_v57 = vmul.f32 %v3991_v61, %v8541_v6  ;;  %v3135_v13 = vadd.f32 %v7427_v33, %v3134_v30  ;;  %v4190_v21 = vadd.f32 %v4189_v56, %v4079_v23  ;;  %v3815_v36 = vadd.f32 %v7582_v7, %v3814_v46  ;;  %v8546_v40 = vld [vmem:[#allocation73_spill] sm:$0xff]  ;;  %v8551_v56 = vld [vmem:[#allocation150_spill] sm:$0xff] }
 0x59a   : > { %v7608_v0 = vadd.f32 %v7483_v35, %v4321_v60  ;;  %5085 = vpow2.f32 %v3756_v12  ;;  %v3646_v26 = vmul.f32 1.442695, %v8542_v20  ;;  %v4095_v53 = vmul.f32 %v3999_v62, %v8543_v27  ;;  %v8549_v9 = vld [vmem:[#allocation97_spill] sm:$0xff] }
 0x59b   : > { %5087 = vpow2.f32 %v3614_v29  ;;  %v3569_v35 = vsub.f32 %v7463_v48, %v7503_v5  ;;  %v4191_v61 = vadd.f32 %v4190_v21, %v4087_v57  ;;  %vm4276_vm4 = vcmp.lt.s32.totalorder %v7603_v17, %v7225_v18  ;;  %v8548_v29 = vld [vmem:[#allocation85_spill] sm:$0xff] }
 0x59c   : > { %v7616_v51 = vpop.eup %5079  ;;  %v3816_v50 = vadd.f32 %v7592_v25, %v3815_v36  ;;  %5089 = vpow2.f32 %v3630_v37  ;;  %v8544_v32 = vsub.f32 %v8527_v44, %v7503_v5  ;;  %v4103_v15 = vmul.f32 %v4007_v58, %v8545_v49  ;;  %v8553_v36 = vld [vmem:[#allocation32_spill] sm:$0xff] }
 0x59d   : > { %v7621_v38 = vpop.eup %5081  ;;  %v4111_v62 = vmul.f32 %v4015_v54, %v8546_v40  ;;  %v8547_v48 = vsub.f32 %v8529_v19, %v7503_v5  ;;  %v7634_v22 = vadd.f32 %v3383_v52, %v3135_v13  ;;  %v4119_v30 = vmul.f32 %v4023_v4, %v8548_v29 }
 0x59e   : > { %v3662_v16 = vmul.f32 1.442695, %v8544_v32  ;;  %v7636_v12 = vpop.eup %5083  ;;  %v4192_v60 = vadd.f32 %v4191_v61, %v4095_v53  ;;  %v3817_v37 = vadd.f32 %v7616_v51, %v3816_v50  ;;  %5091 = vpow2.f32 %v3646_v26  ;;  %v8554_v26 = vld [vmem:[#allocation44_spill] sm:$0xff]  ;;  %v8555_v53 = vld [vmem:[#allocation110_spill] sm:$0xff] }
 0x59f   : > { %v3678_v34 = vmul.f32 1.442695, %v8547_v48  ;;  %v4127_v58 = vmul.f32 %v4031_v1, %v8549_v9  ;;  %v8550_v54 = vsub.f32 %v8530_v11, %v7503_v5  ;;  %v3819_v19 = vadd.f32 %v7636_v12, %v7621_v38  ;;  %v3136_v11 = vpop.f32.mrf.mxu2 }
 0x5a0   : > { %v7640_v44 = vpop.eup %5085  ;;  %v7650_v46 = vmax.f32 %v8551_v56, %v7634_v22  ;;  %v4193_v6 = vadd.f32 %v4192_v60, %v4103_v15  ;;  %5093 = vpow2.f32 %v3662_v16  ;;  %v8552_v1 = vsub.f32 %v8533_v55, %v7503_v5  ;;  %v8557_v15 = vld [vmem:[#allocation56_spill] sm:$0xff] }
 0x5a1   : > { %v3694_v23 = vmul.f32 1.442695, %v8550_v54  ;;  %v7652_v4 = vpop.eup %5087  ;;  %v7655_v57 = vadd.f32 %v7640_v44, %v3817_v37  ;;  %5095 = vpow2.f32 %v3678_v34  ;;  %v4135_v61 = vmul.f32 %v7580_v31, %v8555_v53  ;;  %v8561_v37 = vld [vmem:[#allocation105_spill] sm:$0xff] }
 0x5a2   : > { %v3710_v13 = vmul.f32 1.442695, %v8552_v1  ;;  %v3820_v21 = vadd.f32 %v7652_v4, %v3819_v19  ;;  %v3482_v20 = vsub.f32 %v8553_v36, %v7650_v46  ;;  %v3490_v52 = vsub.f32 %v8554_v26, %v7650_v46  ;;  %v7665_v27 = vpop.eup %5089  ;;  %v8563_v19 = vld [vmem:[#allocation129_spill] sm:$0xff] }
 0x5a3   : > { %v4194_v50 = vadd.f32 %v4193_v6, %v4111_v62  ;;  %5097 = vrcp.f32 %v7655_v57  ;;  %v8556_v55 = vsub.f32 %v8534_v45, %v7503_v5  ;;  %v3742_v16 = vmul.f32 1.442695, %v3561_v24  ;;  %v8558_v62 = vld [vmem:[#allocation68_spill] sm:$0xff]  ;;  %v8564_v6 = vld [vmem:[#allocation142_spill] sm:$0xff] }
 0x5a4   : > { %v3821_v49 = vadd.f32 %v7665_v27, %v3820_v21  ;;  %v3498_v40 = vsub.f32 %v8557_v15, %v7650_v46  ;;  %v3137_v48 = vadd.f32 %v7427_v33, %v3136_v11  ;;  %v7680_v34 = vpop.eup %5091  ;;  %5099 = vpow2.f32 %v3694_v23  ;;  %v8559_v45 = vld [vmem:[#allocation80_spill] sm:$0xff] }
 0x5a5   : > { %v3726_v32 = vmul.f32 1.442695, %v8556_v55  ;;  %v4195_v31 = vadd.f32 %v4194_v50, %v4119_v30  ;;  %v3506_v29 = vsub.f32 %v8558_v62, %v7650_v46  ;;  %v3514_v60 = vsub.f32 %v8559_v45, %v7650_v46  ;;  %v8560_v5 = vld [vmem:[#allocation92_spill] sm:$0xff]  ;;  %v8562_v30 = vld [vmem:[#allocation117_spill] sm:$0xff]  ;;  %v8566_v50 = vld [vmem:[#allocation122_spill] sm:$0xff] }
 0x5a6   : > { %5101 = vpow2.f32 %v3710_v13  ;;  %v3822_v24 = vadd.f32 %v7680_v34, %v3821_v49  ;;  %v3522_v10 = vsub.f32 %v8560_v5, %v7650_v46  ;;  %v3530_v9 = vsub.f32 %v8561_v37, %v7650_v46  ;;  %v7691_v33 = vpop.eup %5093  ;;  %v3385_v13 = vpop.f32.mrf.mxu3 }
 0x5a7   : > { %v4196_v54 = vadd.f32 %v4195_v31, %v4127_v58  ;;  %v3538_v23 = vsub.f32 %v8562_v30, %v7650_v46  ;;  %v3546_v56 = vsub.f32 %v8563_v19, %v7650_v46  ;;  %v3554_v1 = vsub.f32 %v8564_v6, %v7650_v46  ;;  %v7699_v11 = vpop.eup %5095  ;;  %v8565_v58 = vld [vmem:[#allocation149_spill] sm:$0xff]  ;;  %v8567_v31 = vld [vmem:[#allocation134_spill] sm:$0xff] }
 0x5a8   : > { %v4838_v21 = vsel %vm4276_vm4, 1.0, %v8504_v8  ;;  %v3823_v36 = vadd.f32 %v7691_v33, %v3822_v24  ;;  %v4143_v55 = vmul.f32 %v7585_v41, %v8566_v50  ;;  %5103 = vpow2.f32 %v3726_v32 }
 0x5a9   : > { %v5098_v53 = vpop.eup %5097  ;;  %v4197_v49 = vadd.f32 %v4196_v54, %v4135_v61  ;;  %v3758_v15 = vmul.f32 1.442695, %v3569_v35  ;;  %v4151_v62 = vmul.f32 %v7588_v3, %v8567_v31  ;;  %v7714_v5 = vadd.f32 %v3385_v13, %v3137_v48 }
 0x5aa   : > { %v3913_v45 = vmul.f32 %v5098_v53, %v7655_v57  ;;  %v3824_v17 = vadd.f32 %v7699_v11, %v3823_v36  ;;  %v7716_v24 = vpop.eup %5099  ;;  %v3921_v26 = vand.u32 2147483647, %v7655_v57  ;;  %5105 = vpow2.f32 %v3742_v16 }
 0x5ab   : > { %v4198_v37 = vadd.f32 %v4197_v49, %v4143_v55  ;;  %v3584_v41 = vmul.f32 1.442695, %v3482_v20  ;;  %v3923_v32 = vand.u32 2147483648, %v7655_v57  ;;  %v3600_v54 = vmul.f32 1.442695, %v3490_v52 }
 0x5ac   : > { %v7719_v61 = vpop.eup %5101  ;;  %v3914_v35 = vsub.f32 1.0, %v3913_v45  ;;  %v3825_v3 = vadd.f32 %v7716_v24, %v3824_v17  ;;  %vm3917_vm5 = vweird.f32 %v7655_v57  ;;  %5107 = vpow2.f32 %v3758_v15 }
 0x5ad   : > { %v4199_v50 = vadd.f32 %v4198_v37, %v4151_v62  ;;  %v3616_v48 = vmul.f32 1.442695, %v3498_v40  ;;  %vm3918_vm6 = vweird.f32 %v5098_v53  ;;  %v4258_v36 = vadd.s32 32, %v7237_v43 }
 0x5ae   : > { %v3915_v13 = vmul.f32 %v5098_v53, %v3914_v35  ;;  %v3826_v16 = vadd.f32 %v7719_v61, %v3825_v3  ;;  %v7726_v20 = vpop.eup %5103  ;;  %vm7729_vm7 = vcmp.eq.f32.partialorder %v3921_v26, 8.507059e+37  ;;  %5109 = vpow2.f32 %v3584_v41  ;;  %vm3919_vm8 = vmor %vm3917_vm5, %vm3918_vm6 }
 0x5af   : > { %4247 = vst [vmem:[%s7356_s28 + $0x18] sm:$0xff] %v4199_v50  ;;  %v4300_v55 = vmul.f32 %v4838_v21, %v4199_v50  ;;  %v3632_v52 = vmul.f32 1.442695, %v3506_v29  ;;  %v3924_v62 = vor.u32 1.1754944e-38, %v3923_v32  ;;  %5111 = vpow2.f32 %v3600_v54  ;;  %v8570_v54 = vld [vmem:[#allocation6_spill] sm:$0xff] }
 0x5b0   : > { %v3916_v31 = vadd.f32 %v5098_v53, %v3915_v13  ;;  %v3827_v40 = vadd.f32 %v7726_v20, %v3826_v16  ;;  %v7734_v15 = vpop.eup %5105  ;;  %5113 = vpow2.f32 %v3616_v48  ;;  %v3648_v21 = vmul.f32 1.442695, %v3514_v60 }
 0x5b1   : > { %v7737_v45 = vadd.f32 %v7600_v28, %v4300_v55  ;;  %v4322_v17 = vmul.f32 %v4300_v55, %v4199_v50  ;;  %v4267_v29 = vadd.s32 %v7222_v39, %v4258_v36  ;;  %v3664_v41 = vmul.f32 1.442695, %v3522_v10  ;;  %v8572_v10 = vld [vmem:[#allocation14_spill] sm:$0xff] }
 0x5b2   : > { %v3920_v26 = vsel %vm3919_vm8, %v5098_v53, %v3916_v31  ;;  %v3828_v37 = vadd.f32 %v7734_v15, %v3827_v40  ;;  %v7744_v35 = vpop.eup %5107  ;;  %5115 = vpow2.f32 %v3632_v52  ;;  %v3680_v3 = vmul.f32 1.442695, %v3530_v9 }
 0x5b3   : > { %v7747_v32 = vadd.f32 %v7608_v0, %v4322_v17  ;;  %v3925_v28 = vsel %vm7729_vm7, %v3924_v62, %v3920_v26  ;;  %5117 = vpow2.f32 %v3648_v21  ;;  %vm4277_vm9 = vcmp.lt.s32.totalorder %v4267_v29, %v7225_v18  ;;  %v8579_v21 = vld [vmem:[#allocation152_spill] sm:$0xff] }
 0x5b4   : > { %v3926_v57 = vmul.f32 %v7450_v59, %v3925_v28  ;;  %v3976_v60 = vmul.f32 %v7455_v47, %v3925_v28  ;;  %v3984_v53 = vmul.f32 %v7510_v63, %v3925_v28  ;;  %v3992_v50 = vmul.f32 %v8570_v54, %v3925_v28  ;;  %v7755_v48 = vpop.eup %5109  ;;  %v8584_v54 = vld [vmem:[#allocation50_spill] sm:$0xff] }
 0x5b5   : > { %8571 = vst [vmem:[#allocation22_spill] sm:$0xff] %v7755_v48  ;;  %v4000_v13 = vmul.f32 %v8572_v10, %v3925_v28  ;;  %v4008_v0 = vmul.f32 %v7541_v42, %v3925_v28  ;;  %v4016_v36 = vmul.f32 %v7552_v14, %v3925_v28  ;;  %v4024_v16 = vmul.f32 %v7574_v2, %v3925_v28  ;;  %v7761_v55 = vpop.eup %5111  ;;  %v8575_v42 = vld [vmem:[#allocation10_spill] sm:$0xff] }
 0x5b6   : > { %8573 = vst [vmem:[#allocation33_spill] sm:$0xff] %v7761_v55  ;;  %v4032_v59 = vmul.f32 %v7582_v7, %v3925_v28  ;;  %v7765_v47 = vmul.f32 %v7592_v25, %v3925_v28  ;;  %v7768_v63 = vmul.f32 %v7616_v51, %v3925_v28  ;;  %v7771_v9 = vmul.f32 %v7640_v44, %v3925_v28  ;;  %v7773_v49 = vpop.eup %5113  ;;  %v8576_v14 = vld [vmem:[#allocation18_spill] sm:$0xff] }
 0x5b7   : > { %8574 = vst [vmem:[#allocation45_spill] sm:$0xff] %v7773_v49  ;;  %v4064_v52 = vmul.f32 %v3926_v57, %v8575_v42  ;;  %v4072_v31 = vmul.f32 %v3976_v60, %v8576_v14  ;;  %v3696_v2 = vmul.f32 1.442695, %v3538_v23  ;;  %5119 = vpow2.f32 %v3664_v41  ;;  %v8578_v51 = vld [vmem:[#allocation26_spill] sm:$0xff]  ;;  %v8583_v57 = vld [vmem:[#allocation47_spill] sm:$0xff] }
 0x5b8   : > { %v7781_v7 = vpop.eup %5115  ;;  %5121 = vpow2.f32 %v3680_v3  ;;  %v3712_v25 = vmul.f32 1.442695, %v3546_v56  ;;  %v4080_v44 = vmul.f32 %v3984_v53, %v8578_v51  ;;  %v7788_v40 = vadd.f32 %v7744_v35, %v3828_v37  ;;  %v8580_v56 = vld [vmem:[#allocation38_spill] sm:$0xff]  ;;  %v8585_v42 = vld [vmem:[#allocation59_spill] sm:$0xff] }
 0x5b9   : > { %8577 = vst [vmem:[#allocation57_spill] sm:$0xff] %v7781_v7  ;;  %v4200_v62 = vadd.f32 %v4072_v31, %v4064_v52  ;;  %v3830_v30 = vadd.f32 %v7761_v55, %v7755_v48  ;;  %v7793_v23 = vsel %vm4277_vm9, 1.0, %v8504_v8  ;;  %v3570_v17 = vsub.f32 %v7634_v22, %v7650_v46  ;;  %v7806_v41 = vpop.eup %5117  ;;  %v8582_v22 = vld [vmem:[#allocation35_spill] sm:$0xff]  ;;  %v8587_v31 = vld [vmem:[#allocation62_spill] sm:$0xff] }
 0x5ba   : > { %5123 = vpow2.f32 %v3696_v2  ;;  %v7799_v19 = vmax.f32 %v8579_v21, %v7714_v5  ;;  %v4088_v26 = vmul.f32 %v3992_v50, %v8580_v56  ;;  %v3728_v37 = vmul.f32 1.442695, %v3554_v1  ;;  %8581 = vst [vmem:[#allocation69_spill] sm:$0xff] %v7806_v41  ;;  %v8586_v1 = vld [vmem:[#allocation71_spill] sm:$0xff]  ;;  %v8590_v21 = vld [vmem:[#allocation108_spill] sm:$0xff] }
 0x5bb   : > { %v4201_v29 = vadd.f32 %v4200_v62, %v4080_v44  ;;  %5125 = vrcp.f32 %v7788_v40  ;;  %v3831_v28 = vadd.f32 %v7773_v49, %v3830_v30  ;;  %v4096_v50 = vmul.f32 %v4000_v13, %v8584_v54  ;;  %v8588_v51 = vld [vmem:[#allocation83_spill] sm:$0xff] }
 0x5bc   : > { %5127 = vpow2.f32 %v3712_v25  ;;  %v3483_v3 = vsub.f32 %v8582_v22, %v7799_v19  ;;  %v3491_v60 = vsub.f32 %v8583_v57, %v7799_v19  ;;  %v3499_v6 = vsub.f32 %v8585_v42, %v7799_v19  ;;  %v8589_v62 = vld [vmem:[#allocation95_spill] sm:$0xff]  ;;  %v8592_v22 = vld [vmem:[#allocation132_spill] sm:$0xff] }
 0x5bd   : > { %v7813_v53 = vpop.eup %5119  ;;  %v4202_v10 = vadd.f32 %v4201_v29, %v4088_v26  ;;  %v3507_v52 = vsub.f32 %v8586_v1, %v7799_v19  ;;  %v4104_v2 = vmul.f32 %v4008_v0, %v8587_v31  ;;  %v3832_v25 = vadd.f32 %v7781_v7, %v3831_v28  ;;  %v8591_v26 = vld [vmem:[#allocation120_spill] sm:$0xff]  ;;  %v8594_v1 = vld [vmem:[#allocation143_spill] sm:$0xff] }
 0x5be   : > { %v7820_v14 = vpop.eup %5121  ;;  %v3515_v44 = vsub.f32 %v8588_v51, %v7799_v19  ;;  %v3523_v30 = vsub.f32 %v8589_v62, %v7799_v19  ;;  %v8593_v0 = vsub.f32 %v8565_v58, %v7650_v46  ;;  %v8596_v62 = vld [vmem:[#allocation74_spill] sm:$0xff]  ;;  %v3586_v7 = vmul.f32 1.442695, %v3483_v3  ;;  %v8599_v31 = vld [vmem:[#allocation111_spill] sm:$0xff] }
 0x5bf   : > { %v4203_v13 = vadd.f32 %v4202_v10, %v4096_v50  ;;  %v3833_v42 = vadd.f32 %v7806_v41, %v3832_v25  ;;  %v8595_v10 = vld [vmem:[#allocation151_spill] sm:$0xff]  ;;  %v4112_v29 = vmul.f32 %v4016_v36, %v8596_v62  ;;  %v3602_v57 = vmul.f32 1.442695, %v3491_v60  ;;  %v8597_v25 = vld [vmem:[#allocation86_spill] sm:$0xff] }
 0x5c0   : > { %v7834_v54 = vpop.eup %5123  ;;  %v3744_v28 = vmul.f32 1.442695, %v8593_v0  ;;  %5129 = vpow2.f32 %v3728_v37  ;;  %v3760_v46 = vmul.f32 1.442695, %v3570_v17  ;;  %v4120_v0 = vmul.f32 %v4024_v16, %v8597_v25  ;;  %v8598_v50 = vld [vmem:[#allocation98_spill] sm:$0xff]  ;;  %v8600_v60 = vld [vmem:[#allocation123_spill] sm:$0xff] }
 0x5c1   : > { %v5126_v51 = vpop.eup %5125  ;;  %v4204_v56 = vadd.f32 %v4203_v13, %v4104_v2  ;;  %v3834_v58 = vadd.f32 %v7813_v53, %v3833_v42  ;;  %v4128_v41 = vmul.f32 %v4032_v59, %v8598_v50  ;;  %5131 = vpow2.f32 %v3586_v7 }
 0x5c2   : > { %v7845_v49 = vpop.eup %5127  ;;  %v3928_v55 = vmul.f32 %v5126_v51, %v7788_v40  ;;  %v4136_v36 = vmul.f32 %v7765_v47, %v8599_v31  ;;  %5133 = vpow2.f32 %v3602_v57  ;;  %v4144_v13 = vmul.f32 %v7768_v63, %v8600_v60 }
 0x5c3   : > { %v4205_v48 = vadd.f32 %v4204_v56, %v4112_v29  ;;  %v3835_v3 = vadd.f32 %v7820_v14, %v3834_v58  ;;  %v3936_v17 = vand.u32 2147483647, %v7788_v40  ;;  %v3938_v42 = vand.u32 2147483648, %v7788_v40  ;;  %v8601_v56 = vld [vmem:[#allocation135_spill] sm:$0xff] }
 0x5c4   : > { %v3929_v2 = vsub.f32 1.0, %v3928_v55  ;;  %vm3933_vm10 = vweird.f32 %v5126_v51  ;;  %v3618_v7 = vmul.f32 1.442695, %v3499_v6  ;;  %v4152_v47 = vmul.f32 %v7771_v9, %v8601_v56  ;;  %v8606_v56 = vld [vmem:[#allocation27_spill] sm:$0xff] }
 0x5c5   : > { %v4206_v37 = vadd.f32 %v4205_v48, %v4120_v0  ;;  %v3836_v59 = vadd.f32 %v7834_v54, %v3835_v3  ;;  %5135 = vpow2.f32 %v3744_v28  ;;  %v3634_v29 = vmul.f32 1.442695, %v3507_v52 }
 0x5c6   : > { %v3930_v16 = vmul.f32 %v5126_v51, %v3929_v2  ;;  %v7861_v57 = vpop.eup %5129  ;;  %vm3932_vm11 = vweird.f32 %v7788_v40  ;;  %5137 = vpow2.f32 %v3760_v46  ;;  %vm3937_vm13 = vcmp.eq.f32.partialorder %v3936_v17, 8.507059e+37 }
 0x5c7   : > { %v4207_v55 = vadd.f32 %v4206_v37, %v4128_v41  ;;  %v3837_v48 = vadd.f32 %v7845_v49, %v3836_v59  ;;  %v7865_v63 = vpop.eup %5131  ;;  %vm3934_vm12 = vmor %vm3932_vm11, %vm3933_vm10  ;;  %v3939_v6 = vor.u32 1.1754944e-38, %v3938_v42  ;;  %v3650_v62 = vmul.f32 1.442695, %v3515_v44 }
 0x5c8   : > { %v3931_v50 = vadd.f32 %v5126_v51, %v3930_v16  ;;  %v7867_v58 = vpop.eup %5133  ;;  %5139 = vpow2.f32 %v3618_v7  ;;  %v3666_v52 = vmul.f32 1.442695, %v3523_v30 }
 0x5c9   : > { %v4208_v31 = vadd.f32 %v4207_v55, %v4136_v36  ;;  %v3838_v41 = vadd.f32 %v7861_v57, %v3837_v48  ;;  %5141 = vpow2.f32 %v3634_v29  ;;  %v3841_v40 = vadd.f32 %v7867_v58, %v7865_v63  ;;  %v8608_v48 = vld [vmem:[#allocation39_spill] sm:$0xff] }
 0x5ca   : > { %v3935_v9 = vsel %vm3934_vm12, %v5126_v51, %v3931_v50  ;;  %5143 = vpow2.f32 %v3650_v62  ;;  %v8607_v29 = vsub.f32 %v8592_v22, %v7799_v19 }
 0x5cb   : > { %v4209_v28 = vadd.f32 %v4208_v31, %v4144_v13  ;;  %v3940_v25 = vsel %vm3937_vm13, %v3939_v6, %v3935_v9  ;;  %v7876_v51 = vpop.eup %5135  ;;  %5145 = vpow2.f32 %v3666_v52 }
 0x5cc   : > { %v3941_v46 = vmul.f32 %v7621_v38, %v3940_v25  ;;  %v3977_v0 = vmul.f32 %v7636_v12, %v3940_v25  ;;  %v3985_v44 = vmul.f32 %v7652_v4, %v3940_v25  ;;  %v3993_v36 = vmul.f32 %v7665_v27, %v3940_v25  ;;  %v7881_v13 = vpop.eup %5137 }
 0x5cd   : > { %v4210_v2 = vadd.f32 %v4209_v28, %v4152_v47  ;;  %v4001_v30 = vmul.f32 %v7680_v34, %v3940_v25  ;;  %v4009_v3 = vmul.f32 %v7691_v33, %v3940_v25  ;;  %v4017_v60 = vmul.f32 %v7699_v11, %v3940_v25  ;;  %v8602_v33 = vld [vmem:[#allocation11_spill] sm:$0xff] }
 0x5ce   : > { %v4025_v37 = vmul.f32 %v7716_v24, %v3940_v25  ;;  %v4033_v38 = vmul.f32 %v7719_v61, %v3940_v25  ;;  %v4041_v12 = vmul.f32 %v7726_v20, %v3940_v25  ;;  %v7887_v4 = vmul.f32 %v7734_v15, %v3940_v25  ;;  %v8603_v11 = vld [vmem:[#allocation19_spill] sm:$0xff]  ;;  %v7896_v16 = vpop.eup %5139 }
 0x5cf   : > { %4248 = vst [vmem:[%s7356_s28 + $0x20] sm:$0xff] %v4210_v2  ;;  %v4301_v27 = vmul.f32 %v7793_v23, %v4210_v2  ;;  %v7892_v34 = vmul.f32 %v7744_v35, %v3940_v25  ;;  %v4065_v17 = vmul.f32 %v3941_v46, %v8602_v33  ;;  %v4073_v42 = vmul.f32 %v3977_v0, %v8603_v11  ;;  %v7898_v24 = vpop.eup %5141  ;;  %v8611_v0 = vld [vmem:[#allocation63_spill] sm:$0xff] }
 0x5d0   : > { %v8604_v15 = vsub.f32 %v8590_v21, %v7799_v19  ;;  %v8605_v35 = vsub.f32 %v8591_v26, %v7799_v19  ;;  %v4081_v47 = vmul.f32 %v3985_v44, %v8606_v56  ;;  %v3714_v50 = vmul.f32 1.442695, %v8607_v29  ;;  %v7923_v9 = vpop.eup %5143 }
 0x5d1   : > { %v7901_v61 = vadd.f32 %v7737_v45, %v4301_v27  ;;  %v4323_v20 = vmul.f32 %v4301_v27, %v4210_v2  ;;  %v4211_v55 = vadd.f32 %v4073_v42, %v4065_v17  ;;  %v3839_v45 = vadd.f32 %v7876_v51, %v3838_v41  ;;  %v8609_v41 = vld [vmem:[#allocation51_spill] sm:$0xff] }
 0x5d2   : > { %v3682_v23 = vmul.f32 1.442695, %v8604_v15  ;;  %v3698_v59 = vmul.f32 1.442695, %v8605_v35  ;;  %v3842_v21 = vadd.f32 %v7896_v16, %v3841_v40  ;;  %v4089_v31 = vmul.f32 %v3993_v36, %v8608_v48  ;;  %v7929_v40 = vpop.eup %5145  ;;  %v8616_v48 = vld [vmem:[#allocation112_spill] sm:$0xff] }
 0x5d3   : > { %v7910_v7 = vadd.f32 %v7747_v32, %v4323_v20  ;;  %v4212_v6 = vadd.f32 %v4211_v55, %v4081_v47  ;;  %v3840_v26 = vadd.f32 %v7881_v13, %v3839_v45  ;;  %v3571_v32 = vsub.f32 %v7714_v5, %v7799_v19  ;;  %v8615_v47 = vld [vmem:[#allocation99_spill] sm:$0xff] }
 0x5d4   : > { %5147 = vpow2.f32 %v3682_v23  ;;  %v3843_v62 = vadd.f32 %v7898_v24, %v3842_v21  ;;  %v4097_v52 = vmul.f32 %v4001_v30, %v8609_v41  ;;  %v8610_v28 = vsub.f32 %v8594_v1, %v7799_v19  ;;  %v8613_v1 = vld [vmem:[#allocation75_spill] sm:$0xff] }
 0x5d5   : > { %5149 = vpow2.f32 %v3698_v59  ;;  %v4213_v22 = vadd.f32 %v4212_v6, %v4089_v31  ;;  %v4105_v44 = vmul.f32 %v4009_v3, %v8611_v0  ;;  %v8612_v36 = vsub.f32 %v8595_v10, %v7799_v19  ;;  %v8614_v23 = vld [vmem:[#allocation87_spill] sm:$0xff]  ;;  %v8618_v0 = vld [vmem:[#allocation136_spill] sm:$0xff] }
 0x5d6   : > { %5151 = vrcp.f32 %v3840_v26  ;;  %v3730_v25 = vmul.f32 1.442695, %v8610_v28  ;;  %v3844_v46 = vadd.f32 %v7923_v9, %v3843_v62  ;;  %v4259_v30 = vadd.s32 40, %v7237_v43 }
 0x5d7   : > { %v4214_v5 = vadd.f32 %v4213_v22, %v4097_v52  ;;  %5153 = vpow2.f32 %v3714_v50  ;;  %v3746_v2 = vmul.f32 1.442695, %v8612_v36  ;;  %v4113_v17 = vmul.f32 %v4017_v60, %v8613_v1 }
 0x5d8   : > { %v3845_v27 = vadd.f32 %v7929_v40, %v3844_v46  ;;  %5155 = vpow2.f32 %v3730_v25  ;;  %v3762_v42 = vmul.f32 1.442695, %v3571_v32  ;;  %v4121_v35 = vmul.f32 %v4025_v37, %v8614_v23 }
 0x5d9   : > { %v4215_v11 = vadd.f32 %v4214_v5, %v4105_v44  ;;  %5157 = vpow2.f32 %v3746_v2  ;;  %v4129_v55 = vmul.f32 %v4033_v38, %v8615_v47  ;;  %v4268_v45 = vadd.s32 %v7222_v39, %v4259_v30  ;;  %v8617_v38 = vld [vmem:[#allocation124_spill] sm:$0xff] }
 0x5da   : > { %v7938_v33 = vpop.eup %5147  ;;  %5159 = vpow2.f32 %v3762_v42  ;;  %v4137_v37 = vmul.f32 %v4041_v12, %v8616_v48  ;;  %v3953_v6 = vand.u32 2147483648, %v3840_v26  ;;  %v3951_v62 = vand.u32 2147483647, %v3840_v26 }
 0x5db   : > { %v7941_v20 = vpop.eup %5149  ;;  %v3846_v3 = vadd.f32 %v7938_v33, %v3845_v27  ;;  %v4216_v19 = vadd.f32 %v4215_v11, %v4113_v17  ;;  %v4145_v22 = vmul.f32 %v7887_v4, %v8617_v38  ;;  %vm4278_vm15 = vcmp.lt.s32.totalorder %v4268_v45, %v7225_v18  ;;  %v8620_v11 = vld [vmem:[#allocation33_spill] sm:$0xff] }
 0x5dc   : > { %v5152_v15 = vpop.eup %5151  ;;  %vm3947_vm0 = vweird.f32 %v3840_v26  ;;  %v4153_v44 = vmul.f32 %v7892_v34, %v8618_v0  ;;  %v3954_v36 = vor.u32 1.1754944e-38, %v3953_v6  ;;  %v4840_v2 = vsel %vm4278_vm15, 1.0, %v8504_v8  ;;  %v8628_v38 = vld [vmem:[#allocation53_spill] sm:$0xff] }
 0x5dd   : > { %v3943_v10 = vmul.f32 %v5152_v15, %v3840_v26  ;;  %v3847_v59 = vadd.f32 %v7941_v20, %v3846_v3  ;;  %v7946_v56 = vpop.eup %5153  ;;  %v4217_v60 = vadd.f32 %v4216_v19, %v4121_v35  ;;  %vm3948_vm14 = vweird.f32 %v5152_v15  ;;  %v8619_v26 = vld [vmem:[#allocation22_spill] sm:$0xff]  ;;  %v8621_v3 = vld [vmem:[#allocation45_spill] sm:$0xff] }
 0x5de   : > { %v7951_v21 = vpop.eup %5155  ;;  %vm3949_vm1 = vmor %vm3947_vm0, %vm3948_vm14  ;;  %vm3952_vm2 = vcmp.eq.f32.partialorder %v3951_v62, 8.507059e+37  ;;  %v8622_v35 = vld [vmem:[#allocation57_spill] sm:$0xff] }
 0x5df   : > { %v3944_v29 = vsub.f32 1.0, %v3943_v10  ;;  %v3848_v50 = vadd.f32 %v7946_v56, %v3847_v59  ;;  %v4218_v31 = vadd.f32 %v4217_v60, %v4129_v55  ;;  %v7955_v52 = vpop.eup %5157  ;;  %v8623_v10 = vld [vmem:[#allocation69_spill] sm:$0xff] }
 0x5e0   : > { %v7961_v12 = vpop.eup %5159 }
 0x5e1   : > { %v3945_v32 = vmul.f32 %v5152_v15, %v3944_v29  ;;  %v3849_v41 = vadd.f32 %v7951_v21, %v3848_v50  ;;  %v4219_v28 = vadd.f32 %v4218_v31, %v4137_v37  ;;  %v8624_v31 = vld [vmem:[#allocation12_spill] sm:$0xff] }
 0x5e3   : > { %v3946_v25 = vadd.f32 %v5152_v15, %v3945_v32  ;;  %v3850_v46 = vadd.f32 %v7955_v52, %v3849_v41  ;;  %v4220_v5 = vadd.f32 %v4219_v28, %v4145_v22  ;;  %v8625_v32 = vld [vmem:[#allocation20_spill] sm:$0xff]  ;;  %v4260_v28 = vadd.s32 48, %v7237_v43 }
 0x5e5   : > { %v3950_v30 = vsel %vm3949_vm1, %v5152_v15, %v3946_v25  ;;  %v3851_v4 = vadd.f32 %v7961_v12, %v3850_v46  ;;  %v4221_v27 = vadd.f32 %v4220_v5, %v4153_v44  ;;  %v8629_v25 = vld [vmem:[#allocation65_spill] sm:$0xff] }
 0x5e6   : > { %v3955_v1 = vsel %vm3952_vm2, %v3954_v36, %v3950_v30  ;;  %v8630_v5 = vld [vmem:[#allocation77_spill] sm:$0xff] }
 0x5e7   : > { %v3956_v17 = vmul.f32 %v8619_v26, %v3955_v1  ;;  %v3978_v42 = vmul.f32 %v8620_v11, %v3955_v1  ;;  %v3986_v23 = vmul.f32 %v8621_v3, %v3955_v1  ;;  %v3994_v19 = vmul.f32 %v8622_v35, %v3955_v1  ;;  %4249 = vst [vmem:[%s7356_s28 + $0x28] sm:$0xff] %v4221_v27  ;;  %v8632_v3 = vld [vmem:[#allocation102_spill] sm:$0xff] }
 0x5e8   : > { %v4302_v34 = vmul.f32 %v4840_v2, %v4221_v27  ;;  %v4002_v59 = vmul.f32 %v8623_v10, %v3955_v1  ;;  %v4010_v47 = vmul.f32 %v7813_v53, %v3955_v1  ;;  %v4018_v15 = vmul.f32 %v7820_v14, %v3955_v1 }
 0x5e9   : > { %v4026_v55 = vmul.f32 %v7834_v54, %v3955_v1  ;;  %v4034_v60 = vmul.f32 %v7845_v49, %v3955_v1  ;;  %v4042_v45 = vmul.f32 %v7861_v57, %v3955_v1  ;;  %v4050_v29 = vmul.f32 %v7876_v51, %v3955_v1  ;;  %v8626_v54 = vld [vmem:[#allocation29_spill] sm:$0xff] }
 0x5ea   : > { %v7980_v50 = vadd.f32 %v7901_v61, %v4302_v34  ;;  %v4324_v48 = vmul.f32 %v4302_v34, %v4221_v27  ;;  %v4058_v37 = vmul.f32 %v7881_v13, %v3955_v1  ;;  %v4066_v6 = vmul.f32 %v3956_v17, %v8624_v31  ;;  %v8627_v57 = vld [vmem:[#allocation41_spill] sm:$0xff]  ;;  %v8633_v34 = vld [vmem:[#allocation114_spill] sm:$0xff] }
 0x5eb   : > { %v4074_v53 = vmul.f32 %v3978_v42, %v8625_v32  ;;  %v4082_v62 = vmul.f32 %v3986_v23, %v8626_v54  ;;  %5161 = vrcp.f32 %v3851_v4  ;;  %v4090_v41 = vmul.f32 %v3994_v19, %v8627_v57  ;;  %v8631_v27 = vld [vmem:[#allocation89_spill] sm:$0xff] }
 0x5ec   : > { %v7986_v14 = vadd.f32 %v7910_v7, %v4324_v48  ;;  %v4098_v61 = vmul.f32 %v4002_v59, %v8628_v38  ;;  %v4106_v46 = vmul.f32 %v4010_v47, %v8629_v25  ;;  %v4114_v7 = vmul.f32 %v4018_v15, %v8630_v5  ;;  %v8634_v48 = vld [vmem:[#allocation126_spill] sm:$0xff] }
 0x5ed   : > { %v4222_v49 = vadd.f32 %v4074_v53, %v4066_v6  ;;  %v4269_v2 = vadd.s32 %v7222_v39, %v4260_v28  ;;  %v4122_v1 = vmul.f32 %v4026_v55, %v8631_v27  ;;  %v3968_v17 = vand.u32 2147483648, %v3851_v4  ;;  %v8635_v6 = vld [vmem:[#allocation139_spill] sm:$0xff]  ;;  %v8641_v5 = vld [vmem:[#allocation66_spill] sm:$0xff] }
 0x5ee   : > { %v3966_v42 = vand.u32 2147483647, %v3851_v4  ;;  %v4130_v23 = vmul.f32 %v4034_v60, %v8632_v3  ;;  %vm3962_vm5 = vweird.f32 %v3851_v4  ;;  %v4138_v10 = vmul.f32 %v4042_v45, %v8633_v34  ;;  %v8646_v34 = vld [vmem:[#allocation127_spill] sm:$0xff] }
 0x5ef   : > { %v4223_v51 = vadd.f32 %v4222_v49, %v4082_v62  ;;  %vm4279_vm4 = vcmp.lt.s32.totalorder %v4269_v2, %v7225_v18  ;;  %v3969_v47 = vor.u32 1.1754944e-38, %v3968_v17  ;;  %v4146_v31 = vmul.f32 %v4050_v29, %v8634_v48  ;;  %v8642_v2 = vld [vmem:[#allocation78_spill] sm:$0xff] }
 0x5f0   : > { %v4841_v15 = vsel %vm4279_vm4, 1.0, %v8504_v8  ;;  %vm3967_vm7 = vcmp.eq.f32.partialorder %v3966_v42, 8.507059e+37  ;;  %v4154_v32 = vmul.f32 %v4058_v37, %v8635_v6 }
 0x5f1   : > { %v4224_v22 = vadd.f32 %v4223_v51, %v4090_v41  ;;  %v5162_v13 = vpop.eup %5161 }
 0x5f2   : > { %v3958_v44 = vmul.f32 %v5162_v13, %v3851_v4  ;;  %vm3963_vm3 = vweird.f32 %v5162_v13 }
 0x5f3   : > { %v4225_v0 = vadd.f32 %v4224_v22, %v4098_v61  ;;  %vm3964_vm6 = vmor %vm3962_vm5, %vm3963_vm3  ;;  %v8636_v61 = vld [vmem:[#allocation13_spill] sm:$0xff] }
 0x5f4   : > { %v3959_v30 = vsub.f32 1.0, %v3958_v44  ;;  %v8637_v22 = vld [vmem:[#allocation21_spill] sm:$0xff] }
 0x5f5   : > { %v4226_v36 = vadd.f32 %v4225_v0, %v4106_v46  ;;  %v8640_v0 = vld [vmem:[#allocation54_spill] sm:$0xff] }
 0x5f6   : > { %v3960_v11 = vmul.f32 %v5162_v13, %v3959_v30 }
 0x5f7   : > { %v4227_v26 = vadd.f32 %v4226_v36, %v4114_v7 }
 0x5f8   : > { %v3961_v19 = vadd.f32 %v5162_v13, %v3960_v11  ;;  %v8644_v11 = vld [vmem:[#allocation103_spill] sm:$0xff] }
 0x5f9   : > { %v4228_v35 = vadd.f32 %v4227_v26, %v4122_v1  ;;  %v4261_v1 = vadd.s32 56, %v7237_v43  ;;  %v8643_v26 = vld [vmem:[#allocation90_spill] sm:$0xff] }
 0x5fa   : > { %v3965_v55 = vsel %vm3964_vm6, %v5162_v13, %v3961_v19 }
 0x5fb   : > { %v4229_v59 = vadd.f32 %v4228_v35, %v4130_v23  ;;  %v3970_v60 = vsel %vm3967_vm7, %v3969_v47, %v3965_v55  ;;  %v8645_v23 = vld [vmem:[#allocation115_spill] sm:$0xff]  ;;  %v8647_v47 = vld [vmem:[#allocation140_spill] sm:$0xff] }
 0x5fc   : > { %v3971_v54 = vmul.f32 %v7865_v63, %v3970_v60  ;;  %v3979_v4 = vmul.f32 %v7867_v58, %v3970_v60  ;;  %v3987_v45 = vmul.f32 %v7896_v16, %v3970_v60  ;;  %v3995_v62 = vmul.f32 %v7898_v24, %v3970_v60 }
 0x5fd   : > { %v4230_v53 = vadd.f32 %v4229_v59, %v4138_v10  ;;  %v4003_v57 = vmul.f32 %v7923_v9, %v3970_v60  ;;  %v4011_v41 = vmul.f32 %v7929_v40, %v3970_v60  ;;  %v4019_v29 = vmul.f32 %v7938_v33, %v3970_v60  ;;  %v8638_v40 = vld [vmem:[#allocation31_spill] sm:$0xff] }
 0x5fe   : > { %v4027_v37 = vmul.f32 %v7941_v20, %v3970_v60  ;;  %v4035_v51 = vmul.f32 %v7946_v56, %v3970_v60  ;;  %v4043_v63 = vmul.f32 %v7951_v21, %v3970_v60  ;;  %v4051_v38 = vmul.f32 %v7955_v52, %v3970_v60  ;;  %v8639_v56 = vld [vmem:[#allocation42_spill] sm:$0xff] }
 0x5ff   : > { %v4231_v49 = vadd.f32 %v4230_v53, %v4146_v31  ;;  %v4059_v16 = vmul.f32 %v7961_v12, %v3970_v60  ;;  %v4067_v24 = vmul.f32 %v3971_v54, %v8636_v61  ;;  %v4075_v28 = vmul.f32 %v3979_v4, %v8637_v22 }
 0x600   : > { %v4083_v13 = vmul.f32 %v3987_v45, %v8638_v40  ;;  %v4091_v46 = vmul.f32 %v3995_v62, %v8639_v56  ;;  %v4099_v44 = vmul.f32 %v4003_v57, %v8640_v0  ;;  %v4107_v7 = vmul.f32 %v4011_v41, %v8641_v5 }
 0x601   : > { %v4232_v58 = vadd.f32 %v4231_v49, %v4154_v32  ;;  %v4233_v33 = vadd.f32 %v4075_v28, %v4067_v24  ;;  %v4115_v30 = vmul.f32 %v4019_v29, %v8642_v2  ;;  %v4131_v42 = vmul.f32 %v4035_v51, %v8644_v11 }
 0x602   : > { %v4139_v35 = vmul.f32 %v4043_v63, %v8645_v23  ;;  %v4147_v10 = vmul.f32 %v4051_v38, %v8646_v34  ;;  %v4155_v43 = vmul.f32 %v4059_v16, %v8647_v47 }
 0x603   : > { %4250 = vst [vmem:[%s7356_s28 + $0x30] sm:$0xff] %v4232_v58  ;;  %v4303_v9 = vmul.f32 %v4841_v15, %v4232_v58  ;;  %v4234_v21 = vadd.f32 %v4233_v33, %v4083_v13 }
 0x605   : > { %v4310_v20 = vadd.f32 %v7980_v50, %v4303_v9  ;;  %v4325_v25 = vmul.f32 %v4303_v9, %v4232_v58  ;;  %v4235_v12 = vadd.f32 %v4234_v21, %v4091_v46  ;;  %v4123_v50 = vmul.f32 %v4027_v37, %v8643_v26 }
 0x607   : > { %v4332_v52 = vadd.f32 %v7986_v14, %v4325_v25  ;;  %v4236_v36 = vadd.f32 %v4235_v12, %v4099_v44  ;;  %v4270_v14 = vadd.s32 %v7222_v39, %v4261_v1 }
 0x609   : > { %v4237_v27 = vadd.f32 %v4236_v36, %v4107_v7  ;;  %vm4280_vm8 = vcmp.lt.s32.totalorder %v4270_v14, %v7225_v18 }
 0x60a   : > { %v4842_v55 = vsel %vm4280_vm8, 1.0, %v8504_v8 }
 0x60b   : > { %v4238_v17 = vadd.f32 %v4237_v27, %v4115_v30 }
 0x60d   : > { %v4239_v3 = vadd.f32 %v4238_v17, %v4123_v50 }
 0x60f   : > { %v4240_v19 = vadd.f32 %v4239_v3, %v4131_v42 }
 0x611   : > { %v4241_v59 = vadd.f32 %v4240_v19, %v4139_v35 }
 0x613   : > { %v4242_v15 = vadd.f32 %v4241_v59, %v4147_v10 }
 0x615   : > { %v4243_v48 = vadd.f32 %v4242_v15, %v4155_v43 }
 0x617   : > { %4251 = vst [vmem:[%s7356_s28 + $0x38] sm:$0xff] %v4243_v48  ;;  %v4304_v31 = vmul.f32 %v4842_v55, %v4243_v48 }
 0x619   : > { %v4311_v6 = vadd.f32 %v4310_v20, %v4304_v31  ;;  %v4326_v39 = vmul.f32 %v4304_v31, %v4243_v48 }
 0x61b   : > { %v4312_v32 = vrot.slane %v4311_v6, 4  ;;  %v4333_v53 = vadd.f32 %v4332_v52, %v4326_v39 }
 0x61d   : > { %v4313_v60 = vadd.f32 %v4312_v32, %v4311_v6  ;;  %v4334_v54 = vrot.slane %v4333_v53, 4 }
 0x61f   : > { %v4314_v4 = vrot.slane %v4313_v60, 2  ;;  %v4335_v45 = vadd.f32 %v4334_v54, %v4333_v53 }
 0x621   : > { %v4315_v18 = vadd.f32 %v4314_v4, %v4313_v60  ;;  %v4336_v62 = vrot.slane %v4335_v45, 2 }
 0x623   : > { %v4316_v49 = vrot.slane %v4315_v18, 1  ;;  %v4337_v57 = vadd.f32 %v4336_v62, %v4335_v45 }
 0x625   : > { %v4317_v8 = vadd.f32 %v4316_v49, %v4315_v18  ;;  %v4338_v41 = vrot.slane %v4337_v57, 1 }
 0x627   : > { %4318 = vst [vmem:[%s1238_s14] sm:$0x1] %v4317_v8  ;;  %v4339_v29 = vadd.f32 %v4338_v41, %v4337_v57 }
 0x629   : > { %4340 = vst [vmem:[%s1241_s16] sm:$0x1] %v4339_v29 }
 0x62a PF: > { %p20_p10 = scmp.ge.s32.totalorder %s5277_s22, 4   ;;  %s8648_s19 = smov %s5188_s20 }
 0x62b   : > { %s8649_s20 = smov %s5286_s25  ;;  %s8650_s21 = smov %s5277_s22 }
 0x62c   :  { %22 = sbr.rel (!%p20_p10) target bundleno = 4 (0x4), region = 198 }

</bundles_post_ra>
